<compile_context>
chip_gen: v7x
topology: tpu7x:2x2x1
jax: 0.10.0
libtpu: 0.0.40
codegen_flags: <defaults>
</compile_context>

<pallas_src>
import functools

import numpy as np
import jax
import jax.numpy as jnp
from jax.experimental import pallas as pl
from jax.experimental.pallas import tpu as pltpu


def triangle_attention_kernel(pair_ref, wq_ref, bq_ref, wk_ref, bk_ref,
                              wv_ref, bv_ref, wout_ref, bout_ref, bias_ref,
                              out_ref, *, num_heads, head_dim, rows_per_block, n):
    """One grid step: full attention for `rows_per_block` rows of the pair rep."""
    c = num_heads * head_dim
    rows = rows_per_block * n

    x = pair_ref[...]                       # (rows, c), compute dtype
    cdt = x.dtype

    # (n, n) additive bias (scaled distances + mask) broadcast once; the static
    # head unroll below would otherwise re-emit the broadcast per head.
    bias3 = jnp.broadcast_to(bias_ref[...], (rows_per_block, n, n))   # f32

    acc = jnp.zeros((rows, c), jnp.float32)

    # Static unroll over heads; all head splits are on leading axes of the
    # pre-shaped weights, so no lane slicing / concat / transpose is needed.
    for h in range(num_heads):
        # NOTE: 1/sqrt(head_dim) is already folded into wq_ref / bq_ref.
        q = jnp.dot(x, wq_ref[h], preferred_element_type=jnp.float32) + bq_ref[h]
        k = jnp.dot(x, wk_ref[h], preferred_element_type=jnp.float32) + bk_ref[h]
        v = jnp.dot(x, wv_ref[h], preferred_element_type=jnp.float32) + bv_ref[h]

        q3 = q.reshape(rows_per_block, n, head_dim).astype(cdt)   # (TR, n, D)
        k3 = k.reshape(rows_per_block, n, head_dim).astype(cdt)
        v3 = v.reshape(rows_per_block, n, head_dim).astype(cdt)

        # Row-batched scores; contraction on the last dim (no explicit k.T).
        s = jnp.einsum('rqd,rkd->rqk', q3, k3,
                       preferred_element_type=jnp.float32) + bias3  # (TR, n, n)

        m = jnp.max(s, axis=-1, keepdims=True)
        e = jnp.exp(s - m)                                          # f32, in (0, 1]
        denom = jnp.sum(e, axis=-1, keepdims=True)                  # (TR, n, 1)

        # Aggregate with UNnormalized weights, then rescale the (TR, n, D)
        # result once: cheaper than rescaling the (TR, n, n) weight matrix.
        att = jnp.einsum('rqk,rkd->rqd', e.astype(cdt), v3,
                         preferred_element_type=jnp.float32)        # (TR, n, D)
        att = att * pl.reciprocal(denom, approx=True)               # EUP slot

        att2 = att.reshape(rows, head_dim).astype(cdt)

        # Accumulate the output projection per head (no concatenate).
        acc = acc + jnp.dot(att2, wout_ref[h],
                            preferred_element_type=jnp.float32)     # (rows, c)

    out_ref[...] = (acc + bout_ref[...]).astype(out_ref.dtype)


def _pick_row_block(n, target_rows=512):
    """Rows of the pair rep per grid step.

    Aim for TR * n >= target_rows so the fused matmuls fill the MXU M dim,
    while keeping >= 2 grid steps so the "parallel" axis can be sharded across
    both TensorCores on v7x.  The flattened block (TR*n) must also satisfy the
    (8, 128) sublane rule; fall back to a single full-array step otherwise.
    """
    tr = max(1, min(n, -(-target_rows // n)))
    while n % tr:
        tr -= 1
    if tr == n and n > 1:          # keep at least 2 grid steps (megacore)
        tr = n // 2
        while n % tr:
            tr -= 1
    # Enforce sublane divisibility of the flattened row block.
    while tr > 1 and (tr * n) % 8 != 0:
        tr -= 1
        while tr > 1 and n % tr:
            tr -= 1
    if (tr * n) % 8 != 0 and tr != n:
        tr = n                     # single grid step: block == full array
    return max(tr, 1)


def triangle_attention(pair_rep, wqkv, bqkv, wout, bout, distance_scale,
                       distance_matrix, mask, num_heads, *,
                       rows_per_block=None, compute_dtype=None):
    """TriangleAttention forward.

    pair_rep: (n, n, c); wqkv: (c, 3c) and wout: (c, c) already transposed to
    the y = x @ W + b layout (PyTorch nn.Linear stores (out, in)).
    compute_dtype: set to jnp.bfloat16 on v6e/v7x for peak MXU throughput
    (accumulation stays f32); defaults to pair_rep.dtype.
    """
    n, n2, c = pair_rep.shape
    assert n == n2
    head_dim, rem = divmod(c, num_heads)
    assert rem == 0, 'c must be divisible by num_heads'

    if compute_dtype is None:
        compute_dtype = pair_rep.dtype
    if rows_per_block is None:
        rows_per_block = _pick_row_block(n)
    assert n % rows_per_block == 0
    rows = rows_per_block * n

    inv_sqrt_d = float(1.0 / np.sqrt(head_dim))

    # --- Pre-shape parameters so the kernel never slices the lane axis. ---
    wq, wk, wv = jnp.split(wqkv, 3, axis=1)                    # each (c, c)

    def per_head_w(w, scale=1.0):                              # (c, c) -> (H, c, D)
        w = w.reshape(c, num_heads, head_dim)
        if scale != 1.0:
            w = w * scale                                      # fold 1/sqrt(D) (f32)
        return jnp.transpose(w, (1, 0, 2)).astype(compute_dtype)

    def per_head_b(b, scale=1.0):                              # (c,) -> (H, 1, D)
        b = b.reshape(num_heads, 1, head_dim).astype(jnp.float32)
        return b * scale if scale != 1.0 else b

    bq, bk, bv = jnp.split(bqkv, 3)
    # 1/sqrt(head_dim) is folded into the Q projection (exactly equivalent to
    # scaling the scores; removes the per-head in-kernel score rescale).
    wq_h = per_head_w(wq, inv_sqrt_d)
    wk_h, wv_h = per_head_w(wk), per_head_w(wv)
    bq_h = per_head_b(bq, inv_sqrt_d)
    bk_h, bv_h = per_head_b(bk), per_head_b(bv)
    wout_h = wout.reshape(num_heads, head_dim, c).astype(compute_dtype)  # (H, D, c)
    bout2 = bout.reshape(1, c).astype(jnp.float32)

    # --- Fold distance bias and mask into a single additive (n, n) bias. ---
    bias = jnp.zeros((n, n), jnp.float32)
    if distance_matrix is not None:
        bias = bias + (distance_scale.reshape(()) *
                       distance_matrix).astype(jnp.float32)
    if mask is not None:
        # -1e30 instead of -inf: identical softmax when a row has any unmasked
        # key, and no NaN if a row is fully masked.
        bias = bias + jnp.where(mask, -1e30, 0.0).astype(jnp.float32)

    # Flatten rows so each grid step gets a lane-dense (rows, c) tile.
    pair2d = pair_rep.reshape(n * n, c).astype(compute_dtype)

    kernel = functools.partial(triangle_attention_kernel,
                               num_heads=num_heads, head_dim=head_dim,
                               rows_per_block=rows_per_block, n=n)

    out2d = pl.pallas_call(
        kernel,
        out_shape=jax.ShapeDtypeStruct((n * n, c), pair_rep.dtype),
        grid=(n // rows_per_block,),
        in_specs=[
            pl.BlockSpec((rows, c), lambda i: (i, 0)),                      # pair rows
            pl.BlockSpec((num_heads, c, head_dim), lambda i: (0, 0, 0)),    # Wq per head
            pl.BlockSpec((num_heads, 1, head_dim), lambda i: (0, 0, 0)),    # bq per head
            pl.BlockSpec((num_heads, c, head_dim), lambda i: (0, 0, 0)),    # Wk per head
            pl.BlockSpec((num_heads, 1, head_dim), lambda i: (0, 0, 0)),    # bk per head
            pl.BlockSpec((num_heads, c, head_dim), lambda i: (0, 0, 0)),    # Wv per head
            pl.BlockSpec((num_heads, 1, head_dim), lambda i: (0, 0, 0)),    # bv per head
            pl.BlockSpec((num_heads, head_dim, c), lambda i: (0, 0, 0)),    # Wout per head
            pl.BlockSpec((1, c), lambda i: (0, 0)),                         # bout
            pl.BlockSpec((n, n), lambda i: (0, 0)),                         # masked bias
        ],
        out_specs=pl.BlockSpec((rows, c), lambda i: (i, 0)),
        compiler_params=pltpu.CompilerParams(
            dimension_semantics=("parallel",),
            vmem_limit_bytes=32 * 1024 * 1024),
    )(pair2d, wq_h, bq_h, wk_h, bk_h, wv_h, bv_h, wout_h, bout2, bias)

    return out2d.reshape(n, n, c)


def ref_forward(pair_rep, wqkv, bqkv, wout, bout, scale, dist, mask, num_heads):
    """Pure-JAX reference mirroring the PyTorch forward exactly."""
    n, _, c = pair_rep.shape
    d = c // num_heads
    qkv = pair_rep @ wqkv + bqkv
    q, k, v = jnp.split(qkv, 3, axis=-1)
    q = q.reshape(n, n, num_heads, d).transpose(2, 0, 1, 3)     # (H, n, n, D)
    k = k.reshape(n, n, num_heads, d).transpose(2, 0, 3, 1)     # (H, n, D, n)
    v = v.reshape(n, n, num_heads, d).transpose(2, 0, 1, 3)     # (H, n, n, D)
    scores = jnp.matmul(q, k) / np.sqrt(d)                      # (H, n, n, n)
    scores = scores + (scale.reshape(()) * dist)[None, None, :, :]
    scores = jnp.where(mask[None, None, :, :], -jnp.inf, scores)
    w = jax.nn.softmax(scores, axis=-1)
    att = jnp.matmul(w, v)                                      # (H, n, n, D)
    att = att.transpose(1, 2, 0, 3).reshape(n, n, c)
    return att @ wout + bout


if __name__ == "__main__":
    n, c, num_heads = 16, 128, 4                                # head_dim = 32

    key = jax.random.PRNGKey(0)
    k0, k1, k2, k3, k4, k5, k6 = jax.random.split(key, 7)

    pair_rep = jax.random.normal(k0, (n, n, c), jnp.float32)

    # PyTorch nn.Linear stores (out, in); transpose to (in, out) for x @ W.
    Wqkv_pt = jax.random.normal(k1, (3 * c, c), jnp.float32) * 0.05
    bqkv = jax.random.normal(k2, (3 * c,), jnp.float32) * 0.05
    Wout_pt = jax.random.normal(k3, (c, c), jnp.float32) * 0.05
    bout = jax.random.normal(k4, (c,), jnp.float32) * 0.05
    distance_scale = jnp.ones((1,), jnp.float32)                # nn.Parameter(torch.ones(1))

    distance_matrix = jax.random.normal(k5, (n, n), jnp.float32)
    mask = jax.random.bernoulli(k6, 0.2, (n, n))
    mask = mask.at[jnp.arange(n), jnp.arange(n)].set(False)     # keep rows attendable

    wqkv = Wqkv_pt.T
    wout = Wout_pt.T

    out = triangle_attention(pair_rep, wqkv, bqkv, wout, bout, distance_scale,
                             distance_matrix, mask, num_heads)
    out = jax.block_until_ready(out)

    ref = ref_forward(pair_rep, wqkv, bqkv, wout, bout, distance_scale,
                      distance_matrix, mask, num_heads)
    # Tolerance slack is solely for pl.reciprocal(approx=True) in the softmax
    # normalization; with an exact divide the f32 path matches to ~1e-5.
    np.testing.assert_allclose(np.asarray(out), np.asarray(ref),
                               rtol=1e-2, atol=1e-2)
    print("KERNEL_OK")
</pallas_src>

<mosaic_0001>
module attributes {stable_mosaic.version = 11 : i64} {
  func.func @triangle_attention_kernel(%arg0: i32, %arg1: memref<128x128xf32, #tpu.memory_space<vmem>>, %arg2: memref<4x128x32xf32, #tpu.memory_space<vmem>>, %arg3: memref<4x1x32xf32, #tpu.memory_space<vmem>>, %arg4: memref<4x128x32xf32, #tpu.memory_space<vmem>>, %arg5: memref<4x1x32xf32, #tpu.memory_space<vmem>>, %arg6: memref<4x128x32xf32, #tpu.memory_space<vmem>>, %arg7: memref<4x1x32xf32, #tpu.memory_space<vmem>>, %arg8: memref<4x32x128xf32, #tpu.memory_space<vmem>>, %arg9: memref<1x128xf32, #tpu.memory_space<vmem>>, %arg10: memref<16x16xf32, #tpu.memory_space<vmem>>, %arg11: memref<128x128xf32, #tpu.memory_space<vmem>>) attributes {dimension_semantics = [#tpu.dimension_semantics<parallel>], iteration_bounds = array<i64: 2>, scalar_prefetch = 0 : i64, scratch_operands = 0 : i64, tpu.core_type = #tpu.core_type<tc>, window_params = [{transform_indices = @transform_0, window_bounds = array<i64: 128, 128>}, {pipeline_mode = #tpu.pipeline_mode<synchronous>, transform_indices = @transform_1, window_bounds = array<i64: 4, 128, 32>}, {pipeline_mode = #tpu.pipeline_mode<synchronous>, transform_indices = @transform_2, window_bounds = array<i64: 4, 1, 32>}, {pipeline_mode = #tpu.pipeline_mode<synchronous>, transform_indices = @transform_3, window_bounds = array<i64: 4, 128, 32>}, {pipeline_mode = #tpu.pipeline_mode<synchronous>, transform_indices = @transform_4, window_bounds = array<i64: 4, 1, 32>}, {pipeline_mode = #tpu.pipeline_mode<synchronous>, transform_indices = @transform_5, window_bounds = array<i64: 4, 128, 32>}, {pipeline_mode = #tpu.pipeline_mode<synchronous>, transform_indices = @transform_6, window_bounds = array<i64: 4, 1, 32>}, {pipeline_mode = #tpu.pipeline_mode<synchronous>, transform_indices = @transform_7, window_bounds = array<i64: 4, 32, 128>}, {pipeline_mode = #tpu.pipeline_mode<synchronous>, transform_indices = @transform_8, window_bounds = array<i64: 1, 128>}, {pipeline_mode = #tpu.pipeline_mode<synchronous>, transform_indices = @transform_9, window_bounds = array<i64: 16, 16>}, {transform_indices = @transform_10, window_bounds = array<i64: 128, 128>}]} {
    %c0 = arith.constant 0 : index
    %c0_0 = arith.constant 0 : index
    %0 = vector.load %arg1[%c0, %c0_0] : memref<128x128xf32, #tpu.memory_space<vmem>>, vector<128x128xf32>
    %c0_1 = arith.constant 0 : index
    %c0_2 = arith.constant 0 : index
    %1 = vector.load %arg10[%c0_1, %c0_2] : memref<16x16xf32, #tpu.memory_space<vmem>>, vector<16x16xf32>
    %2 = vector.shape_cast %1 : vector<16x16xf32> to vector<1x16x16xf32>
    %3 = vector.broadcast %2 : vector<1x16x16xf32> to vector<8x16x16xf32>
    %cst = arith.constant 0.000000e+00 : f32
    %4 = vector.broadcast %cst : f32 to vector<128x128xf32>
    %c0_3 = arith.constant 0 : index
    %c0_4 = arith.constant 0 : index
    %c0_5 = arith.constant 0 : index
    %5 = vector.load %arg2[%c0_3, %c0_4, %c0_5] : memref<4x128x32xf32, #tpu.memory_space<vmem>>, vector<1x128x32xf32>
    %6 = vector.shape_cast %5 : vector<1x128x32xf32> to vector<128x32xf32>
    %cst_6 = arith.constant dense<0.000000e+00> : vector<128x32xf32>
    %7 = tpu.matmul %0, %6, %cst_6 {dimension_numbers = #tpu.dot_dimension_numbers<[1], [0], [0], [1], [0, 0, 1, 1], [], []>} : vector<128x128xf32>, vector<128x32xf32>, vector<128x32xf32> -> vector<128x32xf32>
    %c0_7 = arith.constant 0 : index
    %c0_8 = arith.constant 0 : index
    %c0_9 = arith.constant 0 : index
    %8 = vector.load %arg3[%c0_7, %c0_8, %c0_9] : memref<4x1x32xf32, #tpu.memory_space<vmem>>, vector<1x1x32xf32>
    %9 = vector.shape_cast %8 : vector<1x1x32xf32> to vector<1x32xf32>
    %10 = vector.broadcast %9 : vector<1x32xf32> to vector<128x32xf32>
    %11 = arith.addf %7, %10 : vector<128x32xf32>
    %c0_10 = arith.constant 0 : index
    %c0_11 = arith.constant 0 : index
    %c0_12 = arith.constant 0 : index
    %12 = vector.load %arg4[%c0_10, %c0_11, %c0_12] : memref<4x128x32xf32, #tpu.memory_space<vmem>>, vector<1x128x32xf32>
    %13 = vector.shape_cast %12 : vector<1x128x32xf32> to vector<128x32xf32>
    %cst_13 = arith.constant dense<0.000000e+00> : vector<128x32xf32>
    %14 = tpu.matmul %0, %13, %cst_13 {dimension_numbers = #tpu.dot_dimension_numbers<[1], [0], [0], [1], [0, 0, 1, 1], [], []>} : vector<128x128xf32>, vector<128x32xf32>, vector<128x32xf32> -> vector<128x32xf32>
    %c0_14 = arith.constant 0 : index
    %c0_15 = arith.constant 0 : index
    %c0_16 = arith.constant 0 : index
    %15 = vector.load %arg5[%c0_14, %c0_15, %c0_16] : memref<4x1x32xf32, #tpu.memory_space<vmem>>, vector<1x1x32xf32>
    %16 = vector.shape_cast %15 : vector<1x1x32xf32> to vector<1x32xf32>
    %17 = vector.broadcast %16 : vector<1x32xf32> to vector<128x32xf32>
    %18 = arith.addf %14, %17 : vector<128x32xf32>
    %c0_17 = arith.constant 0 : index
    %c0_18 = arith.constant 0 : index
    %c0_19 = arith.constant 0 : index
    %19 = vector.load %arg6[%c0_17, %c0_18, %c0_19] : memref<4x128x32xf32, #tpu.memory_space<vmem>>, vector<1x128x32xf32>
    %20 = vector.shape_cast %19 : vector<1x128x32xf32> to vector<128x32xf32>
    %cst_20 = arith.constant dense<0.000000e+00> : vector<128x32xf32>
    %21 = tpu.matmul %0, %20, %cst_20 {dimension_numbers = #tpu.dot_dimension_numbers<[1], [0], [0], [1], [0, 0, 1, 1], [], []>} : vector<128x128xf32>, vector<128x32xf32>, vector<128x32xf32> -> vector<128x32xf32>
    %c0_21 = arith.constant 0 : index
    %c0_22 = arith.constant 0 : index
    %c0_23 = arith.constant 0 : index
    %22 = vector.load %arg7[%c0_21, %c0_22, %c0_23] : memref<4x1x32xf32, #tpu.memory_space<vmem>>, vector<1x1x32xf32>
    %23 = vector.shape_cast %22 : vector<1x1x32xf32> to vector<1x32xf32>
    %24 = vector.broadcast %23 : vector<1x32xf32> to vector<128x32xf32>
    %25 = arith.addf %21, %24 : vector<128x32xf32>
    %26 = vector.shape_cast %11 : vector<128x32xf32> to vector<8x16x32xf32>
    %27 = vector.shape_cast %18 : vector<128x32xf32> to vector<8x16x32xf32>
    %28 = vector.shape_cast %25 : vector<128x32xf32> to vector<8x16x32xf32>
    "tpu.trace_start"() <{level = 10 : i32, message = "rqd,rkd->rqk"}> : () -> ()
    %cst_24 = arith.constant dense<0.000000e+00> : vector<8x16x16xf32>
    %29 = tpu.matmul %26, %27, %cst_24 {dimension_numbers = #tpu.dot_dimension_numbers<[2], [2], [1], [1], [0, 0, 0, 1, 1, 1], [0], [0]>} : vector<8x16x32xf32>, vector<8x16x32xf32>, vector<8x16x16xf32> -> vector<8x16x16xf32>
    "tpu.trace_stop"() : () -> ()
    %30 = arith.addf %29, %3 : vector<8x16x16xf32>
    %cst_25 = arith.constant dense<0xFF800000> : vector<8x16xf32>
    %31 = vector.multi_reduction <maximumf>, %30, %cst_25 [2] : vector<8x16x16xf32> to vector<8x16xf32>
    %32 = vector.shape_cast %31 : vector<8x16xf32> to vector<8x16x1xf32>
    %33 = vector.broadcast %32 : vector<8x16x1xf32> to vector<8x16x16xf32>
    %34 = arith.subf %30, %33 : vector<8x16x16xf32>
    %35 = math.exp %34 : vector<8x16x16xf32>
    %cst_26 = arith.constant dense<0.000000e+00> : vector<8x16xf32>
    %36 = vector.multi_reduction <add>, %35, %cst_26 [2] : vector<8x16x16xf32> to vector<8x16xf32>
    %37 = vector.shape_cast %36 : vector<8x16xf32> to vector<8x16x1xf32>
    "tpu.trace_start"() <{level = 10 : i32, message = "rqk,rkd->rqd"}> : () -> ()
    %cst_27 = arith.constant dense<0.000000e+00> : vector<8x16x32xf32>
    %38 = tpu.matmul %35, %28, %cst_27 {dimension_numbers = #tpu.dot_dimension_numbers<[2], [1], [1], [2], [0, 0, 0, 1, 1, 2], [0], [0]>} : vector<8x16x16xf32>, vector<8x16x32xf32>, vector<8x16x32xf32> -> vector<8x16x32xf32>
    "tpu.trace_stop"() : () -> ()
    %39 = tpu.reciprocal %37 {approx = true} : vector<8x16x1xf32> -> vector<8x16x1xf32>
    %40 = vector.broadcast %39 : vector<8x16x1xf32> to vector<8x16x32xf32>
    %41 = arith.mulf %38, %40 : vector<8x16x32xf32>
    %42 = vector.shape_cast %41 : vector<8x16x32xf32> to vector<128x32xf32>
    %c0_28 = arith.constant 0 : index
    %c0_29 = arith.constant 0 : index
    %c0_30 = arith.constant 0 : index
    %43 = vector.load %arg8[%c0_28, %c0_29, %c0_30] : memref<4x32x128xf32, #tpu.memory_space<vmem>>, vector<1x32x128xf32>
    %44 = vector.shape_cast %43 : vector<1x32x128xf32> to vector<32x128xf32>
    %cst_31 = arith.constant dense<0.000000e+00> : vector<128x128xf32>
    %45 = tpu.matmul %42, %44, %cst_31 {dimension_numbers = #tpu.dot_dimension_numbers<[1], [0], [0], [1], [0, 0, 1, 1], [], []>} : vector<128x32xf32>, vector<32x128xf32>, vector<128x128xf32> -> vector<128x128xf32>
    %46 = arith.addf %4, %45 : vector<128x128xf32>
    %c1 = arith.constant 1 : index
    %c0_32 = arith.constant 0 : index
    %c0_33 = arith.constant 0 : index
    %47 = vector.load %arg2[%c1, %c0_32, %c0_33] : memref<4x128x32xf32, #tpu.memory_space<vmem>>, vector<1x128x32xf32>
    %48 = vector.shape_cast %47 : vector<1x128x32xf32> to vector<128x32xf32>
    %cst_34 = arith.constant dense<0.000000e+00> : vector<128x32xf32>
    %49 = tpu.matmul %0, %48, %cst_34 {dimension_numbers = #tpu.dot_dimension_numbers<[1], [0], [0], [1], [0, 0, 1, 1], [], []>} : vector<128x128xf32>, vector<128x32xf32>, vector<128x32xf32> -> vector<128x32xf32>
    %c1_35 = arith.constant 1 : index
    %c0_36 = arith.constant 0 : index
    %c0_37 = arith.constant 0 : index
    %50 = vector.load %arg3[%c1_35, %c0_36, %c0_37] : memref<4x1x32xf32, #tpu.memory_space<vmem>>, vector<1x1x32xf32>
    %51 = vector.shape_cast %50 : vector<1x1x32xf32> to vector<1x32xf32>
    %52 = vector.broadcast %51 : vector<1x32xf32> to vector<128x32xf32>
    %53 = arith.addf %49, %52 : vector<128x32xf32>
    %c1_38 = arith.constant 1 : index
    %c0_39 = arith.constant 0 : index
    %c0_40 = arith.constant 0 : index
    %54 = vector.load %arg4[%c1_38, %c0_39, %c0_40] : memref<4x128x32xf32, #tpu.memory_space<vmem>>, vector<1x128x32xf32>
    %55 = vector.shape_cast %54 : vector<1x128x32xf32> to vector<128x32xf32>
    %cst_41 = arith.constant dense<0.000000e+00> : vector<128x32xf32>
    %56 = tpu.matmul %0, %55, %cst_41 {dimension_numbers = #tpu.dot_dimension_numbers<[1], [0], [0], [1], [0, 0, 1, 1], [], []>} : vector<128x128xf32>, vector<128x32xf32>, vector<128x32xf32> -> vector<128x32xf32>
    %c1_42 = arith.constant 1 : index
    %c0_43 = arith.constant 0 : index
    %c0_44 = arith.constant 0 : index
    %57 = vector.load %arg5[%c1_42, %c0_43, %c0_44] : memref<4x1x32xf32, #tpu.memory_space<vmem>>, vector<1x1x32xf32>
    %58 = vector.shape_cast %57 : vector<1x1x32xf32> to vector<1x32xf32>
    %59 = vector.broadcast %58 : vector<1x32xf32> to vector<128x32xf32>
    %60 = arith.addf %56, %59 : vector<128x32xf32>
    %c1_45 = arith.constant 1 : index
    %c0_46 = arith.constant 0 : index
    %c0_47 = arith.constant 0 : index
    %61 = vector.load %arg6[%c1_45, %c0_46, %c0_47] : memref<4x128x32xf32, #tpu.memory_space<vmem>>, vector<1x128x32xf32>
    %62 = vector.shape_cast %61 : vector<1x128x32xf32> to vector<128x32xf32>
    %cst_48 = arith.constant dense<0.000000e+00> : vector<128x32xf32>
    %63 = tpu.matmul %0, %62, %cst_48 {dimension_numbers = #tpu.dot_dimension_numbers<[1], [0], [0], [1], [0, 0, 1, 1], [], []>} : vector<128x128xf32>, vector<128x32xf32>, vector<128x32xf32> -> vector<128x32xf32>
    %c1_49 = arith.constant 1 : index
    %c0_50 = arith.constant 0 : index
    %c0_51 = arith.constant 0 : index
    %64 = vector.load %arg7[%c1_49, %c0_50, %c0_51] : memref<4x1x32xf32, #tpu.memory_space<vmem>>, vector<1x1x32xf32>
    %65 = vector.shape_cast %64 : vector<1x1x32xf32> to vector<1x32xf32>
    %66 = vector.broadcast %65 : vector<1x32xf32> to vector<128x32xf32>
    %67 = arith.addf %63, %66 : vector<128x32xf32>
    %68 = vector.shape_cast %53 : vector<128x32xf32> to vector<8x16x32xf32>
    %69 = vector.shape_cast %60 : vector<128x32xf32> to vector<8x16x32xf32>
    %70 = vector.shape_cast %67 : vector<128x32xf32> to vector<8x16x32xf32>
    "tpu.trace_start"() <{level = 10 : i32, message = "rqd,rkd->rqk"}> : () -> ()
    %cst_52 = arith.constant dense<0.000000e+00> : vector<8x16x16xf32>
    %71 = tpu.matmul %68, %69, %cst_52 {dimension_numbers = #tpu.dot_dimension_numbers<[2], [2], [1], [1], [0, 0, 0, 1, 1, 1], [0], [0]>} : vector<8x16x32xf32>, vector<8x16x32xf32>, vector<8x16x16xf32> -> vector<8x16x16xf32>
    "tpu.trace_stop"() : () -> ()
    %72 = arith.addf %71, %3 : vector<8x16x16xf32>
    %cst_53 = arith.constant dense<0xFF800000> : vector<8x16xf32>
    %73 = vector.multi_reduction <maximumf>, %72, %cst_53 [2] : vector<8x16x16xf32> to vector<8x16xf32>
    %74 = vector.shape_cast %73 : vector<8x16xf32> to vector<8x16x1xf32>
    %75 = vector.broadcast %74 : vector<8x16x1xf32> to vector<8x16x16xf32>
    %76 = arith.subf %72, %75 : vector<8x16x16xf32>
    %77 = math.exp %76 : vector<8x16x16xf32>
    %cst_54 = arith.constant dense<0.000000e+00> : vector<8x16xf32>
    %78 = vector.multi_reduction <add>, %77, %cst_54 [2] : vector<8x16x16xf32> to vector<8x16xf32>
    %79 = vector.shape_cast %78 : vector<8x16xf32> to vector<8x16x1xf32>
    "tpu.trace_start"() <{level = 10 : i32, message = "rqk,rkd->rqd"}> : () -> ()
    %cst_55 = arith.constant dense<0.000000e+00> : vector<8x16x32xf32>
    %80 = tpu.matmul %77, %70, %cst_55 {dimension_numbers = #tpu.dot_dimension_numbers<[2], [1], [1], [2], [0, 0, 0, 1, 1, 2], [0], [0]>} : vector<8x16x16xf32>, vector<8x16x32xf32>, vector<8x16x32xf32> -> vector<8x16x32xf32>
    "tpu.trace_stop"() : () -> ()
    %81 = tpu.reciprocal %79 {approx = true} : vector<8x16x1xf32> -> vector<8x16x1xf32>
    %82 = vector.broadcast %81 : vector<8x16x1xf32> to vector<8x16x32xf32>
    %83 = arith.mulf %80, %82 : vector<8x16x32xf32>
    %84 = vector.shape_cast %83 : vector<8x16x32xf32> to vector<128x32xf32>
    %c1_56 = arith.constant 1 : index
    %c0_57 = arith.constant 0 : index
    %c0_58 = arith.constant 0 : index
    %85 = vector.load %arg8[%c1_56, %c0_57, %c0_58] : memref<4x32x128xf32, #tpu.memory_space<vmem>>, vector<1x32x128xf32>
    %86 = vector.shape_cast %85 : vector<1x32x128xf32> to vector<32x128xf32>
    %cst_59 = arith.constant dense<0.000000e+00> : vector<128x128xf32>
    %87 = tpu.matmul %84, %86, %cst_59 {dimension_numbers = #tpu.dot_dimension_numbers<[1], [0], [0], [1], [0, 0, 1, 1], [], []>} : vector<128x32xf32>, vector<32x128xf32>, vector<128x128xf32> -> vector<128x128xf32>
    %88 = arith.addf %46, %87 : vector<128x128xf32>
    %c2 = arith.constant 2 : index
    %c0_60 = arith.constant 0 : index
    %c0_61 = arith.constant 0 : index
    %89 = vector.load %arg2[%c2, %c0_60, %c0_61] : memref<4x128x32xf32, #tpu.memory_space<vmem>>, vector<1x128x32xf32>
    %90 = vector.shape_cast %89 : vector<1x128x32xf32> to vector<128x32xf32>
    %cst_62 = arith.constant dense<0.000000e+00> : vector<128x32xf32>
    %91 = tpu.matmul %0, %90, %cst_62 {dimension_numbers = #tpu.dot_dimension_numbers<[1], [0], [0], [1], [0, 0, 1, 1], [], []>} : vector<128x128xf32>, vector<128x32xf32>, vector<128x32xf32> -> vector<128x32xf32>
    %c2_63 = arith.constant 2 : index
    %c0_64 = arith.constant 0 : index
    %c0_65 = arith.constant 0 : index
    %92 = vector.load %arg3[%c2_63, %c0_64, %c0_65] : memref<4x1x32xf32, #tpu.memory_space<vmem>>, vector<1x1x32xf32>
    %93 = vector.shape_cast %92 : vector<1x1x32xf32> to vector<1x32xf32>
    %94 = vector.broadcast %93 : vector<1x32xf32> to vector<128x32xf32>
    %95 = arith.addf %91, %94 : vector<128x32xf32>
    %c2_66 = arith.constant 2 : index
    %c0_67 = arith.constant 0 : index
    %c0_68 = arith.constant 0 : index
    %96 = vector.load %arg4[%c2_66, %c0_67, %c0_68] : memref<4x128x32xf32, #tpu.memory_space<vmem>>, vector<1x128x32xf32>
    %97 = vector.shape_cast %96 : vector<1x128x32xf32> to vector<128x32xf32>
    %cst_69 = arith.constant dense<0.000000e+00> : vector<128x32xf32>
    %98 = tpu.matmul %0, %97, %cst_69 {dimension_numbers = #tpu.dot_dimension_numbers<[1], [0], [0], [1], [0, 0, 1, 1], [], []>} : vector<128x128xf32>, vector<128x32xf32>, vector<128x32xf32> -> vector<128x32xf32>
    %c2_70 = arith.constant 2 : index
    %c0_71 = arith.constant 0 : index
    %c0_72 = arith.constant 0 : index
    %99 = vector.load %arg5[%c2_70, %c0_71, %c0_72] : memref<4x1x32xf32, #tpu.memory_space<vmem>>, vector<1x1x32xf32>
    %100 = vector.shape_cast %99 : vector<1x1x32xf32> to vector<1x32xf32>
    %101 = vector.broadcast %100 : vector<1x32xf32> to vector<128x32xf32>
    %102 = arith.addf %98, %101 : vector<128x32xf32>
    %c2_73 = arith.constant 2 : index
    %c0_74 = arith.constant 0 : index
    %c0_75 = arith.constant 0 : index
    %103 = vector.load %arg6[%c2_73, %c0_74, %c0_75] : memref<4x128x32xf32, #tpu.memory_space<vmem>>, vector<1x128x32xf32>
    %104 = vector.shape_cast %103 : vector<1x128x32xf32> to vector<128x32xf32>
    %cst_76 = arith.constant dense<0.000000e+00> : vector<128x32xf32>
    %105 = tpu.matmul %0, %104, %cst_76 {dimension_numbers = #tpu.dot_dimension_numbers<[1], [0], [0], [1], [0, 0, 1, 1], [], []>} : vector<128x128xf32>, vector<128x32xf32>, vector<128x32xf32> -> vector<128x32xf32>
    %c2_77 = arith.constant 2 : index
    %c0_78 = arith.constant 0 : index
    %c0_79 = arith.constant 0 : index
    %106 = vector.load %arg7[%c2_77, %c0_78, %c0_79] : memref<4x1x32xf32, #tpu.memory_space<vmem>>, vector<1x1x32xf32>
    %107 = vector.shape_cast %106 : vector<1x1x32xf32> to vector<1x32xf32>
    %108 = vector.broadcast %107 : vector<1x32xf32> to vector<128x32xf32>
    %109 = arith.addf %105, %108 : vector<128x32xf32>
    %110 = vector.shape_cast %95 : vector<128x32xf32> to vector<8x16x32xf32>
    %111 = vector.shape_cast %102 : vector<128x32xf32> to vector<8x16x32xf32>
    %112 = vector.shape_cast %109 : vector<128x32xf32> to vector<8x16x32xf32>
    "tpu.trace_start"() <{level = 10 : i32, message = "rqd,rkd->rqk"}> : () -> ()
    %cst_80 = arith.constant dense<0.000000e+00> : vector<8x16x16xf32>
    %113 = tpu.matmul %110, %111, %cst_80 {dimension_numbers = #tpu.dot_dimension_numbers<[2], [2], [1], [1], [0, 0, 0, 1, 1, 1], [0], [0]>} : vector<8x16x32xf32>, vector<8x16x32xf32>, vector<8x16x16xf32> -> vector<8x16x16xf32>
    "tpu.trace_stop"() : () -> ()
    %114 = arith.addf %113, %3 : vector<8x16x16xf32>
    %cst_81 = arith.constant dense<0xFF800000> : vector<8x16xf32>
    %115 = vector.multi_reduction <maximumf>, %114, %cst_81 [2] : vector<8x16x16xf32> to vector<8x16xf32>
    %116 = vector.shape_cast %115 : vector<8x16xf32> to vector<8x16x1xf32>
    %117 = vector.broadcast %116 : vector<8x16x1xf32> to vector<8x16x16xf32>
    %118 = arith.subf %114, %117 : vector<8x16x16xf32>
    %119 = math.exp %118 : vector<8x16x16xf32>
    %cst_82 = arith.constant dense<0.000000e+00> : vector<8x16xf32>
    %120 = vector.multi_reduction <add>, %119, %cst_82 [2] : vector<8x16x16xf32> to vector<8x16xf32>
    %121 = vector.shape_cast %120 : vector<8x16xf32> to vector<8x16x1xf32>
    "tpu.trace_start"() <{level = 10 : i32, message = "rqk,rkd->rqd"}> : () -> ()
    %cst_83 = arith.constant dense<0.000000e+00> : vector<8x16x32xf32>
    %122 = tpu.matmul %119, %112, %cst_83 {dimension_numbers = #tpu.dot_dimension_numbers<[2], [1], [1], [2], [0, 0, 0, 1, 1, 2], [0], [0]>} : vector<8x16x16xf32>, vector<8x16x32xf32>, vector<8x16x32xf32> -> vector<8x16x32xf32>
    "tpu.trace_stop"() : () -> ()
    %123 = tpu.reciprocal %121 {approx = true} : vector<8x16x1xf32> -> vector<8x16x1xf32>
    %124 = vector.broadcast %123 : vector<8x16x1xf32> to vector<8x16x32xf32>
    %125 = arith.mulf %122, %124 : vector<8x16x32xf32>
    %126 = vector.shape_cast %125 : vector<8x16x32xf32> to vector<128x32xf32>
    %c2_84 = arith.constant 2 : index
    %c0_85 = arith.constant 0 : index
    %c0_86 = arith.constant 0 : index
    %127 = vector.load %arg8[%c2_84, %c0_85, %c0_86] : memref<4x32x128xf32, #tpu.memory_space<vmem>>, vector<1x32x128xf32>
    %128 = vector.shape_cast %127 : vector<1x32x128xf32> to vector<32x128xf32>
    %cst_87 = arith.constant dense<0.000000e+00> : vector<128x128xf32>
    %129 = tpu.matmul %126, %128, %cst_87 {dimension_numbers = #tpu.dot_dimension_numbers<[1], [0], [0], [1], [0, 0, 1, 1], [], []>} : vector<128x32xf32>, vector<32x128xf32>, vector<128x128xf32> -> vector<128x128xf32>
    %130 = arith.addf %88, %129 : vector<128x128xf32>
    %c3 = arith.constant 3 : index
    %c0_88 = arith.constant 0 : index
    %c0_89 = arith.constant 0 : index
    %131 = vector.load %arg2[%c3, %c0_88, %c0_89] : memref<4x128x32xf32, #tpu.memory_space<vmem>>, vector<1x128x32xf32>
    %132 = vector.shape_cast %131 : vector<1x128x32xf32> to vector<128x32xf32>
    %cst_90 = arith.constant dense<0.000000e+00> : vector<128x32xf32>
    %133 = tpu.matmul %0, %132, %cst_90 {dimension_numbers = #tpu.dot_dimension_numbers<[1], [0], [0], [1], [0, 0, 1, 1], [], []>} : vector<128x128xf32>, vector<128x32xf32>, vector<128x32xf32> -> vector<128x32xf32>
    %c3_91 = arith.constant 3 : index
    %c0_92 = arith.constant 0 : index
    %c0_93 = arith.constant 0 : index
    %134 = vector.load %arg3[%c3_91, %c0_92, %c0_93] : memref<4x1x32xf32, #tpu.memory_space<vmem>>, vector<1x1x32xf32>
    %135 = vector.shape_cast %134 : vector<1x1x32xf32> to vector<1x32xf32>
    %136 = vector.broadcast %135 : vector<1x32xf32> to vector<128x32xf32>
    %137 = arith.addf %133, %136 : vector<128x32xf32>
    %c3_94 = arith.constant 3 : index
    %c0_95 = arith.constant 0 : index
    %c0_96 = arith.constant 0 : index
    %138 = vector.load %arg4[%c3_94, %c0_95, %c0_96] : memref<4x128x32xf32, #tpu.memory_space<vmem>>, vector<1x128x32xf32>
    %139 = vector.shape_cast %138 : vector<1x128x32xf32> to vector<128x32xf32>
    %cst_97 = arith.constant dense<0.000000e+00> : vector<128x32xf32>
    %140 = tpu.matmul %0, %139, %cst_97 {dimension_numbers = #tpu.dot_dimension_numbers<[1], [0], [0], [1], [0, 0, 1, 1], [], []>} : vector<128x128xf32>, vector<128x32xf32>, vector<128x32xf32> -> vector<128x32xf32>
    %c3_98 = arith.constant 3 : index
    %c0_99 = arith.constant 0 : index
    %c0_100 = arith.constant 0 : index
    %141 = vector.load %arg5[%c3_98, %c0_99, %c0_100] : memref<4x1x32xf32, #tpu.memory_space<vmem>>, vector<1x1x32xf32>
    %142 = vector.shape_cast %141 : vector<1x1x32xf32> to vector<1x32xf32>
    %143 = vector.broadcast %142 : vector<1x32xf32> to vector<128x32xf32>
    %144 = arith.addf %140, %143 : vector<128x32xf32>
    %c3_101 = arith.constant 3 : index
    %c0_102 = arith.constant 0 : index
    %c0_103 = arith.constant 0 : index
    %145 = vector.load %arg6[%c3_101, %c0_102, %c0_103] : memref<4x128x32xf32, #tpu.memory_space<vmem>>, vector<1x128x32xf32>
    %146 = vector.shape_cast %145 : vector<1x128x32xf32> to vector<128x32xf32>
    %cst_104 = arith.constant dense<0.000000e+00> : vector<128x32xf32>
    %147 = tpu.matmul %0, %146, %cst_104 {dimension_numbers = #tpu.dot_dimension_numbers<[1], [0], [0], [1], [0, 0, 1, 1], [], []>} : vector<128x128xf32>, vector<128x32xf32>, vector<128x32xf32> -> vector<128x32xf32>
    %c3_105 = arith.constant 3 : index
    %c0_106 = arith.constant 0 : index
    %c0_107 = arith.constant 0 : index
    %148 = vector.load %arg7[%c3_105, %c0_106, %c0_107] : memref<4x1x32xf32, #tpu.memory_space<vmem>>, vector<1x1x32xf32>
    %149 = vector.shape_cast %148 : vector<1x1x32xf32> to vector<1x32xf32>
    %150 = vector.broadcast %149 : vector<1x32xf32> to vector<128x32xf32>
    %151 = arith.addf %147, %150 : vector<128x32xf32>
    %152 = vector.shape_cast %137 : vector<128x32xf32> to vector<8x16x32xf32>
    %153 = vector.shape_cast %144 : vector<128x32xf32> to vector<8x16x32xf32>
    %154 = vector.shape_cast %151 : vector<128x32xf32> to vector<8x16x32xf32>
    "tpu.trace_start"() <{level = 10 : i32, message = "rqd,rkd->rqk"}> : () -> ()
    %cst_108 = arith.constant dense<0.000000e+00> : vector<8x16x16xf32>
    %155 = tpu.matmul %152, %153, %cst_108 {dimension_numbers = #tpu.dot_dimension_numbers<[2], [2], [1], [1], [0, 0, 0, 1, 1, 1], [0], [0]>} : vector<8x16x32xf32>, vector<8x16x32xf32>, vector<8x16x16xf32> -> vector<8x16x16xf32>
    "tpu.trace_stop"() : () -> ()
    %156 = arith.addf %155, %3 : vector<8x16x16xf32>
    %cst_109 = arith.constant dense<0xFF800000> : vector<8x16xf32>
    %157 = vector.multi_reduction <maximumf>, %156, %cst_109 [2] : vector<8x16x16xf32> to vector<8x16xf32>
    %158 = vector.shape_cast %157 : vector<8x16xf32> to vector<8x16x1xf32>
    %159 = vector.broadcast %158 : vector<8x16x1xf32> to vector<8x16x16xf32>
    %160 = arith.subf %156, %159 : vector<8x16x16xf32>
    %161 = math.exp %160 : vector<8x16x16xf32>
    %cst_110 = arith.constant dense<0.000000e+00> : vector<8x16xf32>
    %162 = vector.multi_reduction <add>, %161, %cst_110 [2] : vector<8x16x16xf32> to vector<8x16xf32>
    %163 = vector.shape_cast %162 : vector<8x16xf32> to vector<8x16x1xf32>
    "tpu.trace_start"() <{level = 10 : i32, message = "rqk,rkd->rqd"}> : () -> ()
    %cst_111 = arith.constant dense<0.000000e+00> : vector<8x16x32xf32>
    %164 = tpu.matmul %161, %154, %cst_111 {dimension_numbers = #tpu.dot_dimension_numbers<[2], [1], [1], [2], [0, 0, 0, 1, 1, 2], [0], [0]>} : vector<8x16x16xf32>, vector<8x16x32xf32>, vector<8x16x32xf32> -> vector<8x16x32xf32>
    "tpu.trace_stop"() : () -> ()
    %165 = tpu.reciprocal %163 {approx = true} : vector<8x16x1xf32> -> vector<8x16x1xf32>
    %166 = vector.broadcast %165 : vector<8x16x1xf32> to vector<8x16x32xf32>
    %167 = arith.mulf %164, %166 : vector<8x16x32xf32>
    %168 = vector.shape_cast %167 : vector<8x16x32xf32> to vector<128x32xf32>
    %c3_112 = arith.constant 3 : index
    %c0_113 = arith.constant 0 : index
    %c0_114 = arith.constant 0 : index
    %169 = vector.load %arg8[%c3_112, %c0_113, %c0_114] : memref<4x32x128xf32, #tpu.memory_space<vmem>>, vector<1x32x128xf32>
    %170 = vector.shape_cast %169 : vector<1x32x128xf32> to vector<32x128xf32>
    %cst_115 = arith.constant dense<0.000000e+00> : vector<128x128xf32>
    %171 = tpu.matmul %168, %170, %cst_115 {dimension_numbers = #tpu.dot_dimension_numbers<[1], [0], [0], [1], [0, 0, 1, 1], [], []>} : vector<128x32xf32>, vector<32x128xf32>, vector<128x128xf32> -> vector<128x128xf32>
    %172 = arith.addf %130, %171 : vector<128x128xf32>
    %c0_116 = arith.constant 0 : index
    %c0_117 = arith.constant 0 : index
    %173 = vector.load %arg9[%c0_116, %c0_117] : memref<1x128xf32, #tpu.memory_space<vmem>>, vector<1x128xf32>
    %174 = vector.broadcast %173 : vector<1x128xf32> to vector<128x128xf32>
    %175 = arith.addf %172, %174 : vector<128x128xf32>
    %c0_118 = arith.constant 0 : index
    %c0_119 = arith.constant 0 : index
    %176 = vector.load %arg11[%c0_118, %c0_119] : memref<128x128xf32, #tpu.memory_space<vmem>>, vector<128x128xf32>
    tpu.vector_store %arg11[%c0_118, %c0_119], %175 {strides = array<i32>} : memref<128x128xf32, #tpu.memory_space<vmem>>, vector<128x128xf32>,
    return
  }
  func.func @transform_0(%arg0: i32) -> (i32, i32) {
    %c0_i32 = arith.constant 0 : i32
    %c0_i32_0 = arith.constant 0 : i32
    return %arg0, %c0_i32 : i32, i32
  }
  func.func @transform_1(%arg0: i32) -> (i32, i32, i32) {
    %c0_i32 = arith.constant 0 : i32
    %c0_i32_0 = arith.constant 0 : i32
    %c0_i32_1 = arith.constant 0 : i32
    %c0_i32_2 = arith.constant 0 : i32
    return %c0_i32, %c0_i32_0, %c0_i32_1 : i32, i32, i32
  }
  func.func @transform_2(%arg0: i32) -> (i32, i32, i32) {
    %c0_i32 = arith.constant 0 : i32
    %c0_i32_0 = arith.constant 0 : i32
    %c0_i32_1 = arith.constant 0 : i32
    %c0_i32_2 = arith.constant 0 : i32
    return %c0_i32, %c0_i32_0, %c0_i32_1 : i32, i32, i32
  }
  func.func @transform_3(%arg0: i32) -> (i32, i32, i32) {
    %c0_i32 = arith.constant 0 : i32
    %c0_i32_0 = arith.constant 0 : i32
    %c0_i32_1 = arith.constant 0 : i32
    %c0_i32_2 = arith.constant 0 : i32
    return %c0_i32, %c0_i32_0, %c0_i32_1 : i32, i32, i32
  }
  func.func @transform_4(%arg0: i32) -> (i32, i32, i32) {
    %c0_i32 = arith.constant 0 : i32
    %c0_i32_0 = arith.constant 0 : i32
    %c0_i32_1 = arith.constant 0 : i32
    %c0_i32_2 = arith.constant 0 : i32
    return %c0_i32, %c0_i32_0, %c0_i32_1 : i32, i32, i32
  }
  func.func @transform_5(%arg0: i32) -> (i32, i32, i32) {
    %c0_i32 = arith.constant 0 : i32
    %c0_i32_0 = arith.constant 0 : i32
    %c0_i32_1 = arith.constant 0 : i32
    %c0_i32_2 = arith.constant 0 : i32
    return %c0_i32, %c0_i32_0, %c0_i32_1 : i32, i32, i32
  }
  func.func @transform_6(%arg0: i32) -> (i32, i32, i32) {
    %c0_i32 = arith.constant 0 : i32
    %c0_i32_0 = arith.constant 0 : i32
    %c0_i32_1 = arith.constant 0 : i32
    %c0_i32_2 = arith.constant 0 : i32
    return %c0_i32, %c0_i32_0, %c0_i32_1 : i32, i32, i32
  }
  func.func @transform_7(%arg0: i32) -> (i32, i32, i32) {
    %c0_i32 = arith.constant 0 : i32
    %c0_i32_0 = arith.constant 0 : i32
    %c0_i32_1 = arith.constant 0 : i32
    %c0_i32_2 = arith.constant 0 : i32
    return %c0_i32, %c0_i32_0, %c0_i32_1 : i32, i32, i32
  }
  func.func @transform_8(%arg0: i32) -> (i32, i32) {
    %c0_i32 = arith.constant 0 : i32
    %c0_i32_0 = arith.constant 0 : i32
    %c0_i32_1 = arith.constant 0 : i32
    return %c0_i32, %c0_i32_0 : i32, i32
  }
  func.func @transform_9(%arg0: i32) -> (i32, i32) {
    %c0_i32 = arith.constant 0 : i32
    %c0_i32_0 = arith.constant 0 : i32
    %c0_i32_1 = arith.constant 0 : i32
    return %c0_i32, %c0_i32_0 : i32, i32
  }
  func.func @transform_10(%arg0: i32) -> (i32, i32) {
    %c0_i32 = arith.constant 0 : i32
    %c0_i32_0 = arith.constant 0 : i32
    return %arg0, %c0_i32 : i32, i32
  }
}

</mosaic_0001>

<bundles_post_ra>
// kernel: tpu_custom_call.1
= control target key start
LH: loop header
LB: loop body
LE: loop exit
PB: predicated region body
PF: predicated region fallthrough
CT: control target
= control target key end

     0   :  { %15 = vsyncpa [#allocation3], 0  ;;  %s15458_s0 = inlined_call_operand.vmem [shape: f32[256,128], index: 0, kind: input, shape index: {}]   ;;  %s15459_s1 = inlined_call_operand.vmem [shape: f32[4,128,32], index: 1, kind: input, shape index: {}]   ;;  %s15460_s2 = inlined_call_operand.vmem [shape: f32[4,1,32], index: 2, kind: input, shape index: {}]   ;;  %s15461_s3 = inlined_call_operand.vmem [shape: f32[4,128,32], index: 3, kind: input, shape index: {}]   ;;  %s15462_s4 = inlined_call_operand.vmem [shape: f32[4,1,32], index: 4, kind: input, shape index: {}]   ;;  %s15463_s5 = inlined_call_operand.vmem [shape: f32[4,128,32], index: 5, kind: input, shape index: {}]   ;;  %s15464_s6 = inlined_call_operand.vmem [shape: f32[4,1,32], index: 6, kind: input, shape index: {}]   ;;  %s15465_s7 = inlined_call_operand.vmem [shape: f32[4,32,128], index: 7, kind: input, shape index: {}]   ;;  %s15466_s8 = inlined_call_operand.vmem [shape: f32[1,128], index: 8, kind: input, shape index: {}]   ;;  %s15467_s9 = inlined_call_operand.vmem [shape: f32[16,16], index: 9, kind: input, shape index: {}]   ;;  %s15468_s10 = inlined_call_operand.hbm [shape: f32[256,128], index: 10, kind: output, shape index: {}]  }
   0x1   :  { %17 = vsyncpa [#allocation3 + $0x1], 0  ;;  %s13105_s13 = smov 0   ;;  %s13107_s14 = smov 0  }
   0x2   :  { %s13109_s15 = smov 0   ;;  %s13111_s16 = smov 0  }
   0x3 LB: > { %s13126_s17 = sadd.s32 4294967295, %s13045_s16   ;;  %s9433_s18 = sadd.s32 4294967294, %s13045_s16   ;;  %s13045_s16 = sphi %s13111_s16, %s15488_s16   ;;  %s13041_s15 = sphi %s13109_s15, %s15487_s15   ;;  %s13037_s14 = sphi %s13107_s14, %s15486_s14   ;;  %s13033_s13 = sphi %s13105_s13, %s15485_s13  }
   0x4   : > { %s13130_s19 = sadd.s32 1, %s13045_s16   ;;  %s245_s20 = sadd.s32 1, %s13041_s15 }
   0x5   : > { %s242_s21 = ssub.s32 %s13045_s16, %s13130_s19  ;;  %p255_p0 = scmp.ne.s32.totalorder %s13041_s15, %s13037_s14 }
   0x6   : > { %p243_p1 = scmp.eq.s32.totalorder %s242_s21, 0  ;;  %p256_p2 = scmp.eq.s32.totalorder %s13126_s17, 1 }
   0x7   : > { %p261_p3 = scmp.ne.s32.totalorder %s13037_s14, %s13033_s13  ;;  %p262_p4 = scmp.eq.s32.totalorder %s9433_s18, 1 }
   0x8   : > { %s13141_s22 = scalar_select %p243_p1, %s13041_s15, %s245_s20  }
   0x9   : > { %p13143_p5 = por %p256_p2, %p255_p0  ;;  %p13147_p6 = por %p262_p4, %p261_p3 }
   0xa   : > { %p9436_p7 = scmp.ge.s32.totalorder %s13045_s16, 1  ;;  %p316_p8 = scmp.lt.s32.totalorder %s13045_s16, 3 }
   0xc   : > { %p317_p9 = pnand %p9436_p7, %p316_p8 }
   0xe   : > { %320 = sbr.rel (%p317_p9) target bundleno = 3555 (0xde3), region = 60 }
  0x15   : > { %v547_v0 = vld [vmem:[%s15461_s3] sm:$0xff]  ;;  %v548_v1 = vld [vmem:[%s15461_s3 + $0x8] sm:$0xff]  ;;  %v549_v2 = vld [vmem:[%s15461_s3 + $0x10] sm:$0xff]  ;;  %s9438_s11 = sshll.u32 %s13126_s17, 4  ;;  %vm883_vm0 = vcmask 261120   ;;  %vm1580_vm2 = vcmask 130048  }
  0x16   : > { %v11880_v3 = vpack.c.bf16 %v548_v1, %v547_v0  ;;  %v550_v4 = vld [vmem:[%s15461_s3 + $0x18] sm:$0xff]  ;;  %v551_v5 = vld [vmem:[%s15461_s3 + $0x20] sm:$0xff]  ;;  %p355_p10 = scmp.lt.s32.totalorder %s9438_s11, 31  ;;  %v552_v7 = vld [vmem:[%s15461_s3 + $0x28] sm:$0xff]  ;;  %s351_s18 = sand.u32 1, %s13037_s14  }
  0x17   : > { %v11884_v6 = vpack.c.bf16 %v550_v4, %v549_v2  ;;  %v379_v8 = vld [vmem:[%s15459_s1] sm:$0xff]  ;;  %v380_v9 = vld [vmem:[%s15459_s1 + $0x8] sm:$0xff]  ;;  %v381_v11 = vld [vmem:[%s15459_s1 + $0x10] sm:$0xff]  ;;  %v11888_v15 = vpack.c.bf16 %v552_v7, %v551_v5  ;;  %s9879_s27 = sshll.u32 %s13126_s17, 11  ;;  %s15417_s17 = scalar_lea.sflag [#allocation3], %s351_s18 }
  0x18   : > { %11881 = vmatprep.subr.bf16.mxu1 %v11880_v3  ;;  %v11848_v10 = vpack.c.bf16 %v380_v9, %v379_v8  ;;  %v382_v12 = vld [vmem:[%s15459_s1 + $0x18] sm:$0xff]  ;;  %s15490_s11 = smov (!%p355_p10, %s9438_s11), 31  ;;  %v383_v14 = vld [vmem:[%s15459_s1 + $0x20] sm:$0xff]  ;;  %v384_v16 = vld [vmem:[%s15459_s1 + $0x28] sm:$0xff]  ;;  %s15408_s12 = scalar_lea.hbm %s15468_s10, %s9879_s27 }
  0x19   : > { %11883 = vmatpush3.bf16.msra.mxu1 %v11880_v3  ;;  %v11852_v13 = vpack.c.bf16 %v382_v12, %v381_v11  ;;  %s9439_s29 = sshll.u32 %s15490_s11, 3  ;;  %v553_v17 = vld [vmem:[%s15461_s3 + $0x30] sm:$0xff]  ;;  %v554_v18 = vld [vmem:[%s15461_s3 + $0x38] sm:$0xff]  ;;  %v11856_v19 = vpack.c.bf16 %v384_v16, %v383_v14  ;;  %v555_v24 = vld [vmem:[%s15461_s3 + $0x40] sm:$0xff] }
  0x1a   : > { %11885 = vmatprep.subr.bf16.mxu1 %v11884_v6  ;;  %11849 = vmatprep.subr.bf16.mxu0 %v11848_v10  ;;  %s13199_s26 = scalar_lea.vmem %s15458_s0, %s9439_s29  ;;  %v385_v20 = vld [vmem:[%s15459_s1 + $0x30] sm:$0xff]  ;;  %v386_v21 = vld [vmem:[%s15459_s1 + $0x38] sm:$0xff]  ;;  %v11892_v22 = vpack.c.bf16 %v554_v18, %v553_v17  ;;  %v556_v25 = vld [vmem:[%s15461_s3 + $0x48] sm:$0xff] }
  0x1b   : > { %11851 = vmatpush3.bf16.msra.mxu0 %v11848_v10  ;;  %v13208_v23 = vld [vmem:[%s13199_s26] sm:$0xff]  ;;  %v11860_v26 = vpack.c.bf16 %v386_v21, %v385_v20  ;;  %v388_v28 = vld [vmem:[%s15459_s1 + $0x48] sm:$0xff]  ;;  %v11896_v29 = vpack.c.bf16 %v556_v25, %v555_v24  ;;  %v557_v30 = vld [vmem:[%s15461_s3 + $0x50] sm:$0xff] }
  0x1c   : > { %11853 = vmatprep.subr.bf16.mxu0 %v11852_v13  ;;  %10688 = vmatprep.mubr.f32.mxu1 %v13208_v23  ;;  %v387_v27 = vld [vmem:[%s15459_s1 + $0x40] sm:$0xff]  ;;  %v558_v31 = vld [vmem:[%s15461_s3 + $0x58] sm:$0xff]  ;;  %v389_v33 = vld [vmem:[%s15459_s1 + $0x50] sm:$0xff] }
  0x1d   : > { %11887 = vmatpush3.bf16.msra.mxu1 %v11884_v6  ;;  %10632 = vmatprep.mubr.f32.mxu0 %v13208_v23  ;;  %v11864_v32 = vpack.c.bf16 %v388_v28, %v387_v27  ;;  %v390_v34 = vld [vmem:[%s15459_s1 + $0x58] sm:$0xff]  ;;  %v11900_v35 = vpack.c.bf16 %v558_v31, %v557_v30  ;;  %v559_v36 = vld [vmem:[%s15461_s3 + $0x60] sm:$0xff]  ;;  %v560_v37 = vld [vmem:[%s15461_s3 + $0x68] sm:$0xff] }
  0x1e   : > { %11889 = vmatprep.subr.bf16.mxu1 %v11888_v15  ;;  %v11868_v38 = vpack.c.bf16 %v390_v34, %v389_v33  ;;  %v391_v39 = vld [vmem:[%s15459_s1 + $0x60] sm:$0xff]  ;;  %v392_v40 = vld [vmem:[%s15459_s1 + $0x68] sm:$0xff]  ;;  %v11904_v41 = vpack.c.bf16 %v560_v37, %v559_v36  ;;  %v561_v42 = vld [vmem:[%s15461_s3 + $0x70] sm:$0xff] }
  0x1f   : > { %11855 = vmatpush3.bf16.msra.mxu0 %v11852_v13  ;;  %v562_v43 = vld [vmem:[%s15461_s3 + $0x78] sm:$0xff]  ;;  %v11872_v44 = vpack.c.bf16 %v392_v40, %v391_v39  ;;  %v393_v45 = vld [vmem:[%s15459_s1 + $0x70] sm:$0xff]  ;;  %v715_v49 = vld [vmem:[%s15463_s5] sm:$0xff] }
  0x20   : > { %11857 = vmatprep.subr.bf16.mxu0 %v11856_v19  ;;  %v394_v46 = vld [vmem:[%s15459_s1 + $0x78] sm:$0xff]  ;;  %v11908_v47 = vpack.c.bf16 %v562_v43, %v561_v42  ;;  %v716_v50 = vld [vmem:[%s15463_s5 + $0x8] sm:$0xff]  ;;  %v717_v53 = vld [vmem:[%s15463_s5 + $0x10] sm:$0xff] }
  0x21   : > { %11891 = vmatpush3.bf16.msra.mxu1 %v11888_v15  ;;  %v11876_v48 = vpack.c.bf16 %v394_v46, %v393_v45  ;;  %v11912_v51 = vpack.c.bf16 %v716_v50, %v715_v49  ;;  %v13267_v52 = vld [vmem:[%s13199_s26 + $0x8] sm:$0xff]  ;;  %v718_v54 = vld [vmem:[%s15463_s5 + $0x18] sm:$0xff]  ;;  %v13276_v55 = vld [vmem:[%s13199_s26 + $0x10] sm:$0xff] }
  0x22   : > { %11893 = vmatprep.subr.bf16.mxu1 %v11892_v22  ;;  %v11916_v56 = vpack.c.bf16 %v718_v54, %v717_v53  ;;  %v13281_v57 = vld [vmem:[%s13199_s26 + $0x18] sm:$0xff]  ;;  %v719_v58 = vld [vmem:[%s15463_s5 + $0x20] sm:$0xff]  ;;  %v720_v59 = vld [vmem:[%s15463_s5 + $0x28] sm:$0xff] }
  0x23   : > { %11859 = vmatpush3.bf16.msra.mxu0 %v11856_v19  ;;  %v13291_v60 = vld [vmem:[%s13199_s26 + $0x20] sm:$0xff]  ;;  %v11920_v61 = vpack.c.bf16 %v720_v59, %v719_v58  ;;  %v13297_v62 = vld [vmem:[%s13199_s26 + $0x28] sm:$0xff]  ;;  %v721_v63 = vld [vmem:[%s15463_s5 + $0x30] sm:$0xff] }
  0x24   : > { %11861 = vmatprep.subr.bf16.mxu0 %v11860_v26  ;;  %v722_v0 = vld [vmem:[%s15463_s5 + $0x38] sm:$0xff]  ;;  %v13307_v1 = vld [vmem:[%s13199_s26 + $0x30] sm:$0xff]  ;;  %v723_v4 = vld [vmem:[%s15463_s5 + $0x40] sm:$0xff] }
  0x25   : > { %11895 = vmatpush3.bf16.msra.mxu1 %v11892_v22  ;;  %v11924_v2 = vpack.c.bf16 %v722_v0, %v721_v63  ;;  %v13313_v3 = vld [vmem:[%s13199_s26 + $0x38] sm:$0xff]  ;;  %v724_v5 = vld [vmem:[%s15463_s5 + $0x48] sm:$0xff]  ;;  %v13322_v6 = vld [vmem:[%s13199_s26 + $0x40] sm:$0xff] }
  0x26   : > { %11897 = vmatprep.subr.bf16.mxu1 %v11896_v29  ;;  %v11928_v7 = vpack.c.bf16 %v724_v5, %v723_v4  ;;  %v13329_v8 = vld [vmem:[%s13199_s26 + $0x48] sm:$0xff]  ;;  %v725_v9 = vld [vmem:[%s15463_s5 + $0x50] sm:$0xff]  ;;  %v726_v10 = vld [vmem:[%s15463_s5 + $0x58] sm:$0xff] }
  0x27   : > { %11863 = vmatpush3.bf16.msra.mxu0 %v11860_v26  ;;  %v13338_v11 = vld [vmem:[%s13199_s26 + $0x50] sm:$0xff]  ;;  %v11932_v12 = vpack.c.bf16 %v726_v10, %v725_v9  ;;  %v13345_v13 = vld [vmem:[%s13199_s26 + $0x58] sm:$0xff]  ;;  %v727_v14 = vld [vmem:[%s15463_s5 + $0x60] sm:$0xff] }
  0x28   : > { %11865 = vmatprep.subr.bf16.mxu0 %v11864_v32  ;;  %v728_v15 = vld [vmem:[%s15463_s5 + $0x68] sm:$0xff]  ;;  %v13354_v16 = vld [vmem:[%s13199_s26 + $0x60] sm:$0xff]  ;;  %v13365_v19 = vld [vmem:[%s13199_s26 + $0x70] sm:$0xff] }
  0x29   : > { %11899 = vmatpush3.bf16.msra.mxu1 %v11896_v29  ;;  %v11936_v17 = vpack.c.bf16 %v728_v15, %v727_v14  ;;  %v13361_v18 = vld [vmem:[%s13199_s26 + $0x68] sm:$0xff]  ;;  %v13371_v20 = vld [vmem:[%s13199_s26 + $0x78] sm:$0xff]  ;;  %v729_v21 = vld [vmem:[%s15463_s5 + $0x70] sm:$0xff] }
  0x2a   : > { %11901 = vmatprep.subr.bf16.mxu1 %v11900_v35  ;;  %v730_v22 = vld [vmem:[%s15463_s5 + $0x78] sm:$0xff]  ;;  %v13402_v25 = vld [vmem:[%s15462_s4] ss:$0 sm:$0xff]  ;;  %vm13413_vm1 = vmpackc.low %vm883_vm0, %vm883_vm0 }
  0x2b   : > { %11867 = vmatpush3.bf16.msra.mxu0 %v11864_v32  ;;  %v11940_v24 = vpack.c.bf16 %v730_v22, %v729_v21  ;;  %v13408_v29 = vld [vmem:[%s15460_s2] ss:$0 sm:$0xff]  ;;  %v15473_v32 = vmov 0 }
  0x2c   : > { %11869 = vmatprep.subr.bf16.mxu0 %v11868_v38  ;;  %v15474_v32 = vsel %vm13413_vm1, 4294967295, %v15473_v32 }
  0x2d   : > { %11903 = vmatpush3.bf16.msra.mxu1 %v11900_v35  ;;  %15475 = vst [vmem:[#allocation5_spill] sm:$0xff] %v15474_v32 }
  0x2e   : > { %11905 = vmatprep.subr.bf16.mxu1 %v11904_v41 }
  0x2f   : > { %11871 = vmatpush3.bf16.msra.mxu0 %v11868_v38 }
  0x30   : > { %11873 = vmatprep.subr.bf16.mxu0 %v11872_v44 }
  0x31   : > { %11907 = vmatpush3.bf16.msra.mxu1 %v11904_v41 }
  0x32   : > { %11909 = vmatprep.subr.bf16.mxu1 %v11908_v47 }
  0x33   : > { %11875 = vmatpush3.bf16.msra.mxu0 %v11872_v44 }
  0x34   : > { %11877 = vmatprep.subr.bf16.mxu0 %v11876_v48 }
  0x35   : > { %11911 = vmatpush3.bf16.msra.mxu1 %v11908_v47 }
  0x37   : > { %11879 = vmatpush3.bf16.msra.mxu0 %v11876_v48 }
  0x38   : > { %10689 = vmatmul.mubr.f32.vlgmr.msra.gmra.mrb[0].mxu1 %v13267_v52  ;;  %11913 = vmatprep.subr.bf16.mxu0 %v11912_v51 }
  0x39   : > { %10691 = vmatprep.mubr.f32.mxu1 %v13276_v55 }
  0x3a   : > { %10633 = vmatmul.mubr.f32.vlgmr.msra.gmra.mrb[0].mxu0 %v13267_v52 }
  0x3b   : > { %10635 = vmatprep.mubr.f32.mxu0 %v13276_v55  ;;  %11915 = vmatpush3.bf16.msra.mxu0 %v11912_v51 }
  0x3c   : > { %10692 = vmatmul.mubr.f32.gmra.mrb[2].mxu1 %v13281_v57  ;;  %11917 = vmatprep.subr.bf16.mxu0 %v11916_v56 }
  0x3d   : > { %10694 = vmatprep.mubr.f32.mxu1 %v13291_v60 }
  0x3e   : > { %10636 = vmatmul.mubr.f32.gmra.mrb[2].mxu0 %v13281_v57 }
  0x3f   : > { %10638 = vmatprep.mubr.f32.mxu0 %v13291_v60  ;;  %11919 = vmatpush3.bf16.msra.mxu0 %v11916_v56 }
  0x40   : > { %10695 = vmatmul.mubr.f32.gmra.mrb[4].mxu1 %v13297_v62  ;;  %11921 = vmatprep.subr.bf16.mxu0 %v11920_v61 }
  0x41   : > { %10697 = vmatprep.mubr.f32.mxu1 %v13307_v1 }
  0x42   : > { %10639 = vmatmul.mubr.f32.gmra.mrb[4].mxu0 %v13297_v62 }
  0x43   : > { %10641 = vmatprep.mubr.f32.mxu0 %v13307_v1  ;;  %11923 = vmatpush3.bf16.msra.mxu0 %v11920_v61 }
  0x44   : > { %10698 = vmatmul.mubr.f32.gmra.mrb[6].mxu1 %v13313_v3  ;;  %11925 = vmatprep.subr.bf16.mxu0 %v11924_v2 }
  0x45   : > { %10700 = vmatprep.mubr.f32.mxu1 %v13322_v6 }
  0x46   : > { %10642 = vmatmul.mubr.f32.gmra.mrb[6].mxu0 %v13313_v3 }
  0x47   : > { %10644 = vmatprep.mubr.f32.mxu0 %v13322_v6  ;;  %11927 = vmatpush3.bf16.msra.mxu0 %v11924_v2 }
  0x48   : > { %10701 = vmatmul.mubr.f32.gmra.mrb[8].mxu1 %v13329_v8  ;;  %11929 = vmatprep.subr.bf16.mxu0 %v11928_v7 }
  0x49   : > { %10703 = vmatprep.mubr.f32.mxu1 %v13338_v11 }
  0x4a   : > { %10645 = vmatmul.mubr.f32.gmra.mrb[8].mxu0 %v13329_v8 }
  0x4b   : > { %10647 = vmatprep.mubr.f32.mxu0 %v13338_v11  ;;  %11931 = vmatpush3.bf16.msra.mxu0 %v11928_v7 }
  0x4c   : > { %10704 = vmatmul.mubr.f32.gmra.mrb[10].mxu1 %v13345_v13  ;;  %11933 = vmatprep.subr.bf16.mxu0 %v11932_v12 }
  0x4d   : > { %10706 = vmatprep.mubr.f32.mxu1 %v13354_v16 }
  0x4e   : > { %10648 = vmatmul.mubr.f32.gmra.mrb[10].mxu0 %v13345_v13 }
  0x4f   : > { %10650 = vmatprep.mubr.f32.mxu0 %v13354_v16  ;;  %11935 = vmatpush3.bf16.msra.mxu0 %v11932_v12 }
  0x50   : > { %10707 = vmatmul.mubr.f32.gmra.mrb[12].mxu1 %v13361_v18  ;;  %11937 = vmatprep.subr.bf16.mxu0 %v11936_v17 }
  0x51   : > { %10709 = vmatprep.mubr.f32.mxu1 %v13365_v19 }
  0x52   : > { %10651 = vmatmul.mubr.f32.gmra.mrb[12].mxu0 %v13361_v18 }
  0x53   : > { %10653 = vmatprep.mubr.f32.mxu0 %v13365_v19  ;;  %11939 = vmatpush3.bf16.msra.mxu0 %v11936_v17 }
  0x54   : > { %10710 = vmatmul.mubr.f32.gmra.mrb[14].mxu1 %v13371_v20  ;;  %11941 = vmatprep.subr.bf16.mxu0 %v11940_v24 }
  0x56   : > { %10654 = vmatmul.mubr.f32.gmra.mrb[14].mxu0 %v13371_v20 }
  0x57   : > { %10744 = vmatprep.mubr.f32.mxu0 %v13208_v23  ;;  %11943 = vmatpush3.bf16.msra.mxu0 %v11940_v24 }
  0x5a   : > { %10745 = vmatmul.mubr.f32.vlgmr.msra.gmra.mrb[16].mxu0 %v13267_v52 }
  0x5b   : > { %10747 = vmatprep.mubr.f32.mxu0 %v13276_v55 }
  0x5e   : > { %10748 = vmatmul.mubr.f32.gmra.mrb[18].mxu0 %v13281_v57 }
  0x5f   : > { %10750 = vmatprep.mubr.f32.mxu0 %v13291_v60 }
  0x62   : > { %10751 = vmatmul.mubr.f32.gmra.mrb[20].mxu0 %v13297_v62 }
  0x63   : > { %10753 = vmatprep.mubr.f32.mxu0 %v13307_v1 }
  0x66   : > { %10754 = vmatmul.mubr.f32.gmra.mrb[22].mxu0 %v13313_v3 }
  0x67   : > { %10756 = vmatprep.mubr.f32.mxu0 %v13322_v6 }
  0x6a   : > { %10757 = vmatmul.mubr.f32.gmra.mrb[24].mxu0 %v13329_v8 }
  0x6b   : > { %10759 = vmatprep.mubr.f32.mxu0 %v13338_v11 }
  0x6e   : > { %10760 = vmatmul.mubr.f32.gmra.mrb[26].mxu0 %v13345_v13 }
  0x6f   : > { %10762 = vmatprep.mubr.f32.mxu0 %v13354_v16 }
  0x72   : > { %10763 = vmatmul.mubr.f32.gmra.mrb[28].mxu0 %v13361_v18 }
  0x73   : > { %10765 = vmatprep.mubr.f32.mxu0 %v13365_v19 }
  0x76   : > { %10766 = vmatmul.mubr.f32.gmra.mrb[30].mxu0 %v13371_v20 }
 0x10b   : > { %v10690_v26 = vpop.f32.mrb[0].mxu1 }
 0x10c   : > { %v642_v27 = vadd.f32 %v10690_v26, %v13402_v25  ;;  %v636_v28 = vpop.f32.mrb[1].mxu1 }
 0x10d   : > { %v637_v30 = vadd.f32 %v13402_v25, %v636_v28  ;;  %v10634_v31 = vpop.f32.mrb[0].mxu0 }
 0x10e   : > { %v468_v33 = vpop.f32.mrb[1].mxu0  ;;  %v474_v46 = vadd.f32 %v10634_v31, %v13408_v29 }
 0x10f   : > { %v11944_v34 = vpack.c.bf16 %v642_v27, %v637_v30  ;;  %v10693_v35 = vpop.f32.mrb[2].mxu1  ;;  %v469_v36 = vadd.f32 %v13408_v29, %v468_v33 }
 0x110   : > { %v652_v37 = vadd.f32 %v10693_v35, %v13402_v25  ;;  %v646_v38 = vpop.f32.mrb[3].mxu1 }
 0x111   : > { %11946 = vmatprep.subr.msk.bf16.mxu1 %vm13413_vm1, %v11944_v34  ;;  %v647_v39 = vadd.f32 %v13402_v25, %v646_v38  ;;  %10772 = vmatprep.mubr.msk.f32.mxu1 %vm883_vm0, %v469_v36  ;;  %v10637_v40 = vpop.f32.mrb[2].mxu0 }
 0x112   : > { %11949 = vmatpush3.bf16.xpose.msk.msra.mxu1 %vm13413_vm1, %v11944_v34  ;;  %v478_v41 = vpop.f32.mrb[3].mxu0  ;;  %v484_v5 = vadd.f32 %v10637_v40, %v13408_v29 }
 0x113   : > { %v11950_v42 = vpack.c.bf16 %v652_v37, %v647_v39  ;;  %v10696_v43 = vpop.f32.mrb[4].mxu1  ;;  %v479_v49 = vadd.f32 %v13408_v29, %v478_v41 }
 0x114   : > { %v662_v44 = vadd.f32 %v10696_v43, %v13402_v25  ;;  %v656_v45 = vpop.f32.mrb[5].mxu1 }
 0x115   : > { %11952 = vmatprep.subr.msk.bf16.mxu1 %vm13413_vm1, %v11950_v42  ;;  %v657_v47 = vadd.f32 %v13402_v25, %v656_v45  ;;  %v10640_v48 = vpop.f32.mrb[4].mxu0 }
 0x116   : > { %v488_v50 = vpop.f32.mrb[5].mxu0  ;;  %v494_v34 = vadd.f32 %v10640_v48, %v13408_v29 }
 0x117   : > { %v11956_v51 = vpack.c.bf16 %v662_v44, %v657_v47  ;;  %v10699_v53 = vpop.f32.mrb[6].mxu1  ;;  %v489_v10 = vadd.f32 %v13408_v29, %v488_v50 }
 0x118   : > { %v672_v54 = vadd.f32 %v10699_v53, %v13402_v25  ;;  %v666_v56 = vpop.f32.mrb[7].mxu1 }
 0x119   : > { %10773 = vmatmul.mubr.msk.f32.vlgmr.msra.gmra.mrb[16].mxu1 %vm883_vm0, %v474_v46  ;;  %v667_v58 = vadd.f32 %v13402_v25, %v666_v56  ;;  %v10643_v59 = vpop.f32.mrb[6].mxu0 }
 0x11a   : > { %11955 = vmatpush3.bf16.xpose.msk.msra.mxu1 %vm13413_vm1, %v11950_v42  ;;  %10779 = vmatprep.mubr.msk.f32.mxu1 %vm883_vm0, %v479_v49  ;;  %v498_v61 = vpop.f32.mrb[7].mxu0  ;;  %v504_v49 = vadd.f32 %v10643_v59, %v13408_v29 }
 0x11b   : > { %11958 = vmatprep.subr.msk.bf16.mxu1 %vm13413_vm1, %v11956_v51  ;;  %v11962_v63 = vpack.c.bf16 %v672_v54, %v667_v58  ;;  %v10702_v0 = vpop.f32.mrb[8].mxu1  ;;  %v499_v37 = vadd.f32 %v13408_v29, %v498_v61  ;;  %v9442_v58 = vld [vmem:[%s15464_s6] ss:$0 sm:$0xff] }
 0x11c   : > { %v682_v2 = vadd.f32 %v10702_v0, %v13402_v25  ;;  %v676_v4 = vpop.f32.mrb[9].mxu1 }
 0x11d   : > { %v677_v7 = vadd.f32 %v13402_v25, %v676_v4  ;;  %v10646_v9 = vpop.f32.mrb[8].mxu0 }
 0x11e   : > { %v508_v12 = vpop.f32.mrb[9].mxu0  ;;  %v514_v39 = vadd.f32 %v10646_v9, %v13408_v29 }
 0x11f   : > { %v11968_v14 = vpack.c.bf16 %v682_v2, %v677_v7  ;;  %v10705_v15 = vpop.f32.mrb[10].mxu1  ;;  %v509_v22 = vadd.f32 %v13408_v29, %v508_v12 }
 0x120   : > { %v692_v17 = vadd.f32 %v10705_v15, %v13402_v25  ;;  %v686_v21 = vpop.f32.mrb[11].mxu1 }
 0x121   : > { %10780 = vmatmul.mubr.msk.f32.vlgmr.msra.gmra.mrb[18].mxu1 %vm883_vm0, %v484_v5  ;;  %11970 = vmatprep.subr.msk.bf16.mxu0 %vm13413_vm1, %v11968_v14  ;;  %v687_v24 = vadd.f32 %v13402_v25, %v686_v21  ;;  %v10649_v26 = vpop.f32.mrb[10].mxu0 }
 0x122   : > { %11961 = vmatpush3.bf16.xpose.msk.msra.mxu1 %vm13413_vm1, %v11956_v51  ;;  %10786 = vmatprep.mubr.msk.f32.mxu1 %vm883_vm0, %v489_v10  ;;  %v518_v27 = vpop.f32.mrb[11].mxu0  ;;  %v524_v53 = vadd.f32 %v10649_v26, %v13408_v29 }
 0x123   : > { %11964 = vmatprep.subr.msk.bf16.mxu1 %vm13413_vm1, %v11962_v63  ;;  %v11974_v28 = vpack.c.bf16 %v692_v17, %v687_v24  ;;  %11973 = vmatpush3.bf16.xpose.msk.msra.mxu0 %vm13413_vm1, %v11968_v14  ;;  %v10708_v30 = vpop.f32.mrb[12].mxu1 }
 0x124   : > { %v702_v31 = vadd.f32 %v10708_v30, %v13402_v25  ;;  %v696_v33 = vpop.f32.mrb[13].mxu1  ;;  %10800 = vmatprep.mubr.msk.f32.mxu0 %vm883_vm0, %v509_v22 }
 0x125   : > { %v697_v35 = vadd.f32 %v13402_v25, %v696_v33  ;;  %v10652_v36 = vpop.f32.mrb[12].mxu0 }
 0x126   : > { %v528_v38 = vpop.f32.mrb[13].mxu0  ;;  %v534_v50 = vadd.f32 %v10652_v36, %v13408_v29 }
 0x127   : > { %v11980_v40 = vpack.c.bf16 %v702_v31, %v697_v35  ;;  %v10711_v41 = vpop.f32.mrb[14].mxu1  ;;  %v529_v44 = vadd.f32 %v13408_v29, %v528_v38 }
 0x128   : > { %v712_v42 = vadd.f32 %v10711_v41, %v13402_v25  ;;  %v706_v43 = vpop.f32.mrb[15].mxu1 }
 0x129   : > { %10787 = vmatmul.mubr.msk.f32.vlgmr.msra.gmra.mrb[20].mxu1 %vm883_vm0, %v494_v34  ;;  %11982 = vmatprep.subr.msk.bf16.mxu0 %vm13413_vm1, %v11980_v40  ;;  %v707_v45 = vadd.f32 %v13402_v25, %v706_v43  ;;  %v10655_v46 = vpop.f32.mrb[14].mxu0  ;;  %v519_v25 = vadd.f32 %v13408_v29, %v518_v27 }
 0x12a   : > { %11967 = vmatpush3.bf16.xpose.msk.msra.mxu1 %vm13413_vm1, %v11962_v63  ;;  %10793 = vmatprep.mubr.msk.f32.mxu1 %vm883_vm0, %v499_v37  ;;  %v538_v47 = vpop.f32.mrb[15].mxu0  ;;  %v544_v54 = vadd.f32 %v10655_v46, %v13408_v29 }
 0x12b   : > { %11976 = vmatprep.subr.msk.bf16.mxu1 %vm13413_vm1, %v11974_v28  ;;  %10801 = vmatmul.mubr.msk.f32.vlgmr.msra.gmra.mrb[32].mxu0 %vm883_vm0, %v514_v39  ;;  %v11986_v48 = vpack.c.bf16 %v712_v42, %v707_v45  ;;  %v539_v51 = vadd.f32 %v13408_v29, %v538_v47 }
 0x12c   : > { %11985 = vmatpush3.bf16.xpose.msk.msra.mxu0 %vm13413_vm1, %v11980_v40  ;;  %10814 = vmatprep.mubr.msk.f32.mxu0 %vm883_vm0, %v529_v44 }
 0x12d   : > { %v10746_v56 = vpop.f32.mrb[16].mxu0 }
 0x12e   : > { %v810_v59 = vadd.f32 %v10746_v56, %v9442_v58  ;;  %v804_v61 = vpop.f32.mrb[17].mxu0 }
 0x12f   : > { %v805_v63 = vadd.f32 %v9442_v58, %v804_v61 }
 0x131   : > { %10794 = vmatmul.mubr.msk.f32.vlgmr.msra.gmra.mrb[22].mxu1 %vm883_vm0, %v504_v49  ;;  %v10749_v0 = vpop.f32.mrb[18].mxu0  ;;  %v11992_v5 = vpack.c.bf16 %v810_v59, %v805_v63  ;;  %v13528_v59 = vld [vmem:[%s15467_s9] sm:$0xff] }
 0x132   : > { %11979 = vmatpush3.bf16.xpose.msk.msra.mxu1 %vm13413_vm1, %v11974_v28  ;;  %10807 = vmatprep.mubr.msk.f32.mxu1 %vm883_vm0, %v519_v25  ;;  %v820_v2 = vadd.f32 %v10749_v0, %v9442_v58  ;;  %v814_v4 = vpop.f32.mrb[19].mxu0  ;;  %v13515_v25 = vld [vmem:[%s15467_s9 + $0x8] sm:$0xff] }
 0x133   : > { %11988 = vmatprep.subr.msk.bf16.mxu1 %vm13413_vm1, %v11986_v48  ;;  %10815 = vmatmul.mubr.msk.f32.vlgmr.msra.gmra.mrb[34].mxu0 %vm883_vm0, %v534_v50  ;;  %v815_v7 = vadd.f32 %v9442_v58, %v814_v4 }
 0x134   : > { %11993 = vmatprep.subr.bf16.mxu0 %v11992_v5 }
 0x135   : > { %v10752_v9 = vpop.f32.mrb[20].mxu0  ;;  %v11996_v14 = vpack.c.bf16 %v820_v2, %v815_v7  ;;  %11995 = vmatpush3.bf16.msra.mxu0 %v11992_v5 }
 0x136   : > { %v830_v10 = vadd.f32 %v10752_v9, %v9442_v58  ;;  %v824_v12 = vpop.f32.mrb[21].mxu0 }
 0x137   : > { %v825_v29 = vadd.f32 %v9442_v58, %v824_v12 }
 0x139   : > { %10808 = vmatmul.mubr.msk.f32.vlgmr.msra.gmra.mrb[24].mxu1 %vm883_vm0, %v524_v53  ;;  %v10755_v15 = vpop.f32.mrb[22].mxu0  ;;  %v13498_v22 = vpack.c.bf16 %v830_v10, %v825_v29 }
 0x13a   : > { %11991 = vmatpush3.bf16.xpose.msk.msra.mxu1 %vm13413_vm1, %v11986_v48  ;;  %10821 = vmatprep.mubr.msk.f32.mxu1 %vm883_vm0, %v539_v51  ;;  %v840_v17 = vadd.f32 %v10755_v15, %v9442_v58  ;;  %v834_v21 = vpop.f32.mrb[23].mxu0 }
 0x13b   : > { %v835_v24 = vadd.f32 %v9442_v58, %v834_v21  ;;  %11997 = vmatprep.subr.bf16.mxu1 %v11996_v14  ;;  %12001 = vmatprep.subr.bf16.mxu0 %v13498_v22 }
 0x13d   : > { %v10758_v26 = vpop.f32.mrb[24].mxu0  ;;  %v13500_v30 = vpack.c.bf16 %v840_v17, %v835_v24 }
 0x13e   : > { %v850_v27 = vadd.f32 %v10758_v26, %v9442_v58  ;;  %v844_v28 = vpop.f32.mrb[25].mxu0 }
 0x13f   : > { %v845_v31 = vadd.f32 %v9442_v58, %v844_v28 }
 0x141   : > { %10822 = vmatmul.mubr.msk.f32.vlgmr.msra.gmra.mrb[26].mxu1 %vm883_vm0, %v544_v54  ;;  %v10761_v33 = vpop.f32.mrb[26].mxu0  ;;  %v13503_v36 = vpack.c.bf16 %v850_v27, %v845_v31 }
 0x142   : > { %11999 = vmatpush3.bf16.msra.mxu1 %v11996_v14  ;;  %v860_v34 = vadd.f32 %v10761_v33, %v9442_v58  ;;  %v854_v35 = vpop.f32.mrb[27].mxu0 }
 0x143   : > { %v855_v37 = vadd.f32 %v9442_v58, %v854_v35  ;;  %12005 = vmatprep.subr.bf16.mxu1 %v13500_v30 }
 0x145   : > { %v10764_v38 = vpop.f32.mrb[28].mxu0  ;;  %v13506_v41 = vpack.c.bf16 %v860_v34, %v855_v37 }
 0x146   : > { %v870_v39 = vadd.f32 %v10764_v38, %v9442_v58  ;;  %v864_v40 = vpop.f32.mrb[29].mxu0 }
 0x147   : > { %v865_v42 = vadd.f32 %v9442_v58, %v864_v40 }
 0x149   : > { %v10767_v43 = vpop.f32.mrb[30].mxu0  ;;  %v13508_v46 = vpack.c.bf16 %v870_v39, %v865_v42 }
 0x14a   : > { %v880_v44 = vadd.f32 %v10767_v43, %v9442_v58  ;;  %v874_v45 = vpop.f32.mrb[31].mxu0 }
 0x14b   : > { %v875_v47 = vadd.f32 %v9442_v58, %v874_v45 }
 0x14d   : > { %v13510_v48 = vpack.c.bf16 %v880_v44, %v875_v47 }
 0x1ec   : > { %v10774_v49 = vpop.f32.mrb[16].mxu1 }
 0x1ed   : > { %v13518_v50 = vadd.f32 %v10774_v49, %v13515_v25  ;;  %v962_v51 = vpop.f32.mrb[17].mxu1 }
 0x1ee   : > { %v13536_v0 = vadd.f32 %v962_v51, %v13528_v59 }
 0x1ef   : > { %v1584_v53 = vsel %vm1580_vm2, %v13518_v50, -inf }
 0x1f0   : > { %1585 = vmax.xlane.f32.xlu1 %v1584_v53  ;;  %v1581_v9 = vsel %vm1580_vm2, %v13536_v0, -inf }
 0x1f4   : > { %v10781_v54 = vpop.f32.mrb[18].mxu1 }
 0x1f5   : > { %v13523_v56 = vadd.f32 %v10781_v54, %v13515_v25  ;;  %v1049_v58 = vpop.f32.mrb[19].mxu1 }
 0x1f6   : > { %v13531_v61 = vadd.f32 %v1049_v58, %v13528_v59 }
 0x1f7   : > { %v1590_v63 = vsel %vm1580_vm2, %v13523_v56, -inf }
 0x1f8   : > { %1591 = vmax.xlane.f32.xlu0 %v1590_v63  ;;  %v1587_v2 = vsel %vm1580_vm2, %v13531_v61, -inf }
 0x1fc   : > { %v10788_v4 = vpop.f32.mrb[20].mxu1  ;;  %1588 = vmax.xlane.f32.xlu0 %v1587_v2 }
 0x1fd   : > { %v1136_v5 = vpop.f32.mrb[21].mxu1  ;;  %v13569_v42 = vadd.f32 %v10788_v4, %v13515_v25 }
 0x1fe   : > { %v10802_v7 = vpop.f32.mrb[32].mxu0  ;;  %v13574_v44 = vadd.f32 %v1136_v5, %v13528_v59 }
 0x1ff   : > { %v1310_v10 = vpop.f32.mrb[33].mxu0  ;;  %v13579_v47 = vadd.f32 %v10802_v7, %v13515_v25  ;;  %v1596_v49 = vsel %vm1580_vm2, %v13569_v42, -inf }
 0x200   : > { %1582 = vmax.xlane.f32.xlu0 %v1581_v9  ;;  %v13584_v51 = vadd.f32 %v1310_v10, %v13528_v59  ;;  %v1593_v53 = vsel %vm1580_vm2, %v13574_v44, -inf }
 0x201   : > { %v1608_v58 = vsel %vm1580_vm2, %v13579_v47, -inf }
 0x202   : > { %v1605_v2 = vsel %vm1580_vm2, %v13584_v51, -inf }
 0x204   : > { %v10795_v12 = vpop.f32.mrb[22].mxu1 }
 0x205   : > { %v13543_v14 = vadd.f32 %v10795_v12, %v13515_v25  ;;  %v1223_v29 = vpop.f32.mrb[23].mxu1 }
 0x206   : > { %v10816_v15 = vpop.f32.mrb[34].mxu0  ;;  %v13546_v17 = vadd.f32 %v1223_v29, %v13528_v59 }
 0x207   : > { %v1602_v21 = vsel %vm1580_vm2, %v13543_v14, -inf  ;;  %v1484_v24 = vpop.f32.mrb[35].mxu0  ;;  %v13589_v54 = vadd.f32 %v10816_v15, %v13515_v25 }
 0x208   : > { %1603 = vmax.xlane.f32.xlu1 %v1602_v21  ;;  %v1599_v26 = vsel %vm1580_vm2, %v13546_v17, -inf  ;;  %v13594_v63 = vadd.f32 %v1484_v24, %v13528_v59 }
 0x209   : > { %v1620_v4 = vsel %vm1580_vm2, %v13589_v54, -inf }
 0x20a   : > { %v1617_v5 = vsel %vm1580_vm2, %v13594_v63, -inf }
 0x20c   : > { %v10809_v27 = vpop.f32.mrb[24].mxu1  ;;  %1600 = vmax.xlane.f32.xlu1 %v1599_v26 }
 0x20d   : > { %v13553_v28 = vadd.f32 %v10809_v27, %v13515_v25  ;;  %v1397_v31 = vpop.f32.mrb[25].mxu1 }
 0x20e   : > { %v13556_v33 = vadd.f32 %v1397_v31, %v13528_v59 }
 0x20f   : > { %v1614_v34 = vsel %vm1580_vm2, %v13553_v28, -inf }
 0x210   : > { %1615 = vmax.xlane.f32.xlu1 %v1614_v34  ;;  %v1611_v35 = vsel %vm1580_vm2, %v13556_v33, -inf }
 0x211   : > { %1612 = vmax.xlane.f32.xlu0 %v1611_v35 }
 0x214   : > { %v10823_v37 = vpop.f32.mrb[26].mxu1 }
 0x215   : > { %v13563_v38 = vadd.f32 %v10823_v37, %v13515_v25  ;;  %v1571_v39 = vpop.f32.mrb[27].mxu1 }
 0x216   : > { %v13566_v40 = vadd.f32 %v1571_v39, %v13528_v59 }
 0x217   : > { %v1626_v43 = vsel %vm1580_vm2, %v13563_v38, -inf }
 0x218   : > { %1627 = vmax.xlane.f32.xlu1 %v1626_v43  ;;  %v1623_v45 = vsel %vm1580_vm2, %v13566_v40, -inf }
 0x219   : > { %1624 = vmax.xlane.f32.xlu0 %v1623_v45 }
 0x21c   : > { %1597 = vmax.xlane.f32.xlu1 %v1596_v49 }
 0x21d   : > { %1594 = vmax.xlane.f32.xlu0 %v1593_v53 }
 0x220   : > { %1609 = vmax.xlane.f32.xlu1 %v1608_v58 }
 0x221   : > { %1606 = vmax.xlane.f32.xlu0 %v1605_v2 }
 0x224   : > { %1621 = vmax.xlane.f32.xlu1 %v1620_v4 }
 0x225   : > { %1618 = vmax.xlane.f32.xlu0 %v1617_v5 }
 0x27d   : > { %v1586_v10 = vpop.xlane.xlu1 %1585 }
 0x27e   : > { %v1630_v15 = vsub.f32 %v13518_v50, %v1586_v10 }
 0x280   : > { %v1647_v31 = vmul.f32 1.442695, %v1630_v15 }
 0x285   : > { %v1592_v7 = vpop.xlane.xlu0 %1591 }
 0x286   : > { %v1632_v9 = vsub.f32 %v13523_v56, %v1592_v7 }
 0x288   : > { %v1651_v21 = vmul.f32 1.442695, %v1632_v9 }
 0x289   : > { %v1589_v12 = vpop.xlane.xlu0 %1588 }
 0x28a   : > { %v1631_v29 = vsub.f32 %v13531_v61, %v1589_v12 }
 0x28c   : > { %v1649_v24 = vmul.f32 1.442695, %v1631_v29 }
 0x28d   : > { %v1583_v26 = vpop.xlane.xlu0 %1582 }
 0x28e   : > { %12673 = vpow2.f32 %v1649_v24  ;;  %v1629_v27 = vsub.f32 %v13536_v0, %v1583_v26 }
 0x28f   : > { %12675 = vpow2.f32 %v1651_v21 }
 0x290   : > { %v1645_v34 = vmul.f32 1.442695, %v1629_v27 }
 0x292   : > { %12677 = vpow2.f32 %v1645_v34 }
 0x293   : > { %12679 = vpow2.f32 %v1647_v31 }
 0x295   : > { %v1604_v35 = vpop.xlane.xlu1 %1603 }
 0x296   : > { %v1636_v56 = vsub.f32 %v13543_v14, %v1604_v35 }
 0x298   : > { %v13607_v37 = vpop.eup %12673  ;;  %v1659_v0 = vmul.f32 1.442695, %v1636_v56 }
 0x299   : > { %v13609_v39 = vpop.eup %12675  ;;  %v1601_v61 = vpop.xlane.xlu1 %1600  ;;  %10835 = vmatprep.mubr.msk.f32.mxu1 %vm1580_vm2, %v13607_v37 }
 0x29a   : > { %v1635_v50 = vsub.f32 %v13546_v17, %v1601_v61  ;;  %10836 = vmatmul.mubr.msk.f32.vlgmr.msra.gmra.mrb[28].mxu1 %vm1580_vm2, %v13609_v39 }
 0x29b   : > { %12007 = vmatpush3.bf16.msra.mxu1 %v13500_v30 }
 0x29c   : > { %v13617_v43 = vpop.eup %12677  ;;  %v1657_v45 = vmul.f32 1.442695, %v1635_v50  ;;  %12013 = vmatprep.subr.bf16.mxu1 %v13506_v41 }
 0x29d   : > { %v13620_v14 = vpop.eup %12679  ;;  %v1616_v49 = vpop.xlane.xlu1 %1615  ;;  %10828 = vmatprep.mubr.msk.f32.mxu0 %vm1580_vm2, %v13617_v43 }
 0x29e   : > { %12681 = vpow2.f32 %v1657_v45  ;;  %v1640_v17 = vsub.f32 %v13553_v28, %v1616_v49  ;;  %10829 = vmatmul.mubr.msk.f32.vlgmr.msra.gmra.mrb[36].mxu0 %vm1580_vm2, %v13620_v14  ;;  %v1613_v53 = vpop.xlane.xlu0 %1612  ;;  %v9511_v45 = vld [vmem:[%s15461_s3 + $0x90] sm:$0xff] }
 0x29f   : > { %12683 = vpow2.f32 %v1659_v0  ;;  %12003 = vmatpush3.bf16.msra.mxu0 %v13498_v22  ;;  %v1639_v30 = vsub.f32 %v13556_v33, %v1613_v53 }
 0x2a0   : > { %v1667_v58 = vmul.f32 1.442695, %v1640_v17  ;;  %12009 = vmatprep.subr.bf16.mxu0 %v13503_v36 }
 0x2a1   : > { %v1665_v2 = vmul.f32 1.442695, %v1639_v30 }
 0x2a3   : > { %12685 = vpow2.f32 %v1665_v2  ;;  %v9514_v2 = vld [vmem:[%s15461_s3 + $0xa8] sm:$0xff] }
 0x2a4   : > { %12687 = vpow2.f32 %v1667_v58 }
 0x2a5   : > { %v1628_v4 = vpop.xlane.xlu1 %1627 }
 0x2a6   : > { %v1644_v5 = vsub.f32 %v13563_v38, %v1628_v4  ;;  %v1625_v7 = vpop.xlane.xlu0 %1624  ;;  %v9509_v38 = vld [vmem:[%s15461_s3 + $0x80] sm:$0xff] }
 0x2a7   : > { %v1643_v28 = vsub.f32 %v13566_v40, %v1625_v7  ;;  %v9510_v40 = vld [vmem:[%s15461_s3 + $0x88] sm:$0xff] }
 0x2a8   : > { %v13632_v9 = vpop.eup %12681  ;;  %v1675_v10 = vmul.f32 1.442695, %v1644_v5  ;;  %v12056_v31 = vpack.c.bf16 %v9510_v40, %v9509_v38  ;;  %v9491_v5 = vld [vmem:[%s15459_s1 + $0x80] sm:$0xff] }
 0x2a9   : > { %v13634_v12 = vpop.eup %12683  ;;  %v1673_v22 = vmul.f32 1.442695, %v1643_v28  ;;  %v1598_v29 = vpop.xlane.xlu1 %1597  ;;  %10849 = vmatprep.mubr.msk.f32.mxu1 %vm1580_vm2, %v13632_v9  ;;  %v9492_v28 = vld [vmem:[%s15459_s1 + $0x88] sm:$0xff]  ;;  %v9517_v40 = vld [vmem:[%s15461_s3 + $0xc0] sm:$0xff] }
 0x2aa   : > { %v1634_v33 = vsub.f32 %v13569_v42, %v1598_v29  ;;  %10850 = vmatmul.mubr.msk.f32.vlgmr.msra.gmra.mrb[30].mxu1 %vm1580_vm2, %v13634_v12  ;;  %v1595_v15 = vpop.xlane.xlu0 %1594  ;;  %v12024_v29 = vpack.c.bf16 %v9492_v28, %v9491_v5  ;;  %v9501_v28 = vld [vmem:[%s15459_s1 + $0xd0] sm:$0xff] }
 0x2ab   : > { %12689 = vpow2.f32 %v1673_v22  ;;  %12015 = vmatpush3.bf16.msra.mxu1 %v13506_v41  ;;  %v1633_v21 = vsub.f32 %v13574_v44, %v1595_v15  ;;  %v9493_v15 = vld [vmem:[%s15459_s1 + $0x90] sm:$0xff] }
 0x2ac   : > { %12691 = vpow2.f32 %v1675_v10  ;;  %v1655_v24 = vmul.f32 1.442695, %v1634_v33  ;;  %12021 = vmatprep.subr.bf16.mxu1 %v13510_v48  ;;  %v9516_v10 = vld [vmem:[%s15461_s3 + $0xb8] sm:$0xff] }
 0x2ad   : > { %v13650_v42 = vpop.eup %12685  ;;  %v1653_v26 = vmul.f32 1.442695, %v1633_v21  ;;  %v1610_v27 = vpop.xlane.xlu1 %1609  ;;  %v9518_v21 = vld [vmem:[%s15461_s3 + $0xc8] sm:$0xff] }
 0x2ae   : > { %v13652_v34 = vpop.eup %12687  ;;  %v1638_v35 = vsub.f32 %v13579_v47, %v1610_v27  ;;  %10863 = vmatprep.mubr.msk.f32.mxu1 %vm1580_vm2, %v13650_v42  ;;  %v1607_v56 = vpop.xlane.xlu0 %1606  ;;  %v12072_v27 = vpack.c.bf16 %v9518_v21, %v9517_v40  ;;  %v9506_v40 = vld [vmem:[%s15459_s1 + $0xf8] sm:$0xff] }
 0x2af   : > { %12693 = vpow2.f32 %v1653_v26  ;;  %v1637_v41 = vsub.f32 %v13584_v51, %v1607_v56  ;;  %10864 = vmatmul.mubr.msk.f32.vlgmr.msra.gmra.mrb[32].mxu1 %vm1580_vm2, %v13652_v34  ;;  %v9512_v51 = vld [vmem:[%s15461_s3 + $0x98] sm:$0xff]  ;;  %v9519_v56 = vld [vmem:[%s15461_s3 + $0xd0] sm:$0xff] }
 0x2b0   : > { %12695 = vpow2.f32 %v1655_v24  ;;  %v1663_v44 = vmul.f32 1.442695, %v1638_v35  ;;  %12023 = vmatpush3.bf16.msra.mxu1 %v13510_v48  ;;  %v12060_v30 = vpack.c.bf16 %v9512_v51, %v9511_v45  ;;  %v9522_v45 = vld [vmem:[%s15461_s3 + $0xe8] sm:$0xff]  ;;  %v13760_v51 = vld [vmem:[%s13199_s26] sm:$0xff] }
 0x2b1   : > { %v1661_v61 = vmul.f32 1.442695, %v1637_v41  ;;  %v1622_v50 = vpop.xlane.xlu1 %1621  ;;  %12057 = vmatprep.subr.bf16.mxu1 %v12056_v31  ;;  %v9520_v41 = vld [vmem:[%s15461_s3 + $0xd8] sm:$0xff] }
 0x2b2   : > { %v1642_v0 = vsub.f32 %v13589_v54, %v1622_v50  ;;  %v1619_v47 = vpop.xlane.xlu0 %1618  ;;  %v9513_v54 = vld [vmem:[%s15461_s3 + $0xa0] sm:$0xff]  ;;  %v9497_v50 = vld [vmem:[%s15459_s1 + $0xb0] sm:$0xff] }
 0x2b3   : > { %12697 = vpow2.f32 %v1661_v61  ;;  %v1641_v49 = vsub.f32 %v13594_v63, %v1619_v47  ;;  %v12064_v4 = vpack.c.bf16 %v9514_v2, %v9513_v54  ;;  %v12076_v61 = vpack.c.bf16 %v9520_v41, %v9519_v56  ;;  %v9521_v47 = vld [vmem:[%s15461_s3 + $0xe0] sm:$0xff]  ;;  %v9523_v54 = vld [vmem:[%s15461_s3 + $0xf0] sm:$0xff]  ;;  %v9524_v2 = vld [vmem:[%s15461_s3 + $0xf8] sm:$0xff] }
 0x2b4   : > { %12699 = vpow2.f32 %v1663_v44  ;;  %v1671_v17 = vmul.f32 1.442695, %v1642_v0  ;;  %v9498_v0 = vld [vmem:[%s15459_s1 + $0xb8] sm:$0xff]  ;;  %v12084_v5 = vpack.c.bf16 %v9524_v2, %v9523_v54  ;;  %v9539_v41 = vld [vmem:[%s15463_s5 + $0xe0] sm:$0xff]  ;;  %v12938_v54 = vld [vmem:[%s13199_s26 + $0x48] sm:$0xff] }
 0x2b5   : > { %v13669_v48 = vpop.eup %12689  ;;  %v1669_v53 = vmul.f32 1.442695, %v1641_v49  ;;  %v12036_v49 = vpack.c.bf16 %v9498_v0, %v9497_v50  ;;  %v9541_v50 = vld [vmem:[%s15463_s5 + $0xf0] sm:$0xff]  ;;  %v9542_v0 = vld [vmem:[%s15463_s5 + $0xf8] sm:$0xff] }
 0x2b6   : > { %v13671_v58 = vpop.eup %12691  ;;  %10877 = vmatprep.mubr.msk.f32.mxu1 %vm1580_vm2, %v13669_v48  ;;  %v12939_v2 = vld [vmem:[%s13199_s26 + $0x50] sm:$0xff] }
 0x2b7   : > { %12701 = vpow2.f32 %v1669_v53  ;;  %10878 = vmatmul.mubr.msk.f32.vlgmr.msra.gmra.mrb[34].mxu1 %vm1580_vm2, %v13671_v58  ;;  %v9499_v53 = vld [vmem:[%s15459_s1 + $0xc0] sm:$0xff] }
 0x2b8   : > { %12703 = vpow2.f32 %v1671_v17  ;;  %12059 = vmatpush3.bf16.msra.mxu1 %v12056_v31  ;;  %10968 = vmatprep.mubr.f32.mxu1 %v13208_v23  ;;  %v9515_v23 = vld [vmem:[%s15461_s3 + $0xb0] sm:$0xff]  ;;  %v9495_v31 = vld [vmem:[%s15459_s1 + $0xa0] sm:$0xff]  ;;  %v12080_v17 = vpack.c.bf16 %v9522_v45, %v9521_v47  ;;  %v12116_v47 = vpack.c.bf16 %v9542_v0, %v9541_v50  ;;  %v12932_v45 = vld [vmem:[%s13199_s26 + $0x18] sm:$0xff] }
 0x2b9   : > { %v13684_v63 = vpop.eup %12693  ;;  %12061 = vmatprep.subr.bf16.mxu1 %v12060_v30  ;;  %v12068_v33 = vpack.c.bf16 %v9516_v10, %v9515_v23  ;;  %v9502_v23 = vld [vmem:[%s15459_s1 + $0xd8] sm:$0xff] }
 0x2ba   : > { %v13689_v7 = vpop.eup %12695  ;;  %10842 = vmatprep.mubr.msk.f32.mxu0 %vm1580_vm2, %v13684_v63  ;;  %v12044_v10 = vpack.c.bf16 %v9502_v23, %v9501_v28  ;;  %v12942_v28 = vld [vmem:[%s13199_s26 + $0x68] sm:$0xff]  ;;  %v12943_v23 = vld [vmem:[%s13199_s26 + $0x70] sm:$0xff] }
 0x2bb   : > { %10843 = vmatmul.mubr.msk.f32.vlgmr.msra.gmra.mrb[38].mxu0 %vm1580_vm2, %v13689_v7 }
 0x2bc   : > { %12011 = vmatpush3.bf16.msra.mxu0 %v13503_v36  ;;  %12063 = vmatpush3.bf16.msra.mxu1 %v12060_v30  ;;  %v9494_v36 = vld [vmem:[%s15459_s1 + $0x98] sm:$0xff]  ;;  %v9500_v30 = vld [vmem:[%s15459_s1 + $0xc8] sm:$0xff] }
 0x2bd   : > { %v13705_v22 = vpop.eup %12697  ;;  %12017 = vmatprep.subr.bf16.mxu0 %v13508_v46  ;;  %12065 = vmatprep.subr.bf16.mxu1 %v12064_v4  ;;  %v12028_v26 = vpack.c.bf16 %v9494_v36, %v9493_v15  ;;  %v9505_v36 = vld [vmem:[%s15459_s1 + $0xf0] sm:$0xff] }
 0x2be   : > { %v13711_v38 = vpop.eup %12699  ;;  %10856 = vmatprep.mubr.msk.f32.mxu0 %vm1580_vm2, %v13705_v22  ;;  %v12052_v21 = vpack.c.bf16 %v9506_v40, %v9505_v36 }
 0x2bf   : > { %10857 = vmatmul.mubr.msk.f32.vlgmr.msra.gmra.mrb[40].mxu0 %vm1580_vm2, %v13711_v38 }
 0x2c0   : > { %12019 = vmatpush3.bf16.msra.mxu0 %v13508_v46  ;;  %12067 = vmatpush3.bf16.msra.mxu1 %v12064_v4  ;;  %v9496_v46 = vld [vmem:[%s15459_s1 + $0xa8] sm:$0xff]  ;;  %v12040_v4 = vpack.c.bf16 %v9500_v30, %v9499_v53  ;;  %v12936_v53 = vld [vmem:[%s13199_s26 + $0x38] sm:$0xff]  ;;  %v12937_v30 = vld [vmem:[%s13199_s26 + $0x40] sm:$0xff] }
 0x2c1   : > { %v13727_v24 = vpop.eup %12701  ;;  %12025 = vmatprep.subr.bf16.mxu0 %v12024_v29  ;;  %12069 = vmatprep.subr.bf16.mxu1 %v12068_v33  ;;  %v12032_v44 = vpack.c.bf16 %v9496_v46, %v9495_v31  ;;  %v9537_v31 = vld [vmem:[%s15463_s5 + $0xd0] sm:$0xff]  ;;  %v9538_v46 = vld [vmem:[%s15463_s5 + $0xd8] sm:$0xff] }
 0x2c2   : > { %v13732_v35 = vpop.eup %12703  ;;  %10870 = vmatprep.mubr.msk.f32.mxu0 %vm1580_vm2, %v13727_v24  ;;  %v12108_v56 = vpack.c.bf16 %v9538_v46, %v9537_v31 }
 0x2c3   : > { %10871 = vmatmul.mubr.msk.f32.vlgmr.msra.gmra.mrb[42].mxu0 %vm1580_vm2, %v13732_v35 }
 0x2c4   : > { %12027 = vmatpush3.bf16.msra.mxu0 %v12024_v29  ;;  %12071 = vmatpush3.bf16.msra.mxu1 %v12068_v33  ;;  %v9503_v29 = vld [vmem:[%s15459_s1 + $0xe0] sm:$0xff]  ;;  %v9504_v33 = vld [vmem:[%s15459_s1 + $0xe8] sm:$0xff] }
 0x2c5   : > { %12029 = vmatprep.subr.bf16.mxu0 %v12028_v26  ;;  %12073 = vmatprep.subr.bf16.mxu1 %v12072_v27  ;;  %v12048_v15 = vpack.c.bf16 %v9504_v33, %v9503_v29 }
 0x2c6   : > { %10912 = vmatprep.mubr.f32.mxu0 %v13760_v51 }
 0x2c8   : > { %12031 = vmatpush3.bf16.msra.mxu0 %v12028_v26  ;;  %12075 = vmatpush3.bf16.msra.mxu1 %v12072_v27  ;;  %v13800_v26 = vld [vmem:[%s13199_s26 + $0x8] sm:$0xff] }
 0x2c9   : > { %12033 = vmatprep.subr.bf16.mxu0 %v12032_v44  ;;  %12077 = vmatprep.subr.bf16.mxu1 %v12076_v61 }
 0x2cc   : > { %12035 = vmatpush3.bf16.msra.mxu0 %v12032_v44  ;;  %12079 = vmatpush3.bf16.msra.mxu1 %v12076_v61  ;;  %v9540_v44 = vld [vmem:[%s15463_s5 + $0xe8] sm:$0xff] }
 0x2cd   : > { %12037 = vmatprep.subr.bf16.mxu0 %v12036_v49  ;;  %12081 = vmatprep.subr.bf16.mxu1 %v12080_v17  ;;  %v12112_v61 = vpack.c.bf16 %v9540_v44, %v9539_v41 }
 0x2d0   : > { %12039 = vmatpush3.bf16.msra.mxu0 %v12036_v49  ;;  %12083 = vmatpush3.bf16.msra.mxu1 %v12080_v17  ;;  %v12934_v49 = vld [vmem:[%s13199_s26 + $0x28] sm:$0xff]  ;;  %v12935_v17 = vld [vmem:[%s13199_s26 + $0x30] sm:$0xff] }
 0x2d1   : > { %12041 = vmatprep.subr.bf16.mxu0 %v12040_v4  ;;  %12085 = vmatprep.subr.bf16.mxu1 %v12084_v5 }
 0x2d4   : > { %12043 = vmatpush3.bf16.msra.mxu0 %v12040_v4  ;;  %12087 = vmatpush3.bf16.msra.mxu1 %v12084_v5  ;;  %v12940_v4 = vld [vmem:[%s13199_s26 + $0x58] sm:$0xff]  ;;  %v12941_v5 = vld [vmem:[%s13199_s26 + $0x60] sm:$0xff] }
 0x2d5   : > { %12045 = vmatprep.subr.bf16.mxu0 %v12044_v10 }
 0x2d7   : > { %10969 = vmatmul.mubr.f32.vlgmr.msra.gmra.mrb[36].mxu1 %v13267_v52  ;;  %v13805_v52 = vld [vmem:[%s13199_s26 + $0x10] sm:$0xff] }
 0x2d8   : > { %12047 = vmatpush3.bf16.msra.mxu0 %v12044_v10  ;;  %10971 = vmatprep.mubr.f32.mxu1 %v13276_v55  ;;  %v9527_v55 = vld [vmem:[%s15463_s5 + $0x80] sm:$0xff]  ;;  %v12944_v10 = vld [vmem:[%s13199_s26 + $0x78] sm:$0xff] }
 0x2d9   : > { %12049 = vmatprep.subr.bf16.mxu0 %v12048_v15 }
 0x2db   : > { %10972 = vmatmul.mubr.f32.gmra.mrb[38].mxu1 %v13281_v57 }
 0x2dc   : > { %12051 = vmatpush3.bf16.msra.mxu0 %v12048_v15  ;;  %10974 = vmatprep.mubr.f32.mxu1 %v13291_v60 }
 0x2dd   : > { %12053 = vmatprep.subr.bf16.mxu0 %v12052_v21 }
 0x2df   : > { %10975 = vmatmul.mubr.f32.gmra.mrb[40].mxu1 %v13297_v62 }
 0x2e0   : > { %12055 = vmatpush3.bf16.msra.mxu0 %v12052_v21  ;;  %10977 = vmatprep.mubr.f32.mxu1 %v13307_v1 }
 0x2e3   : > { %10913 = vmatmul.mubr.f32.vlgmr.msra.gmra.mrb[44].mxu0 %v13800_v26  ;;  %10978 = vmatmul.mubr.f32.gmra.mrb[42].mxu1 %v13313_v3 }
 0x2e4   : > { %10915 = vmatprep.mubr.f32.mxu0 %v13805_v52  ;;  %10980 = vmatprep.mubr.f32.mxu1 %v13322_v6 }
 0x2e7   : > { %10916 = vmatmul.mubr.f32.gmra.mrb[46].mxu0 %v13281_v57  ;;  %10981 = vmatmul.mubr.f32.gmra.mrb[44].mxu1 %v13329_v8  ;;  %v9528_v57 = vld [vmem:[%s15463_s5 + $0x88] sm:$0xff] }
 0x2e8   : > { %10918 = vmatprep.mubr.f32.mxu0 %v13291_v60  ;;  %10983 = vmatprep.mubr.f32.mxu1 %v13338_v11  ;;  %v12088_v60 = vpack.c.bf16 %v9528_v57, %v9527_v55 }
 0x2ea   : > { %12089 = vmatprep.subr.bf16.mxu0 %v12088_v60 }
 0x2eb   : > { %10919 = vmatmul.mubr.f32.gmra.mrb[48].mxu0 %v13297_v62  ;;  %10984 = vmatmul.mubr.f32.gmra.mrb[46].mxu1 %v13345_v13  ;;  %v9529_v62 = vld [vmem:[%s15463_s5 + $0x90] sm:$0xff] }
 0x2ec   : > { %10921 = vmatprep.mubr.f32.mxu0 %v13307_v1  ;;  %10986 = vmatprep.mubr.f32.mxu1 %v13354_v16  ;;  %v9530_v1 = vld [vmem:[%s15463_s5 + $0x98] sm:$0xff] }
 0x2ed   : > { %12091 = vmatpush3.bf16.msra.mxu0 %v12088_v60 }
 0x2ef   : > { %10922 = vmatmul.mubr.f32.gmra.mrb[50].mxu0 %v13313_v3  ;;  %10987 = vmatmul.mubr.f32.gmra.mrb[48].mxu1 %v13361_v18  ;;  %v12092_v3 = vpack.c.bf16 %v9530_v1, %v9529_v62 }
 0x2f0   : > { %10924 = vmatprep.mubr.f32.mxu0 %v13322_v6  ;;  %10989 = vmatprep.mubr.f32.mxu1 %v13365_v19  ;;  %v9531_v6 = vld [vmem:[%s15463_s5 + $0xa0] sm:$0xff] }
 0x2f1   : > { %12093 = vmatprep.subr.bf16.mxu0 %v12092_v3 }
 0x2f2   : > { %12095 = vmatpush3.bf16.msra.mxu0 %v12092_v3 }
 0x2f3   : > { %10925 = vmatmul.mubr.f32.gmra.mrb[52].mxu0 %v13329_v8  ;;  %10990 = vmatmul.mubr.f32.gmra.mrb[50].mxu1 %v13371_v20  ;;  %v9532_v8 = vld [vmem:[%s15463_s5 + $0xa8] sm:$0xff] }
 0x2f4   : > { %10927 = vmatprep.mubr.f32.mxu0 %v13338_v11  ;;  %v9533_v11 = vld [vmem:[%s15463_s5 + $0xb0] sm:$0xff] }
 0x2f7   : > { %10928 = vmatmul.mubr.f32.gmra.mrb[54].mxu0 %v13345_v13  ;;  %v12096_v13 = vpack.c.bf16 %v9532_v8, %v9531_v6 }
 0x2f8   : > { %10930 = vmatprep.mubr.f32.mxu0 %v13354_v16  ;;  %v9534_v16 = vld [vmem:[%s15463_s5 + $0xb8] sm:$0xff] }
 0x2f9   : > { %12097 = vmatprep.subr.bf16.mxu0 %v12096_v13 }
 0x2fa   : > { %12099 = vmatpush3.bf16.msra.mxu0 %v12096_v13 }
 0x2fb   : > { %10931 = vmatmul.mubr.f32.gmra.mrb[56].mxu0 %v13361_v18  ;;  %v12100_v18 = vpack.c.bf16 %v9534_v16, %v9533_v11  ;;  %v13928_v11 = vld [vmem:[%s15462_s4 + $0x1] ss:$0 sm:$0xff] }
 0x2fc   : > { %10933 = vmatprep.mubr.f32.mxu0 %v13365_v19  ;;  %v9535_v19 = vld [vmem:[%s15463_s5 + $0xc0] sm:$0xff] }
 0x2fd   : > { %12101 = vmatprep.subr.bf16.mxu0 %v12100_v18 }
 0x2fe   : > { %12103 = vmatpush3.bf16.msra.mxu0 %v12100_v18 }
 0x2ff   : > { %10934 = vmatmul.mubr.f32.gmra.mrb[58].mxu0 %v13371_v20  ;;  %v9536_v20 = vld [vmem:[%s15463_s5 + $0xc8] sm:$0xff] }
 0x300   : > { %11024 = vmatprep.mubr.f32.mxu0 %v13760_v51  ;;  %v12104_v27 = vpack.c.bf16 %v9536_v20, %v9535_v19  ;;  %v12933_v51 = vld [vmem:[%s13199_s26 + $0x20] sm:$0xff] }
 0x302   : > { %12105 = vmatprep.subr.bf16.mxu0 %v12104_v27 }
 0x303   : > { %12107 = vmatpush3.bf16.msra.mxu0 %v12104_v27 }
 0x304   : > { %12109 = vmatprep.subr.bf16.mxu0 %v12108_v56 }
 0x307   : > { %12111 = vmatpush3.bf16.msra.mxu0 %v12108_v56 }
 0x308   : > { %12113 = vmatprep.subr.bf16.mxu0 %v12112_v61 }
 0x30b   : > { %12115 = vmatpush3.bf16.msra.mxu0 %v12112_v61 }
 0x30c   : > { %12117 = vmatprep.subr.bf16.mxu0 %v12116_v47 }
 0x30f   : > { %12119 = vmatpush3.bf16.msra.mxu0 %v12116_v47  ;;  %v13945_v47 = vld [vmem:[%s15460_s2 + $0x1] ss:$0 sm:$0xff] }
 0x312   : > { %11025 = vmatmul.mubr.f32.vlgmr.msra.gmra.mrb[60].mxu0 %v13800_v26 }
 0x313   : > { %11027 = vmatprep.mubr.f32.mxu0 %v13805_v52 }
 0x316   : > { %11028 = vmatmul.mubr.f32.gmra.mrb[62].mxu0 %v12932_v45 }
 0x317   : > { %11030 = vmatprep.mubr.f32.mxu0 %v12933_v51 }
 0x31a   : > { %11031 = vmatmul.mubr.f32.gmra.mrb[64].mxu0 %v12934_v49 }
 0x31b   : > { %11033 = vmatprep.mubr.f32.mxu0 %v12935_v17 }
 0x31e   : > { %11034 = vmatmul.mubr.f32.gmra.mrb[66].mxu0 %v12936_v53 }
 0x31f   : > { %11036 = vmatprep.mubr.f32.mxu0 %v12937_v30 }
 0x322   : > { %11037 = vmatmul.mubr.f32.gmra.mrb[68].mxu0 %v12938_v54 }
 0x323   : > { %11039 = vmatprep.mubr.f32.mxu0 %v12939_v2 }
 0x326   : > { %11040 = vmatmul.mubr.f32.gmra.mrb[70].mxu0 %v12940_v4 }
 0x327   : > { %11042 = vmatprep.mubr.f32.mxu0 %v12941_v5 }
 0x32a   : > { %11043 = vmatmul.mubr.f32.gmra.mrb[72].mxu0 %v12942_v28 }
 0x32b   : > { %11045 = vmatprep.mubr.f32.mxu0 %v12943_v23 }
 0x32e   : > { %11046 = vmatmul.mubr.f32.gmra.mrb[74].mxu0 %v12944_v10 }
 0x36d   : > { %v13893_v29 = vpop.f32.mrb[28].mxu1 }
 0x36e   : > { %v13895_v33 = vpop.f32.mrb[29].mxu1 }
 0x371   : > { %v13897_v15 = vpop.f32.mrb[36].mxu0 }
 0x372   : > { %v13899_v36 = vpop.f32.mrb[37].mxu0 }
 0x37d   : > { %v13901_v40 = vpop.f32.mrb[30].mxu1 }
 0x37e   : > { %v13903_v21 = vpop.f32.mrb[31].mxu1 }
 0x382   : > { %v13905_v26 = vpop.f32.mrb[32].mxu1 }
 0x383   : > { %v13907_v52 = vpop.f32.mrb[33].mxu1 }
 0x38a   : > { %v13909_v55 = vpop.f32.mrb[34].mxu1 }
 0x38b   : > { %15476 = vst [vmem:[#allocation6_spill] sm:$0xff] %v13909_v55  ;;  %v13911_v57 = vpop.f32.mrb[35].mxu1 }
 0x38c   : > { %15477 = vst [vmem:[#allocation7_spill] sm:$0xff] %v13911_v57 }
 0x38e   : > { %v13913_v60 = vpop.f32.mrb[38].mxu0 }
 0x38f   : > { %v13915_v62 = vpop.f32.mrb[39].mxu0 }
 0x392   : > { %v13917_v1 = vpop.f32.mrb[40].mxu0 }
 0x393   : > { %v13919_v3 = vpop.f32.mrb[41].mxu0 }
 0x396   : > { %v13921_v6 = vpop.f32.mrb[42].mxu0 }
 0x397   : > { %15478 = vst [vmem:[#allocation8_spill] sm:$0xff] %v13921_v6  ;;  %v13923_v8 = vpop.f32.mrb[43].mxu0 }
 0x398   : > { %15479 = vst [vmem:[#allocation9_spill] sm:$0xff] %v13923_v8 }
 0x3aa   : > { %v10970_v13 = vpop.f32.mrb[36].mxu1 }
 0x3ab   : > { %v2676_v16 = vadd.f32 %v10970_v13, %v13928_v11  ;;  %v2670_v18 = vpop.f32.mrb[37].mxu1 }
 0x3ac   : > { %v2671_v19 = vadd.f32 %v13928_v11, %v2670_v18 }
 0x3ae   : > { %v12120_v20 = vpack.c.bf16 %v2676_v16, %v2671_v19  ;;  %v10973_v27 = vpop.f32.mrb[38].mxu1 }
 0x3af   : > { %v2686_v31 = vadd.f32 %v10973_v27, %v13928_v11  ;;  %v2680_v46 = vpop.f32.mrb[39].mxu1 }
 0x3b0   : > { %12122 = vmatprep.subr.msk.bf16.mxu1 %vm13413_vm1, %v12120_v20  ;;  %v2681_v56 = vadd.f32 %v13928_v11, %v2680_v46 }
 0x3b1   : > { %12125 = vmatpush3.bf16.xpose.msk.msra.mxu1 %vm13413_vm1, %v12120_v20 }
 0x3b2   : > { %v12126_v41 = vpack.c.bf16 %v2686_v31, %v2681_v56  ;;  %v10976_v44 = vpop.f32.mrb[40].mxu1 }
 0x3b3   : > { %v2696_v61 = vadd.f32 %v10976_v44, %v13928_v11  ;;  %v2690_v50 = vpop.f32.mrb[41].mxu1 }
 0x3b4   : > { %12128 = vmatprep.subr.msk.bf16.mxu1 %vm13413_vm1, %v12126_v41  ;;  %v2691_v0 = vadd.f32 %v13928_v11, %v2690_v50 }
 0x3b6   : > { %v10914_v45 = vpop.f32.mrb[44].mxu0  ;;  %v12132_v51 = vpack.c.bf16 %v2696_v61, %v2691_v0  ;;  %v10979_v49 = vpop.f32.mrb[42].mxu1 }
 0x3b7   : > { %v2500_v17 = vpop.f32.mrb[45].mxu0  ;;  %v2706_v53 = vadd.f32 %v10979_v49, %v13928_v11  ;;  %v2700_v30 = vpop.f32.mrb[43].mxu1  ;;  %v2506_v4 = vadd.f32 %v10914_v45, %v13945_v47 }
 0x3b8   : > { %v2501_v54 = vadd.f32 %v13945_v47, %v2500_v17  ;;  %v2701_v2 = vadd.f32 %v13928_v11, %v2700_v30 }
 0x3ba   : > { %11052 = vmatprep.mubr.msk.f32.mxu1 %vm883_vm0, %v2501_v54  ;;  %v10917_v5 = vpop.f32.mrb[46].mxu0  ;;  %v12138_v28 = vpack.c.bf16 %v2706_v53, %v2701_v2  ;;  %v10982_v23 = vpop.f32.mrb[44].mxu1 }
 0x3bb   : > { %11053 = vmatmul.mubr.msk.f32.vlgmr.msra.gmra.mrb[52].mxu1 %vm883_vm0, %v2506_v4  ;;  %v2510_v10 = vpop.f32.mrb[47].mxu0  ;;  %v2716_v13 = vadd.f32 %v10982_v23, %v13928_v11  ;;  %v2710_v16 = vpop.f32.mrb[45].mxu1  ;;  %v2516_v46 = vadd.f32 %v10917_v5, %v13945_v47 }
 0x3bc   : > { %12131 = vmatpush3.bf16.xpose.msk.msra.mxu1 %vm13413_vm1, %v12126_v41  ;;  %v2511_v18 = vadd.f32 %v13945_v47, %v2510_v10  ;;  %v2711_v19 = vadd.f32 %v13928_v11, %v2710_v16 }
 0x3bd   : > { %12134 = vmatprep.subr.msk.bf16.mxu1 %vm13413_vm1, %v12132_v51 }
 0x3be   : > { %11059 = vmatprep.mubr.msk.f32.mxu1 %vm883_vm0, %v2511_v18  ;;  %v10920_v20 = vpop.f32.mrb[48].mxu0  ;;  %v12144_v27 = vpack.c.bf16 %v2716_v13, %v2711_v19  ;;  %v10985_v31 = vpop.f32.mrb[46].mxu1 }
 0x3bf   : > { %v2520_v56 = vpop.f32.mrb[49].mxu0  ;;  %v2726_v44 = vadd.f32 %v10985_v31, %v13928_v11  ;;  %v2720_v61 = vpop.f32.mrb[47].mxu1  ;;  %v2526_v23 = vadd.f32 %v10920_v20, %v13945_v47 }
 0x3c0   : > { %v2521_v41 = vadd.f32 %v13945_v47, %v2520_v56  ;;  %12146 = vmatprep.subr.msk.bf16.mxu0 %vm13413_vm1, %v12144_v27  ;;  %v2721_v50 = vadd.f32 %v13928_v11, %v2720_v61 }
 0x3c1   : > { %12149 = vmatpush3.bf16.xpose.msk.msra.mxu0 %vm13413_vm1, %v12144_v27 }
 0x3c2   : > { %v10923_v0 = vpop.f32.mrb[50].mxu0  ;;  %v12150_v45 = vpack.c.bf16 %v2726_v44, %v2721_v50  ;;  %v10988_v49 = vpop.f32.mrb[48].mxu1 }
 0x3c3   : > { %11060 = vmatmul.mubr.msk.f32.vlgmr.msra.gmra.mrb[54].mxu1 %vm883_vm0, %v2516_v46  ;;  %v2530_v17 = vpop.f32.mrb[51].mxu0  ;;  %v2736_v53 = vadd.f32 %v10988_v49, %v13928_v11  ;;  %v2730_v30 = vpop.f32.mrb[49].mxu1 }
 0x3c4   : > { %12137 = vmatpush3.bf16.xpose.msk.msra.mxu1 %vm13413_vm1, %v12132_v51  ;;  %11066 = vmatprep.mubr.msk.f32.mxu1 %vm883_vm0, %v2521_v41  ;;  %v2731_v54 = vadd.f32 %v13928_v11, %v2730_v30  ;;  %v2531_v51 = vadd.f32 %v13945_v47, %v2530_v17  ;;  %v2536_v41 = vadd.f32 %v10923_v0, %v13945_v47 }
 0x3c5   : > { %12140 = vmatprep.subr.msk.bf16.mxu1 %vm13413_vm1, %v12138_v28 }
 0x3c6   : > { %v10926_v2 = vpop.f32.mrb[52].mxu0  ;;  %v12156_v4 = vpack.c.bf16 %v2736_v53, %v2731_v54  ;;  %v10991_v5 = vpop.f32.mrb[50].mxu1  ;;  %v9544_v53 = vld [vmem:[%s15464_s6 + $0x1] ss:$0 sm:$0xff] }
 0x3c7   : > { %v2546_v10 = vadd.f32 %v10926_v2, %v13945_v47  ;;  %v2540_v13 = vpop.f32.mrb[53].mxu0  ;;  %v2746_v16 = vadd.f32 %v10991_v5, %v13928_v11  ;;  %v2740_v18 = vpop.f32.mrb[51].mxu1 }
 0x3c8   : > { %v2541_v19 = vadd.f32 %v13945_v47, %v2540_v13  ;;  %12158 = vmatprep.subr.msk.bf16.mxu0 %vm13413_vm1, %v12156_v4  ;;  %v2741_v27 = vadd.f32 %v13928_v11, %v2740_v18 }
 0x3ca   : > { %11080 = vmatprep.mubr.msk.f32.mxu0 %vm883_vm0, %v2541_v19  ;;  %v10929_v31 = vpop.f32.mrb[54].mxu0  ;;  %v12162_v46 = vpack.c.bf16 %v2746_v16, %v2741_v27 }
 0x3cb   : > { %11067 = vmatmul.mubr.msk.f32.vlgmr.msra.gmra.mrb[56].mxu1 %vm883_vm0, %v2526_v23  ;;  %11081 = vmatmul.mubr.msk.f32.vlgmr.msra.gmra.mrb[76].mxu0 %vm883_vm0, %v2546_v10  ;;  %v2550_v20 = vpop.f32.mrb[55].mxu0  ;;  %v2556_v17 = vadd.f32 %v10929_v31, %v13945_v47 }
 0x3cc   : > { %12143 = vmatpush3.bf16.xpose.msk.msra.mxu1 %vm13413_vm1, %v12138_v28  ;;  %11073 = vmatprep.mubr.msk.f32.mxu1 %vm883_vm0, %v2531_v51  ;;  %v2551_v44 = vadd.f32 %v13945_v47, %v2550_v20 }
 0x3cd   : > { %12152 = vmatprep.subr.msk.bf16.mxu1 %vm13413_vm1, %v12150_v45  ;;  %12161 = vmatpush3.bf16.xpose.msk.msra.mxu0 %vm13413_vm1, %v12156_v4 }
 0x3ce   : > { %v10932_v11 = vpop.f32.mrb[56].mxu0 }
 0x3cf   : > { %v2560_v56 = vpop.f32.mrb[57].mxu0  ;;  %v2566_v50 = vadd.f32 %v10932_v11, %v13945_v47 }
 0x3d0   : > { %v2561_v61 = vadd.f32 %v13945_v47, %v2560_v56 }
 0x3d2   : > { %11094 = vmatprep.mubr.msk.f32.mxu0 %vm883_vm0, %v2561_v61  ;;  %v10935_v28 = vpop.f32.mrb[58].mxu0 }
 0x3d3   : > { %11074 = vmatmul.mubr.msk.f32.vlgmr.msra.gmra.mrb[58].mxu1 %vm883_vm0, %v2536_v41  ;;  %v2570_v49 = vpop.f32.mrb[59].mxu0 }
 0x3d4   : > { %12155 = vmatpush3.bf16.xpose.msk.msra.mxu1 %vm13413_vm1, %v12150_v45  ;;  %11087 = vmatprep.mubr.msk.f32.mxu1 %vm883_vm0, %v2551_v44  ;;  %v2571_v0 = vadd.f32 %v13945_v47, %v2570_v49  ;;  %v2576_v45 = vadd.f32 %v10935_v28, %v13945_v47 }
 0x3d5   : > { %12164 = vmatprep.subr.msk.bf16.mxu1 %vm13413_vm1, %v12162_v46  ;;  %11095 = vmatmul.mubr.msk.f32.vlgmr.msra.gmra.mrb[78].mxu0 %vm883_vm0, %v2566_v50 }
 0x3db   : > { %11088 = vmatmul.mubr.msk.f32.vlgmr.msra.gmra.mrb[60].mxu1 %vm883_vm0, %v2556_v17 }
 0x3dc   : > { %12167 = vmatpush3.bf16.xpose.msk.msra.mxu1 %vm13413_vm1, %v12162_v46  ;;  %11101 = vmatprep.mubr.msk.f32.mxu1 %vm883_vm0, %v2571_v0 }
 0x3e3   : > { %11102 = vmatmul.mubr.msk.f32.vlgmr.msra.gmra.mrb[62].mxu1 %vm883_vm0, %v2576_v45 }
 0x3e5   : > { %v11026_v30 = vpop.f32.mrb[60].mxu0 }
 0x3e6   : > { %v2846_v54 = vadd.f32 %v11026_v30, %v9544_v53  ;;  %v2840_v2 = vpop.f32.mrb[61].mxu0 }
 0x3e7   : > { %v2841_v4 = vadd.f32 %v9544_v53, %v2840_v2 }
 0x3e9   : > { %v12168_v5 = vpack.c.bf16 %v2846_v54, %v2841_v4  ;;  %v11029_v23 = vpop.f32.mrb[62].mxu0 }
 0x3ea   : > { %v2856_v10 = vadd.f32 %v11029_v23, %v9544_v53  ;;  %v2850_v13 = vpop.f32.mrb[63].mxu0 }
 0x3eb   : > { %v2851_v16 = vadd.f32 %v9544_v53, %v2850_v13  ;;  %12169 = vmatprep.subr.bf16.mxu0 %v12168_v5 }
 0x3ec   : > { %12171 = vmatpush3.bf16.msra.mxu0 %v12168_v5 }
 0x3ed   : > { %v12172_v18 = vpack.c.bf16 %v2856_v10, %v2851_v16  ;;  %v11032_v51 = vpop.f32.mrb[64].mxu0 }
 0x3ee   : > { %v2866_v47 = vadd.f32 %v11032_v51, %v9544_v53  ;;  %v2860_v19 = vpop.f32.mrb[65].mxu0 }
 0x3ef   : > { %12173 = vmatprep.subr.bf16.mxu1 %v12172_v18  ;;  %v2861_v27 = vadd.f32 %v9544_v53, %v2860_v19 }
 0x3f0   : > { %12175 = vmatpush3.bf16.msra.mxu1 %v12172_v18 }
 0x3f1   : > { %v11035_v31 = vpop.f32.mrb[66].mxu0  ;;  %v14018_v46 = vpack.c.bf16 %v2866_v47, %v2861_v27 }
 0x3f2   : > { %v2876_v20 = vadd.f32 %v11035_v31, %v9544_v53  ;;  %v2870_v11 = vpop.f32.mrb[67].mxu0 }
 0x3f3   : > { %v2871_v56 = vadd.f32 %v9544_v53, %v2870_v11  ;;  %12177 = vmatprep.subr.bf16.mxu0 %v14018_v46 }
 0x3f5   : > { %v14021_v44 = vpack.c.bf16 %v2876_v20, %v2871_v56  ;;  %v11038_v61 = vpop.f32.mrb[68].mxu0 }
 0x3f6   : > { %v2886_v41 = vadd.f32 %v11038_v61, %v9544_v53  ;;  %v2880_v50 = vpop.f32.mrb[69].mxu0 }
 0x3f7   : > { %12181 = vmatprep.subr.bf16.mxu1 %v14021_v44  ;;  %v2881_v28 = vadd.f32 %v9544_v53, %v2880_v50 }
 0x3f9   : > { %v11041_v49 = vpop.f32.mrb[70].mxu0  ;;  %v14024_v0 = vpack.c.bf16 %v2886_v41, %v2881_v28 }
 0x3fa   : > { %v2896_v17 = vadd.f32 %v11041_v49, %v9544_v53  ;;  %v2890_v45 = vpop.f32.mrb[71].mxu0 }
 0x3fb   : > { %v2891_v30 = vadd.f32 %v9544_v53, %v2890_v45 }
 0x3fd   : > { %v14026_v54 = vpack.c.bf16 %v2896_v17, %v2891_v30  ;;  %v11044_v2 = vpop.f32.mrb[72].mxu0 }
 0x3fe   : > { %v2906_v4 = vadd.f32 %v11044_v2, %v9544_v53  ;;  %v2900_v5 = vpop.f32.mrb[73].mxu0 }
 0x3ff   : > { %v2901_v23 = vadd.f32 %v9544_v53, %v2900_v5  ;;  %v12946_v5 = vld [vmem:[%s15467_s9] sm:$0xff] }
 0x401   : > { %v11047_v10 = vpop.f32.mrb[74].mxu0  ;;  %v14028_v13 = vpack.c.bf16 %v2906_v4, %v2901_v23 }
 0x402   : > { %v2916_v16 = vadd.f32 %v11047_v10, %v9544_v53  ;;  %v2910_v18 = vpop.f32.mrb[75].mxu0 }
 0x403   : > { %v2911_v51 = vadd.f32 %v9544_v53, %v2910_v18  ;;  %v12945_v53 = vld [vmem:[%s15467_s9 + $0x8] sm:$0xff] }
 0x405   : > { %v14030_v47 = vpack.c.bf16 %v2916_v16, %v2911_v51 }
 0x48e   : > { %v11054_v19 = vpop.f32.mrb[52].mxu1 }
 0x48f   : > { %v14033_v27 = vadd.f32 %v11054_v19, %v13515_v25  ;;  %v2997_v31 = vpop.f32.mrb[53].mxu1 }
 0x490   : > { %v14036_v20 = vadd.f32 %v2997_v31, %v13528_v59 }
 0x491   : > { %v3618_v11 = vsel %vm1580_vm2, %v14033_v27, -inf }
 0x492   : > { %3619 = vmax.xlane.f32.xlu1 %v3618_v11  ;;  %v3615_v56 = vsel %vm1580_vm2, %v14036_v20, -inf }
 0x493   : > { %3616 = vmax.xlane.f32.xlu0 %v3615_v56 }
 0x496   : > { %v11061_v61 = vpop.f32.mrb[54].mxu1 }
 0x497   : > { %v14045_v41 = vadd.f32 %v12945_v53, %v11061_v61  ;;  %v3084_v25 = vpop.f32.mrb[55].mxu1 }
 0x498   : > { %v14048_v50 = vadd.f32 %v3084_v25, %v13528_v59 }
 0x499   : > { %v3624_v28 = vsel %vm1580_vm2, %v14045_v41, -inf }
 0x49a   : > { %3625 = vmax.xlane.f32.xlu1 %v3624_v28  ;;  %v3621_v49 = vsel %vm1580_vm2, %v14048_v50, -inf }
 0x49b   : > { %3622 = vmax.xlane.f32.xlu0 %v3621_v49 }
 0x49e   : > { %v11068_v17 = vpop.f32.mrb[56].mxu1  ;;  %v11082_v45 = vpop.f32.mrb[76].mxu0 }
 0x49f   : > { %v14054_v30 = vadd.f32 %v12945_v53, %v11068_v17  ;;  %v3171_v2 = vpop.f32.mrb[57].mxu1  ;;  %v3345_v4 = vpop.f32.mrb[77].mxu0  ;;  %v14069_v11 = vadd.f32 %v12945_v53, %v11082_v45 }
 0x4a0   : > { %v14059_v59 = vadd.f32 %v12946_v5, %v3171_v2  ;;  %v14073_v25 = vadd.f32 %v12946_v5, %v3345_v4 }
 0x4a1   : > { %v3630_v23 = vsel %vm1580_vm2, %v14054_v30, -inf  ;;  %v3642_v49 = vsel %vm1580_vm2, %v14069_v11, -inf }
 0x4a2   : > { %3631 = vmax.xlane.f32.xlu1 %v3630_v23  ;;  %v3627_v10 = vsel %vm1580_vm2, %v14059_v59, -inf  ;;  %v3639_v45 = vsel %vm1580_vm2, %v14073_v25, -inf }
 0x4a3   : > { %3628 = vmax.xlane.f32.xlu0 %v3627_v10 }
 0x4a6   : > { %v11075_v16 = vpop.f32.mrb[58].mxu1 }
 0x4a7   : > { %v14065_v18 = vadd.f32 %v12945_v53, %v11075_v16  ;;  %v3258_v51 = vpop.f32.mrb[59].mxu1 }
 0x4a8   : > { %v14067_v19 = vadd.f32 %v12946_v5, %v3258_v51  ;;  %v11096_v31 = vpop.f32.mrb[78].mxu0 }
 0x4a9   : > { %v3636_v56 = vsel %vm1580_vm2, %v14065_v18, -inf  ;;  %v3519_v61 = vpop.f32.mrb[79].mxu0  ;;  %v14085_v4 = vadd.f32 %v12945_v53, %v11096_v31 }
 0x4aa   : > { %3637 = vmax.xlane.f32.xlu1 %v3636_v56  ;;  %v3633_v28 = vsel %vm1580_vm2, %v14067_v19, -inf  ;;  %v14089_v51 = vadd.f32 %v12946_v5, %v3519_v61 }
 0x4ab   : > { %3634 = vmax.xlane.f32.xlu0 %v3633_v28  ;;  %v3654_v28 = vsel %vm1580_vm2, %v14085_v4, -inf }
 0x4ae   : > { %3643 = vmax.xlane.f32.xlu1 %v3642_v49  ;;  %v11089_v17 = vpop.f32.mrb[60].mxu1 }
 0x4af   : > { %v14081_v2 = vadd.f32 %v12945_v53, %v11089_v17  ;;  %v3432_v23 = vpop.f32.mrb[61].mxu1  ;;  %3640 = vmax.xlane.f32.xlu0 %v3639_v45  ;;  %v3651_v17 = vsel %vm1580_vm2, %v14089_v51, -inf }
 0x4b0   : > { %v14083_v10 = vadd.f32 %v12946_v5, %v3432_v23 }
 0x4b1   : > { %v3648_v16 = vsel %vm1580_vm2, %v14081_v2, -inf }
 0x4b2   : > { %3649 = vmax.xlane.f32.xlu1 %v3648_v16  ;;  %v3645_v56 = vsel %vm1580_vm2, %v14083_v10, -inf }
 0x4b3   : > { %3646 = vmax.xlane.f32.xlu0 %v3645_v56 }
 0x4b6   : > { %3655 = vmax.xlane.f32.xlu1 %v3654_v28  ;;  %v11103_v49 = vpop.f32.mrb[62].mxu1 }
 0x4b7   : > { %v14097_v31 = vadd.f32 %v12945_v53, %v11103_v49  ;;  %v3606_v45 = vpop.f32.mrb[63].mxu1  ;;  %3652 = vmax.xlane.f32.xlu0 %v3651_v17 }
 0x4b8   : > { %v14099_v23 = vadd.f32 %v12946_v5, %v3606_v45 }
 0x4b9   : > { %v3660_v61 = vsel %vm1580_vm2, %v14097_v31, -inf }
 0x4ba   : > { %3661 = vmax.xlane.f32.xlu1 %v3660_v61  ;;  %v3657_v16 = vsel %vm1580_vm2, %v14099_v23, -inf }
 0x4bb   : > { %3658 = vmax.xlane.f32.xlu0 %v3657_v16 }
 0x51f   : > { %v3620_v56 = vpop.xlane.xlu1 %3619 }
 0x520   : > { %v3664_v28 = vsub.f32 %v14033_v27, %v3620_v56  ;;  %v3617_v32 = vpop.xlane.xlu0 %3616 }
 0x521   : > { %v3663_v55 = vsub.f32 %v14036_v20, %v3617_v32 }
 0x522   : > { %v3681_v53 = vmul.f32 1.442695, %v3664_v28 }
 0x523   : > { %v3679_v49 = vmul.f32 1.442695, %v3663_v55 }
 0x524   : > { %12705 = vpow2.f32 %v3681_v53 }
 0x525   : > { %12707 = vpow2.f32 %v3679_v49 }
 0x527   : > { %v3626_v5 = vpop.xlane.xlu1 %3625 }
 0x528   : > { %v3666_v17 = vsub.f32 %v14045_v41, %v3626_v5  ;;  %v3623_v45 = vpop.xlane.xlu0 %3622 }
 0x529   : > { %v3665_v61 = vsub.f32 %v14048_v50, %v3623_v45 }
 0x52a   : > { %v3685_v57 = vmul.f32 1.442695, %v3666_v17 }
 0x52b   : > { %v3683_v6 = vmul.f32 1.442695, %v3665_v61 }
 0x52c   : > { %12709 = vpow2.f32 %v3685_v57 }
 0x52d   : > { %12711 = vpow2.f32 %v3683_v6 }
 0x52e   : > { %v12706_v16 = vpop.eup %12705 }
 0x52f   : > { %v12708_v8 = vpop.eup %12707  ;;  %v3632_v27 = vpop.xlane.xlu1 %3631  ;;  %v3714_v56 = vsel %vm1580_vm2, %v12706_v16, 0.0 }
 0x530   : > { %v3668_v32 = vsub.f32 %v14054_v30, %v3632_v27  ;;  %v3629_v55 = vpop.xlane.xlu0 %3628  ;;  %3715 = vadd.xlane.f32.xlu1 %v3714_v56  ;;  %11108 = vmatprep.mubr.msk.f32.mxu0 %vm1580_vm2, %v12708_v8  ;;  %v3711_v20 = vsel %vm1580_vm2, %v12708_v8, 0.0 }
 0x531   : > { %v3667_v41 = vsub.f32 %v14059_v59, %v3629_v55  ;;  %11109 = vmatmul.mubr.msk.f32.vlgmr.msra.gmra.mrb[80].mxu0 %vm1580_vm2, %v12706_v16  ;;  %3712 = vadd.xlane.f32.xlu0 %v3711_v20 }
 0x532   : > { %v3689_v57 = vmul.f32 1.442695, %v3668_v32  ;;  %12179 = vmatpush3.bf16.msra.mxu0 %v14018_v46 }
 0x533   : > { %v3687_v6 = vmul.f32 1.442695, %v3667_v41  ;;  %12185 = vmatprep.subr.bf16.mxu0 %v14024_v0 }
 0x534   : > { %12713 = vpow2.f32 %v3689_v57 }
 0x535   : > { %12715 = vpow2.f32 %v3687_v6 }
 0x536   : > { %v12710_v50 = vpop.eup %12709 }
 0x537   : > { %v12712_v30 = vpop.eup %12711  ;;  %v3638_v28 = vpop.xlane.xlu1 %3637  ;;  %v3720_v53 = vsel %vm1580_vm2, %v12710_v50, 0.0 }
 0x538   : > { %v3670_v8 = vsub.f32 %v14065_v18, %v3638_v28  ;;  %3721 = vadd.xlane.f32.xlu1 %v3720_v53  ;;  %11115 = vmatprep.mubr.msk.f32.mxu1 %vm1580_vm2, %v12712_v30  ;;  %v3635_v59 = vpop.xlane.xlu0 %3634  ;;  %v3717_v49 = vsel %vm1580_vm2, %v12712_v30, 0.0 }
 0x539   : > { %v3669_v46 = vsub.f32 %v14067_v19, %v3635_v59  ;;  %11116 = vmatmul.mubr.msk.f32.vlgmr.msra.gmra.mrb[64].mxu1 %vm1580_vm2, %v12710_v50  ;;  %3718 = vadd.xlane.f32.xlu0 %v3717_v49 }
 0x53a   : > { %v3693_v5 = vmul.f32 1.442695, %v3670_v8  ;;  %12183 = vmatpush3.bf16.msra.mxu1 %v14021_v44 }
 0x53b   : > { %v3691_v17 = vmul.f32 1.442695, %v3669_v46  ;;  %12189 = vmatprep.subr.bf16.mxu1 %v14026_v54  ;;  %v3644_v45 = vpop.xlane.xlu1 %3643 }
 0x53c   : > { %12717 = vpow2.f32 %v3693_v5  ;;  %v3672_v18 = vsub.f32 %v14069_v11, %v3644_v45  ;;  %v3641_v61 = vpop.xlane.xlu0 %3640 }
 0x53d   : > { %12719 = vpow2.f32 %v3691_v17  ;;  %v3671_v16 = vsub.f32 %v14073_v25, %v3641_v61 }
 0x53e   : > { %v12714_v27 = vpop.eup %12713  ;;  %v3697_v56 = vmul.f32 1.442695, %v3672_v18 }
 0x53f   : > { %v12716_v19 = vpop.eup %12715  ;;  %v3695_v32 = vmul.f32 1.442695, %v3671_v16  ;;  %v3650_v55 = vpop.xlane.xlu1 %3649  ;;  %v3726_v20 = vsel %vm1580_vm2, %v12714_v27, 0.0 }
 0x540   : > { %12721 = vpow2.f32 %v3697_v56  ;;  %v3674_v44 = vsub.f32 %v14081_v2, %v3650_v55  ;;  %3727 = vadd.xlane.f32.xlu1 %v3726_v20  ;;  %11122 = vmatprep.mubr.msk.f32.mxu0 %vm1580_vm2, %v12716_v19  ;;  %v3647_v41 = vpop.xlane.xlu0 %3646  ;;  %v3723_v11 = vsel %vm1580_vm2, %v12716_v19, 0.0 }
 0x541   : > { %12723 = vpow2.f32 %v3695_v32  ;;  %v3673_v57 = vsub.f32 %v14083_v10, %v3647_v41  ;;  %11123 = vmatmul.mubr.msk.f32.vlgmr.msra.gmra.mrb[82].mxu0 %vm1580_vm2, %v12714_v27  ;;  %3724 = vadd.xlane.f32.xlu0 %v3723_v11  ;;  %v1680_v11 = vsel %vm1580_vm2, %v13620_v14, 0.0  ;;  %v1689_v14 = vsel %vm1580_vm2, %v13684_v63, 0.0 }
 0x542   : > { %v3701_v25 = vmul.f32 1.442695, %v3674_v44  ;;  %12187 = vmatpush3.bf16.msra.mxu0 %v14024_v0  ;;  %v1710_v63 = vsel %vm1580_vm2, %v13652_v34, 0.0  ;;  %v2407_v34 = vld [vmem:[%s15465_s7 + $0x10] sm:$0xff] }
 0x543   : > { %v3699_v6 = vmul.f32 1.442695, %v3673_v57  ;;  %12193 = vmatprep.subr.bf16.mxu0 %v14028_v13  ;;  %v3656_v50 = vpop.xlane.xlu1 %3655  ;;  %v1677_v57 = vsel %vm1580_vm2, %v13617_v43, 0.0  ;;  %v1698_v43 = vsel %vm1580_vm2, %v13634_v12, 0.0  ;;  %v2405_v12 = vld [vmem:[%s15465_s7] sm:$0xff] }
 0x544   : > { %12725 = vpow2.f32 %v3701_v25  ;;  %v3676_v2 = vsub.f32 %v14085_v4, %v3656_v50  ;;  %v3653_v30 = vpop.xlane.xlu0 %3652  ;;  %v1686_v25 = vsel %vm1580_vm2, %v13609_v39, 0.0  ;;  %v1692_v50 = vsel %vm1580_vm2, %v13689_v7, 0.0 }
 0x545   : > { %12727 = vpow2.f32 %v3699_v6  ;;  %v3675_v28 = vsub.f32 %v14089_v51, %v3653_v30  ;;  %v1683_v6 = vsel %vm1580_vm2, %v13607_v37, 0.0  ;;  %v1695_v39 = vsel %vm1580_vm2, %v13632_v9, 0.0  ;;  %v2406_v9 = vld [vmem:[%s15465_s7 + $0x8] sm:$0xff]  ;;  %v2408_v30 = vld [vmem:[%s15465_s7 + $0x18] sm:$0xff] }
 0x546   : > { %v12718_v53 = vpop.eup %12717  ;;  %v3705_v8 = vmul.f32 1.442695, %v3676_v2  ;;  %v1704_v37 = vsel %vm1580_vm2, %v13711_v38, 0.0  ;;  %v1701_v7 = vsel %vm1580_vm2, %v13705_v22, 0.0  ;;  %v1707_v38 = vsel %vm1580_vm2, %v13650_v42, 0.0 }
 0x547   : > { %v12720_v10 = vpop.eup %12719  ;;  %v3703_v59 = vmul.f32 1.442695, %v3675_v28  ;;  %v3662_v49 = vpop.xlane.xlu1 %3661  ;;  %v3732_v46 = vsel %vm1580_vm2, %v12718_v53, 0.0  ;;  %v12208_v2 = vpack.c.bf16 %v2406_v9, %v2405_v12  ;;  %v1716_v22 = vsel %vm1580_vm2, %v13732_v35, 0.0 }
 0x548   : > { %12729 = vpow2.f32 %v3705_v8  ;;  %v3678_v0 = vsub.f32 %v14097_v31, %v3662_v49  ;;  %3733 = vadd.xlane.f32.xlu1 %v3732_v46  ;;  %11129 = vmatprep.mubr.msk.f32.mxu1 %vm1580_vm2, %v12720_v10  ;;  %v3659_v5 = vpop.xlane.xlu0 %3658  ;;  %v3729_v4 = vsel %vm1580_vm2, %v12720_v10, 0.0  ;;  %v1713_v28 = vsel %vm1580_vm2, %v13727_v24, 0.0  ;;  %v9593_v8 = vld [vmem:[%s15465_s7 + $0x20] sm:$0xff]  ;;  %v9594_v24 = vld [vmem:[%s15465_s7 + $0x28] sm:$0xff] }
 0x549   : > { %12731 = vpow2.f32 %v3703_v59  ;;  %v3677_v17 = vsub.f32 %v14099_v23, %v3659_v5  ;;  %11130 = vmatmul.mubr.msk.f32.vlgmr.msra.gmra.mrb[66].mxu1 %vm1580_vm2, %v12718_v53  ;;  %3730 = vadd.xlane.f32.xlu0 %v3729_v4  ;;  %v12212_v42 = vpack.c.bf16 %v2408_v30, %v2407_v34  ;;  %v1722_v53 = vsel %vm1580_vm2, %v13671_v58, 0.0  ;;  %v9595_v58 = vld [vmem:[%s15465_s7 + $0x30] sm:$0xff]  ;;  %v9629_v49 = vld [vmem:[%s15459_s1 + $0x100] sm:$0xff]  ;;  %v9630_v46 = vld [vmem:[%s15459_s1 + $0x108] sm:$0xff] }
 0x54a   : > { %v12722_v51 = vpop.eup %12721  ;;  %v3709_v45 = vmul.f32 1.442695, %v3678_v0  ;;  %12191 = vmatpush3.bf16.msra.mxu1 %v14026_v54  ;;  %v1719_v35 = vsel %vm1580_vm2, %v13669_v48, 0.0  ;;  %v12200_v10 = vpack.c.bf16 %v9594_v24, %v9593_v8  ;;  %v9596_v48 = vld [vmem:[%s15465_s7 + $0x38] sm:$0xff]  ;;  %v14225_v0 = vpack.c.bf16 %v9630_v46, %v9629_v49 }
 0x54b   : > { %v12724_v18 = vpop.eup %12723  ;;  %v3707_v61 = vmul.f32 1.442695, %v3677_v17  ;;  %12197 = vmatprep.subr.bf16.mxu1 %v14030_v47  ;;  %v3738_v31 = vsel %vm1580_vm2, %v12722_v51, 0.0  ;;  %v12204_v59 = vpack.c.bf16 %v9596_v48, %v9595_v58 }
 0x54c   : > { %12733 = vpow2.f32 %v3709_v45  ;;  %3739 = vadd.xlane.f32.xlu1 %v3738_v31  ;;  %11136 = vmatprep.mubr.msk.f32.mxu0 %vm1580_vm2, %v12724_v18  ;;  %v3735_v16 = vsel %vm1580_vm2, %v12724_v18, 0.0 }
 0x54d   : > { %12735 = vpow2.f32 %v3707_v61  ;;  %11137 = vmatmul.mubr.msk.f32.vlgmr.msra.gmra.mrb[84].mxu0 %vm1580_vm2, %v12722_v51  ;;  %3736 = vadd.xlane.f32.xlu0 %v3735_v16 }
 0x54e   : > { %v12726_v23 = vpop.eup %12725  ;;  %12195 = vmatpush3.bf16.msra.mxu0 %v14028_v13 }
 0x54f   : > { %v12728_v54 = vpop.eup %12727  ;;  %v3744_v27 = vsel %vm1580_vm2, %v12726_v23, 0.0  ;;  %12209 = vmatprep.subr.bf16.mxu0 %v12208_v2 }
 0x550   : > { %3745 = vadd.xlane.f32.xlu1 %v3744_v27  ;;  %11143 = vmatprep.mubr.msk.f32.mxu1 %vm1580_vm2, %v12728_v54  ;;  %v3741_v56 = vsel %vm1580_vm2, %v12728_v54, 0.0 }
 0x551   : > { %11144 = vmatmul.mubr.msk.f32.vlgmr.msra.gmra.mrb[68].mxu1 %vm1580_vm2, %v12726_v23  ;;  %3742 = vadd.xlane.f32.xlu0 %v3741_v56 }
 0x552   : > { %v12730_v19 = vpop.eup %12729  ;;  %12199 = vmatpush3.bf16.msra.mxu1 %v14030_v47 }
 0x553   : > { %v12732_v32 = vpop.eup %12731  ;;  %v3750_v55 = vsel %vm1580_vm2, %v12730_v19, 0.0  ;;  %12201 = vmatprep.subr.bf16.mxu1 %v12200_v10 }
 0x554   : > { %3751 = vadd.xlane.f32.xlu1 %v3750_v55  ;;  %11150 = vmatprep.mubr.msk.f32.mxu0 %vm1580_vm2, %v12732_v32  ;;  %v3747_v13 = vsel %vm1580_vm2, %v12732_v32, 0.0 }
 0x555   : > { %11151 = vmatmul.mubr.msk.f32.vlgmr.msra.gmra.mrb[86].mxu0 %vm1580_vm2, %v12730_v19  ;;  %3748 = vadd.xlane.f32.xlu0 %v3747_v13 }
 0x556   : > { %v12734_v20 = vpop.eup %12733  ;;  %12211 = vmatpush3.bf16.msra.mxu0 %v12208_v2  ;;  %v9669_v2 = vld [vmem:[%s15463_s5 + $0x120] sm:$0xff] }
 0x557   : > { %v12736_v44 = vpop.eup %12735  ;;  %v3756_v41 = vsel %vm1580_vm2, %v12734_v20, 0.0  ;;  %12213 = vmatprep.subr.bf16.mxu0 %v12212_v42 }
 0x558   : > { %3757 = vadd.xlane.f32.xlu1 %v3756_v41  ;;  %11157 = vmatprep.mubr.msk.f32.mxu1 %vm1580_vm2, %v12736_v44  ;;  %v3753_v47 = vsel %vm1580_vm2, %v12736_v44, 0.0 }
 0x559   : > { %11158 = vmatmul.mubr.msk.f32.vlgmr.msra.gmra.mrb[70].mxu1 %vm1580_vm2, %v12734_v20  ;;  %3754 = vadd.xlane.f32.xlu0 %v3753_v47 }
 0x55a   : > { %12215 = vmatpush3.bf16.msra.mxu0 %v12212_v42  ;;  %12203 = vmatpush3.bf16.msra.mxu1 %v12200_v10 }
 0x55b   : > { %12205 = vmatprep.subr.bf16.mxu1 %v12204_v59 }
 0x55c   : > { %1681 = vadd.xlane.f32.xlu1 %v1680_v11  ;;  %v9665_v11 = vld [vmem:[%s15463_s5 + $0x100] sm:$0xff] }
 0x55d   : > { %1678 = vadd.xlane.f32.xlu0 %v1677_v57  ;;  %v9666_v57 = vld [vmem:[%s15463_s5 + $0x108] sm:$0xff] }
 0x55e   : > { %12207 = vmatpush3.bf16.msra.mxu1 %v12204_v59 }
 0x55f   : > { %12217 = vmatprep.subr.bf16.mxu1 %v14225_v0 }
 0x560   : > { %1687 = vadd.xlane.f32.xlu1 %v1686_v25 }
 0x561   : > { %1684 = vadd.xlane.f32.xlu0 %v1683_v6  ;;  %v12280_v6 = vpack.c.bf16 %v9666_v57, %v9665_v11 }
 0x563   : > { %12281 = vmatprep.subr.bf16.mxu0 %v12280_v6 }
 0x564   : > { %1693 = vadd.xlane.f32.xlu1 %v1692_v50 }
 0x565   : > { %1690 = vadd.xlane.f32.xlu0 %v1689_v14  ;;  %v9667_v14 = vld [vmem:[%s15463_s5 + $0x110] sm:$0xff] }
 0x568   : > { %1699 = vadd.xlane.f32.xlu1 %v1698_v43  ;;  %v9668_v43 = vld [vmem:[%s15463_s5 + $0x118] sm:$0xff] }
 0x569   : > { %1696 = vadd.xlane.f32.xlu0 %v1695_v39  ;;  %v12284_v9 = vpack.c.bf16 %v9668_v43, %v9667_v14 }
 0x56c   : > { %1705 = vadd.xlane.f32.xlu1 %v1704_v37 }
 0x56d   : > { %1702 = vadd.xlane.f32.xlu0 %v1701_v7 }
 0x570   : > { %1711 = vadd.xlane.f32.xlu1 %v1710_v63 }
 0x571   : > { %1708 = vadd.xlane.f32.xlu0 %v1707_v38 }
 0x574   : > { %1717 = vadd.xlane.f32.xlu1 %v1716_v22  ;;  %v9670_v22 = vld [vmem:[%s15463_s5 + $0x128] sm:$0xff] }
 0x575   : > { %1714 = vadd.xlane.f32.xlu0 %v1713_v28  ;;  %v12288_v42 = vpack.c.bf16 %v9670_v22, %v9669_v2  ;;  %v15481_v2 = vld [vmem:[#allocation8_spill] sm:$0xff] }
 0x578   : > { %1723 = vadd.xlane.f32.xlu1 %v1722_v53 }
 0x579   : > { %1720 = vadd.xlane.f32.xlu0 %v1719_v35 }
 0x5bd   : > { %v3716_v5 = vpop.xlane.xlu1 %3715 }
 0x5be   : > { %v3713_v4 = vpop.xlane.xlu0 %3712 }
 0x5c5   : > { %v14228_v17 = vpop.xlane.xlu1 %3721 }
 0x5c6   : > { %v14230_v51 = vpop.xlane.xlu0 %3718 }
 0x5cd   : > { %v14232_v45 = vpop.xlane.xlu1 %3727 }
 0x5ce   : > { %v14234_v18 = vpop.xlane.xlu0 %3724 }
 0x5d5   : > { %v14236_v61 = vpop.xlane.xlu1 %3733 }
 0x5d6   : > { %v14238_v31 = vpop.xlane.xlu0 %3730 }
 0x5d9   : > { %v14240_v16 = vpop.xlane.xlu1 %3739 }
 0x5da   : > { %v14242_v23 = vpop.xlane.xlu0 %3736 }
 0x5dd   : > { %v14244_v54 = vpop.xlane.xlu1 %3745 }
 0x5de   : > { %v14246_v27 = vpop.xlane.xlu0 %3742 }
 0x5e1   : > { %v14248_v56 = vpop.xlane.xlu1 %3751 }
 0x5e2   : > { %v14250_v19 = vpop.xlane.xlu0 %3748 }
 0x5e5   : > { %v14252_v32 = vpop.xlane.xlu1 %3757 }
 0x5e6   : > { %v14254_v55 = vpop.xlane.xlu0 %3754 }
 0x5e9   : > { %v1682_v13 = vpop.xlane.xlu1 %1681 }
 0x5ea   : > { %12737 = vrcp.f32 %v1682_v13  ;;  %v1679_v20 = vpop.xlane.xlu0 %1678 }
 0x5eb   : > { %12739 = vrcp.f32 %v1679_v20 }
 0x5ed   : > { %v1688_v44 = vpop.xlane.xlu1 %1687 }
 0x5ee   : > { %12741 = vrcp.f32 %v1688_v44  ;;  %v1685_v41 = vpop.xlane.xlu0 %1684 }
 0x5ef   : > { %12743 = vrcp.f32 %v1685_v41 }
 0x5f1   : > { %v1694_v47 = vpop.xlane.xlu1 %1693 }
 0x5f2   : > { %12745 = vrcp.f32 %v1694_v47  ;;  %v1691_v25 = vpop.xlane.xlu0 %1690 }
 0x5f3   : > { %12747 = vrcp.f32 %v1691_v25 }
 0x5f4   : > { %v12738_v50 = vpop.eup %12737 }
 0x5f5   : > { %v12740_v39 = vpop.eup %12739  ;;  %v1700_v37 = vpop.xlane.xlu1 %1699  ;;  %v2390_v12 = vmul.f32 %v12738_v50, %v13897_v15  ;;  %v9634_v50 = vld [vmem:[%s15459_s1 + $0x128] sm:$0xff] }
 0x5f6   : > { %12749 = vrcp.f32 %v1700_v37  ;;  %v1697_v7 = vpop.xlane.xlu0 %1696  ;;  %v2389_v63 = vmul.f32 %v12740_v39, %v13899_v36 }
 0x5f7   : > { %12751 = vrcp.f32 %v1697_v7 }
 0x5f8   : > { %v12742_v38 = vpop.eup %12741  ;;  %11200 = vmatprep.mubr.msk.f32.mxu0 %vm883_vm0, %v2389_v63  ;;  %12753 = vrcp.f32 %v3713_v4  ;;  %v9631_v4 = vld [vmem:[%s15459_s1 + $0x110] sm:$0xff] }
 0x5f9   : > { %v12744_v34 = vpop.eup %12743  ;;  %v1706_v30 = vpop.xlane.xlu1 %1705  ;;  %11201 = vmatmul.mubr.msk.f32.vlgmr.msra.gmra.mrb[88].mxu0 %vm883_vm0, %v2390_v12  ;;  %v2392_v28 = vmul.f32 %v12742_v38, %v13893_v29  ;;  %v9635_v63 = vld [vmem:[%s15459_s1 + $0x130] sm:$0xff] }
 0x5fa   : > { %12755 = vrcp.f32 %v1706_v30  ;;  %v1703_v15 = vpop.xlane.xlu0 %1702  ;;  %v2391_v36 = vmul.f32 %v12744_v34, %v13895_v33  ;;  %12283 = vmatpush3.bf16.msra.mxu0 %v12280_v6  ;;  %v9633_v6 = vld [vmem:[%s15459_s1 + $0x120] sm:$0xff] }
 0x5fb   : > { %12757 = vrcp.f32 %v1703_v15  ;;  %12285 = vmatprep.subr.bf16.mxu0 %v12284_v9  ;;  %v12224_v39 = vpack.c.bf16 %v9634_v50, %v9633_v6  ;;  %v9637_v15 = vld [vmem:[%s15459_s1 + $0x140] sm:$0xff] }
 0x5fc   : > { %v12746_v53 = vpop.eup %12745  ;;  %12759 = vrcp.f32 %v3716_v5  ;;  %11203 = vmatprep.mubr.msk.f32.mxu0 %vm883_vm0, %v2391_v36  ;;  %v9638_v36 = vld [vmem:[%s15459_s1 + $0x148] sm:$0xff] }
 0x5fd   : > { %v12748_v35 = vpop.eup %12747  ;;  %v1712_v8 = vpop.xlane.xlu1 %1711  ;;  %11204 = vmatmul.mubr.msk.f32.gmra.mrb[90].mxu0 %vm883_vm0, %v2392_v28  ;;  %v2394_v33 = vmul.f32 %v12746_v53, %v13913_v60 }
 0x5fe   : > { %12761 = vrcp.f32 %v1712_v8  ;;  %v1709_v24 = vpop.xlane.xlu0 %1708  ;;  %v2393_v10 = vmul.f32 %v12748_v35, %v13915_v62  ;;  %12287 = vmatpush3.bf16.msra.mxu0 %v12284_v9  ;;  %v15480_v9 = vld [vmem:[#allocation9_spill] sm:$0xff]  ;;  %v15483_v35 = vld [vmem:[#allocation6_spill] sm:$0xff] }
 0x5ff   : > { %12763 = vrcp.f32 %v1709_v24  ;;  %12289 = vmatprep.subr.bf16.mxu0 %v12288_v42  ;;  %v12232_v24 = vpack.c.bf16 %v9638_v36, %v9637_v15  ;;  %v9653_v36 = vld [vmem:[%s15461_s3 + $0x130] sm:$0xff] }
 0x600   : > { %v12750_v29 = vpop.eup %12749  ;;  %11206 = vmatprep.mubr.msk.f32.mxu0 %vm883_vm0, %v2393_v10  ;;  %12765 = vrcp.f32 %v14230_v51  ;;  %v9632_v51 = vld [vmem:[%s15459_s1 + $0x118] sm:$0xff] }
 0x601   : > { %v12752_v58 = vpop.eup %12751  ;;  %v1718_v48 = vpop.xlane.xlu1 %1717  ;;  %11207 = vmatmul.mubr.msk.f32.gmra.mrb[92].mxu0 %vm883_vm0, %v2394_v33  ;;  %v2396_v46 = vmul.f32 %v12750_v29, %v13901_v40  ;;  %v12220_v57 = vpack.c.bf16 %v9632_v51, %v9631_v4  ;;  %v9639_v33 = vld [vmem:[%s15459_s1 + $0x150] sm:$0xff]  ;;  %v9640_v29 = vld [vmem:[%s15459_s1 + $0x158] sm:$0xff] }
 0x602   : > { %12767 = vrcp.f32 %v1718_v48  ;;  %v1715_v59 = vpop.xlane.xlu0 %1714  ;;  %v2395_v49 = vmul.f32 %v12752_v58, %v13903_v21  ;;  %12291 = vmatpush3.bf16.msra.mxu0 %v12288_v42  ;;  %v12754_v62 = vpop.eup %12753  ;;  %v15482_v42 = vld [vmem:[#allocation7_spill] sm:$0xff]  ;;  %v9644_v4 = vld [vmem:[%s15459_s1 + $0x178] sm:$0xff] }
 0x603   : > { %12769 = vrcp.f32 %v1715_v59 }
 0x604   : > { %v12756_v60 = vpop.eup %12755  ;;  %12771 = vrcp.f32 %v14228_v17  ;;  %11209 = vmatprep.mubr.msk.f32.mxu0 %vm883_vm0, %v2395_v49  ;;  %v11110_v5 = vpop.f32.mrb[80].mxu0  ;;  %v14348_v49 = vld [vmem:[%s13199_s26] sm:$0xff] }
 0x605   : > { %v12758_v21 = vpop.eup %12757  ;;  %v1724_v13 = vpop.xlane.xlu1 %1723  ;;  %11210 = vmatmul.mubr.msk.f32.gmra.mrb[94].mxu0 %vm883_vm0, %v2396_v46  ;;  %v2398_v11 = vmul.f32 %v12756_v60, %v13917_v1  ;;  %v9641_v46 = vld [vmem:[%s15459_s1 + $0x160] sm:$0xff]  ;;  %v9642_v60 = vld [vmem:[%s15459_s1 + $0x168] sm:$0xff] }
 0x606   : > { %v3831_v20 = vpop.f32.mrb[81].mxu0  ;;  %v12760_v40 = vpop.eup %12759  ;;  %12773 = vrcp.f32 %v1724_v13  ;;  %v2397_v41 = vmul.f32 %v12758_v21, %v13919_v3 }
 0x607   : > { %v4423_v44 = vmul.f32 %v12754_v62, %v3831_v20  ;;  %v1721_v17 = vpop.xlane.xlu0 %1720  ;;  %v4424_v47 = vmul.f32 %v12760_v40, %v11110_v5  ;;  %v12236_v62 = vpack.c.bf16 %v9640_v29, %v9639_v33  ;;  %v9643_v5 = vld [vmem:[%s15459_s1 + $0x170] sm:$0xff] }
 0x608   : > { %12775 = vrcp.f32 %v1721_v17  ;;  %v12762_v25 = vpop.eup %12761  ;;  %11212 = vmatprep.mubr.msk.f32.mxu0 %vm883_vm0, %v2397_v41  ;;  %v12244_v40 = vpack.c.bf16 %v9644_v4, %v9643_v5  ;;  %v9648_v17 = vld [vmem:[%s15461_s3 + $0x108] sm:$0xff]  ;;  %v14435_v33 = vld [vmem:[%s13199_s26 + $0x30] sm:$0xff]  ;;  %v9662_v4 = vld [vmem:[%s15461_s3 + $0x178] sm:$0xff] }
 0x609   : > { %11168 = vmatprep.mubr.msk.f32.mxu1 %vm883_vm0, %v4423_v44  ;;  %v12764_v14 = vpop.eup %12763  ;;  %11213 = vmatmul.mubr.msk.f32.gmra.mrb[96].mxu0 %vm883_vm0, %v2398_v11  ;;  %12777 = vrcp.f32 %v14234_v18  ;;  %v2400_v43 = vmul.f32 %v12762_v25, %v13905_v26  ;;  %v9647_v44 = vld [vmem:[%s15461_s3 + $0x100] sm:$0xff]  ;;  %v9661_v5 = vld [vmem:[%s15461_s3 + $0x170] sm:$0xff] }
 0x60a   : > { %11169 = vmatmul.mubr.msk.f32.vlgmr.msra.gmra.mrb[72].mxu1 %vm883_vm0, %v4424_v47  ;;  %v2399_v1 = vmul.f32 %v12764_v14, %v13907_v52  ;;  %v12766_v3 = vpop.eup %12765  ;;  %12779 = vrcp.f32 %v14232_v45  ;;  %v9636_v52 = vld [vmem:[%s15459_s1 + $0x138] sm:$0xff] }
 0x60b   : > { %12219 = vmatpush3.bf16.msra.mxu1 %v14225_v0  ;;  %v12228_v34 = vpack.c.bf16 %v9636_v52, %v9635_v63  ;;  %12781 = vrcp.f32 %v14238_v31 }
 0x60c   : > { %12221 = vmatprep.subr.bf16.mxu1 %v12220_v57  ;;  %v12768_v37 = vpop.eup %12767  ;;  %v11117_v7 = vpop.f32.mrb[64].mxu1  ;;  %11215 = vmatprep.mubr.msk.f32.mxu0 %vm883_vm0, %v2399_v1  ;;  %12783 = vrcp.f32 %v14236_v61 }
 0x60d   : > { %v12770_v0 = vpop.eup %12769  ;;  %v3912_v18 = vpop.f32.mrb[65].mxu1  ;;  %11216 = vmatmul.mubr.msk.f32.gmra.mrb[98].mxu0 %vm883_vm0, %v2400_v43  ;;  %v2402_v22 = vmul.f32 %v12768_v37, %v15481_v2  ;;  %12785 = vrcp.f32 %v14242_v23  ;;  %v12240_v23 = vpack.c.bf16 %v9642_v60, %v9641_v46  ;;  %v9651_v2 = vld [vmem:[%s15461_s3 + $0x120] sm:$0xff]  ;;  %v9660_v46 = vld [vmem:[%s15461_s3 + $0x168] sm:$0xff] }
 0x60e   : > { %v12772_v26 = vpop.eup %12771  ;;  %v4425_v12 = vmul.f32 %v12766_v3, %v3912_v18  ;;  %v2401_v38 = vmul.f32 %v12770_v0, %v15480_v9  ;;  %12787 = vrcp.f32 %v14240_v16  ;;  %v9649_v9 = vld [vmem:[%s15461_s3 + $0x110] sm:$0xff]  ;;  %v14459_v60 = vld [vmem:[%s13199_s26 + $0x48] sm:$0xff] }
 0x60f   : > { %12223 = vmatpush3.bf16.msra.mxu1 %v12220_v57  ;;  %v4426_v45 = vmul.f32 %v12772_v26, %v11117_v7  ;;  %12789 = vrcp.f32 %v14246_v27  ;;  %v12248_v57 = vpack.c.bf16 %v9648_v17, %v9647_v44  ;;  %v9672_v44 = vld [vmem:[%s15463_s5 + $0x138] sm:$0xff] }
 0x610   : > { %12225 = vmatprep.subr.bf16.mxu1 %v12224_v39  ;;  %v12774_v30 = vpop.eup %12773  ;;  %11171 = vmatprep.mubr.msk.f32.mxu1 %vm883_vm0, %v4425_v12  ;;  %12791 = vrcp.f32 %v14244_v54 }
 0x611   : > { %11218 = vmatprep.mubr.msk.f32.mxu0 %vm883_vm0, %v2401_v38  ;;  %11172 = vmatmul.mubr.msk.f32.gmra.mrb[74].mxu1 %vm883_vm0, %v4426_v45  ;;  %v2404_v8 = vmul.f32 %v12774_v30, %v15483_v35  ;;  %12793 = vrcp.f32 %v14250_v19  ;;  %v9650_v38 = vld [vmem:[%s15461_s3 + $0x118] sm:$0xff]  ;;  %v14407_v30 = vld [vmem:[%s13199_s26 + $0x10] sm:$0xff] }
 0x612   : > { %v12776_v28 = vpop.eup %12775  ;;  %11219 = vmatmul.mubr.msk.f32.gmra.mrb[100].mxu0 %vm883_vm0, %v2402_v22  ;;  %12795 = vrcp.f32 %v14248_v56  ;;  %v12252_v45 = vpack.c.bf16 %v9650_v38, %v9649_v9  ;;  %v9652_v22 = vld [vmem:[%s15461_s3 + $0x128] sm:$0xff] }
 0x613   : > { %v2403_v53 = vmul.f32 %v12776_v28, %v15482_v42  ;;  %12227 = vmatpush3.bf16.msra.mxu1 %v12224_v39  ;;  %v12778_v58 = vpop.eup %12777  ;;  %12797 = vrcp.f32 %v14254_v55  ;;  %v12256_v15 = vpack.c.bf16 %v9652_v22, %v9651_v2  ;;  %v9654_v28 = vld [vmem:[%s15461_s3 + $0x138] sm:$0xff]  ;;  %v14573_v2 = vld [vmem:[%s15460_s2 + $0x2] ss:$0 sm:$0xff] }
 0x614   : > { %12229 = vmatprep.subr.bf16.mxu1 %v12228_v34  ;;  %v11124_v10 = vpop.f32.mrb[82].mxu0  ;;  %v12780_v31 = vpop.eup %12779  ;;  %12799 = vrcp.f32 %v14252_v32  ;;  %v14417_v42 = vld [vmem:[%s13199_s26 + $0x18] sm:$0xff]  ;;  %v12260_v35 = vpack.c.bf16 %v9654_v28, %v9653_v36 }
 0x615   : > { %11221 = vmatprep.mubr.msk.f32.mxu0 %vm883_vm0, %v2403_v53  ;;  %v3993_v48 = vpop.f32.mrb[83].mxu0  ;;  %v4428_v61 = vmul.f32 %v12780_v31, %v11124_v10  ;;  %v12782_v51 = vpop.eup %12781  ;;  %v14421_v53 = vld [vmem:[%s13199_s26 + $0x20] sm:$0xff]  ;;  %v14431_v10 = vld [vmem:[%s13199_s26 + $0x28] sm:$0xff]  ;;  %v14445_v31 = vld [vmem:[%s13199_s26 + $0x38] sm:$0xff] }
 0x616   : > { %11222 = vmatmul.mubr.msk.f32.gmra.mrb[102].mxu0 %vm883_vm0, %v2404_v8  ;;  %v4427_v59 = vmul.f32 %v12778_v58, %v3993_v48  ;;  %v12784_v13 = vpop.eup %12783  ;;  %v9655_v8 = vld [vmem:[%s15461_s3 + $0x140] sm:$0xff]  ;;  %v9657_v58 = vld [vmem:[%s15461_s3 + $0x150] sm:$0xff]  ;;  %v9658_v48 = vld [vmem:[%s15461_s3 + $0x158] sm:$0xff] }
 0x617   : > { %12231 = vmatpush3.bf16.msra.mxu1 %v12228_v34  ;;  %11368 = vmatprep.mubr.f32.mxu0 %v14348_v49  ;;  %v12786_v41 = vpop.eup %12785  ;;  %v14403_v34 = vld [vmem:[%s13199_s26 + $0x8] sm:$0xff] }
 0x618   : > { %12233 = vmatprep.subr.bf16.mxu1 %v12232_v24  ;;  %11174 = vmatprep.mubr.msk.f32.mxu1 %vm883_vm0, %v4427_v59  ;;  %v12788_v19 = vpop.eup %12787  ;;  %v14449_v59 = vld [vmem:[%s13199_s26 + $0x40] sm:$0xff] }
 0x619   : > { %11175 = vmatmul.mubr.msk.f32.gmra.mrb[76].mxu1 %vm883_vm0, %v4428_v61  ;;  %v12790_v6 = vpop.eup %12789  ;;  %v12268_v61 = vpack.c.bf16 %v9658_v48, %v9657_v58 }
 0x61a   : > { %v12792_v14 = vpop.eup %12791 }
 0x61b   : > { %12235 = vmatpush3.bf16.msra.mxu1 %v12232_v24  ;;  %v12794_v55 = vpop.eup %12793  ;;  %v9656_v24 = vld [vmem:[%s15461_s3 + $0x148] sm:$0xff] }
 0x61c   : > { %12237 = vmatprep.subr.bf16.mxu1 %v12236_v62  ;;  %v11131_v16 = vpop.f32.mrb[66].mxu1  ;;  %v12796_v32 = vpop.eup %12795  ;;  %v12264_v29 = vpack.c.bf16 %v9656_v24, %v9655_v8 }
 0x61d   : > { %v4074_v21 = vpop.f32.mrb[67].mxu1  ;;  %v4430_v27 = vmul.f32 %v12784_v13, %v11131_v16  ;;  %v12798_v52 = vpop.eup %12797  ;;  %v12276_v13 = vpack.c.bf16 %v9662_v4, %v9661_v5 }
 0x61e   : > { %v4429_v20 = vmul.f32 %v12782_v51, %v4074_v21  ;;  %v12800_v18 = vpop.eup %12799  ;;  %v14473_v51 = vld [vmem:[%s13199_s26 + $0x58] sm:$0xff]  ;;  %v14477_v21 = vld [vmem:[%s13199_s26 + $0x60] sm:$0xff] }
 0x61f   : > { %12239 = vmatpush3.bf16.msra.mxu1 %v12236_v62  ;;  %v9659_v62 = vld [vmem:[%s15461_s3 + $0x160] sm:$0xff] }
 0x620   : > { %12241 = vmatprep.subr.bf16.mxu1 %v12240_v23  ;;  %v11138_v54 = vpop.f32.mrb[84].mxu0  ;;  %11177 = vmatprep.mubr.msk.f32.mxu1 %vm883_vm0, %v4429_v20  ;;  %v12272_v16 = vpack.c.bf16 %v9660_v46, %v9659_v62  ;;  %v12960_v20 = vld [vmem:[%s13199_s26 + $0x68] sm:$0xff]  ;;  %v14598_v46 = vld [vmem:[%s15462_s4 + $0x2] ss:$0 sm:$0xff] }
 0x621   : > { %v4155_v47 = vpop.f32.mrb[85].mxu0  ;;  %11178 = vmatmul.mubr.msk.f32.gmra.mrb[78].mxu1 %vm883_vm0, %v4430_v27  ;;  %v4432_v56 = vmul.f32 %v12788_v19, %v11138_v54  ;;  %v12961_v27 = vld [vmem:[%s13199_s26 + $0x70] sm:$0xff] }
 0x622   : > { %v4431_v11 = vmul.f32 %v12786_v41, %v4155_v47  ;;  %v9671_v54 = vld [vmem:[%s15463_s5 + $0x130] sm:$0xff]  ;;  %v9674_v41 = vld [vmem:[%s15463_s5 + $0x148] sm:$0xff] }
 0x623   : > { %12243 = vmatpush3.bf16.msra.mxu1 %v12240_v23  ;;  %v14463_v23 = vld [vmem:[%s13199_s26 + $0x50] sm:$0xff]  ;;  %v12292_v17 = vpack.c.bf16 %v9672_v44, %v9671_v54 }
 0x624   : > { %12245 = vmatprep.subr.bf16.mxu1 %v12244_v40  ;;  %v11145_v25 = vpop.f32.mrb[68].mxu1  ;;  %11180 = vmatprep.mubr.msk.f32.mxu1 %vm883_vm0, %v4431_v11  ;;  %v9675_v19 = vld [vmem:[%s15463_s5 + $0x150] sm:$0xff]  ;;  %v9676_v11 = vld [vmem:[%s15463_s5 + $0x158] sm:$0xff] }
 0x625   : > { %v4236_v50 = vpop.f32.mrb[69].mxu1  ;;  %11181 = vmatmul.mubr.msk.f32.gmra.mrb[80].mxu1 %vm883_vm0, %v4432_v56  ;;  %v4434_v3 = vmul.f32 %v12792_v14, %v11145_v25  ;;  %12293 = vmatprep.subr.bf16.mxu0 %v12292_v17  ;;  %v9677_v56 = vld [vmem:[%s15463_s5 + $0x160] sm:$0xff]  ;;  %v9678_v25 = vld [vmem:[%s15463_s5 + $0x168] sm:$0xff]  ;;  %v9680_v14 = vld [vmem:[%s15463_s5 + $0x178] sm:$0xff] }
 0x626   : > { %v4433_v1 = vmul.f32 %v12790_v6, %v4236_v50  ;;  %12295 = vmatpush3.bf16.msra.mxu0 %v12292_v17  ;;  %v12304_v6 = vpack.c.bf16 %v9678_v25, %v9677_v56  ;;  %v9679_v50 = vld [vmem:[%s15463_s5 + $0x170] sm:$0xff] }
 0x627   : > { %12247 = vmatpush3.bf16.msra.mxu1 %v12244_v40  ;;  %v12962_v40 = vld [vmem:[%s13199_s26 + $0x78] sm:$0xff] }
 0x628   : > { %12249 = vmatprep.subr.bf16.mxu1 %v12248_v57  ;;  %v11152_v43 = vpop.f32.mrb[86].mxu0  ;;  %11183 = vmatprep.mubr.msk.f32.mxu1 %vm883_vm0, %v4433_v1  ;;  %v12308_v1 = vpack.c.bf16 %v9680_v14, %v9679_v50 }
 0x629   : > { %v4317_v39 = vpop.f32.mrb[87].mxu0  ;;  %11184 = vmatmul.mubr.msk.f32.gmra.mrb[82].mxu1 %vm883_vm0, %v4434_v3  ;;  %v4436_v7 = vmul.f32 %v12796_v32, %v11152_v43 }
 0x62a   : > { %v4435_v37 = vmul.f32 %v12794_v55, %v4317_v39 }
 0x62c   : > { %v11159_v63 = vpop.f32.mrb[70].mxu1  ;;  %11186 = vmatprep.mubr.msk.f32.mxu1 %vm883_vm0, %v4435_v37 }
 0x62d   : > { %v4398_v0 = vpop.f32.mrb[71].mxu1  ;;  %11187 = vmatmul.mubr.msk.f32.gmra.mrb[84].mxu1 %vm883_vm0, %v4436_v7  ;;  %v4438_v12 = vmul.f32 %v12800_v18, %v11159_v63 }
 0x62e   : > { %v4437_v26 = vmul.f32 %v12798_v52, %v4398_v0 }
 0x630   : > { %11189 = vmatprep.mubr.msk.f32.mxu1 %vm883_vm0, %v4437_v26 }
 0x631   : > { %11190 = vmatmul.mubr.msk.f32.gmra.mrb[86].mxu1 %vm883_vm0, %v4438_v12 }
 0x632   : > { %11256 = vmatprep.mubr.f32.mxu1 %v14348_v49 }
 0x635   : > { %11257 = vmatmul.mubr.f32.vlgmr.msra.gmra.mrb[88].mxu1 %v14403_v34 }
 0x636   : > { %12251 = vmatpush3.bf16.msra.mxu1 %v12248_v57  ;;  %11259 = vmatprep.mubr.f32.mxu1 %v14407_v30  ;;  %v12300_v57 = vpack.c.bf16 %v9676_v11, %v9675_v19 }
 0x637   : > { %12253 = vmatprep.subr.bf16.mxu1 %v12252_v45 }
 0x639   : > { %11260 = vmatmul.mubr.f32.gmra.mrb[90].mxu1 %v14417_v42 }
 0x63a   : > { %12255 = vmatpush3.bf16.msra.mxu1 %v12252_v45  ;;  %11262 = vmatprep.mubr.f32.mxu1 %v14421_v53 }
 0x63b   : > { %12257 = vmatprep.subr.bf16.mxu1 %v12256_v15 }
 0x63d   : > { %11263 = vmatmul.mubr.f32.gmra.mrb[92].mxu1 %v14431_v10 }
 0x63e   : > { %12259 = vmatpush3.bf16.msra.mxu1 %v12256_v15  ;;  %11265 = vmatprep.mubr.f32.mxu1 %v14435_v33 }
 0x63f   : > { %12261 = vmatprep.subr.bf16.mxu1 %v12260_v35 }
 0x641   : > { %11266 = vmatmul.mubr.f32.gmra.mrb[94].mxu1 %v14445_v31 }
 0x642   : > { %12263 = vmatpush3.bf16.msra.mxu1 %v12260_v35  ;;  %11268 = vmatprep.mubr.f32.mxu1 %v14449_v59 }
 0x643   : > { %12265 = vmatprep.subr.bf16.mxu1 %v12264_v29 }
 0x645   : > { %11269 = vmatmul.mubr.f32.gmra.mrb[96].mxu1 %v14459_v60 }
 0x646   : > { %12267 = vmatpush3.bf16.msra.mxu1 %v12264_v29  ;;  %11271 = vmatprep.mubr.f32.mxu1 %v14463_v23 }
 0x647   : > { %12269 = vmatprep.subr.bf16.mxu1 %v12268_v61 }
 0x649   : > { %11272 = vmatmul.mubr.f32.gmra.mrb[98].mxu1 %v14473_v51 }
 0x64a   : > { %12271 = vmatpush3.bf16.msra.mxu1 %v12268_v61  ;;  %11274 = vmatprep.mubr.f32.mxu1 %v14477_v21 }
 0x64b   : > { %12273 = vmatprep.subr.bf16.mxu1 %v12272_v16 }
 0x64d   : > { %11275 = vmatmul.mubr.f32.gmra.mrb[100].mxu1 %v12960_v20 }
 0x64e   : > { %12275 = vmatpush3.bf16.msra.mxu1 %v12272_v16  ;;  %11277 = vmatprep.mubr.f32.mxu1 %v12961_v27 }
 0x64f   : > { %12277 = vmatprep.subr.bf16.mxu1 %v12276_v13 }
 0x651   : > { %11278 = vmatmul.mubr.f32.gmra.mrb[102].mxu1 %v12962_v40 }
 0x652   : > { %12279 = vmatpush3.bf16.msra.mxu1 %v12276_v13  ;;  %11312 = vmatprep.mubr.f32.mxu1 %v14348_v49  ;;  %v9673_v49 = vld [vmem:[%s15463_s5 + $0x140] sm:$0xff] }
 0x653   : > { %v12296_v47 = vpack.c.bf16 %v9674_v41, %v9673_v49 }
 0x655   : > { %11313 = vmatmul.mubr.f32.vlgmr.msra.gmra.mrb[104].mxu1 %v14403_v34  ;;  %12297 = vmatprep.subr.bf16.mxu0 %v12296_v47 }
 0x656   : > { %11315 = vmatprep.mubr.f32.mxu1 %v14407_v30  ;;  %12299 = vmatpush3.bf16.msra.mxu0 %v12296_v47 }
 0x657   : > { %12301 = vmatprep.subr.bf16.mxu0 %v12300_v57 }
 0x659   : > { %11316 = vmatmul.mubr.f32.gmra.mrb[106].mxu1 %v14417_v42 }
 0x65a   : > { %11318 = vmatprep.mubr.f32.mxu1 %v14421_v53  ;;  %12303 = vmatpush3.bf16.msra.mxu0 %v12300_v57 }
 0x65b   : > { %12305 = vmatprep.subr.bf16.mxu0 %v12304_v6 }
 0x65d   : > { %11319 = vmatmul.mubr.f32.gmra.mrb[108].mxu1 %v14431_v10 }
 0x65e   : > { %11321 = vmatprep.mubr.f32.mxu1 %v14435_v33  ;;  %12307 = vmatpush3.bf16.msra.mxu0 %v12304_v6 }
 0x65f   : > { %12309 = vmatprep.subr.bf16.mxu0 %v12308_v1 }
 0x661   : > { %11322 = vmatmul.mubr.f32.gmra.mrb[110].mxu1 %v14445_v31 }
 0x662   : > { %11324 = vmatprep.mubr.f32.mxu1 %v14449_v59  ;;  %12311 = vmatpush3.bf16.msra.mxu0 %v12308_v1 }
 0x665   : > { %11325 = vmatmul.mubr.f32.gmra.mrb[112].mxu1 %v14459_v60  ;;  %11369 = vmatmul.mubr.f32.vlgmr.msra.gmra.mrb[104].mxu0 %v14403_v34 }
 0x666   : > { %11327 = vmatprep.mubr.f32.mxu1 %v14463_v23  ;;  %11371 = vmatprep.mubr.f32.mxu0 %v14407_v30 }
 0x669   : > { %11328 = vmatmul.mubr.f32.gmra.mrb[114].mxu1 %v14473_v51  ;;  %11372 = vmatmul.mubr.f32.gmra.mrb[106].mxu0 %v14417_v42 }
 0x66a   : > { %11330 = vmatprep.mubr.f32.mxu1 %v14477_v21  ;;  %11374 = vmatprep.mubr.f32.mxu0 %v14421_v53 }
 0x66d   : > { %11331 = vmatmul.mubr.f32.gmra.mrb[116].mxu1 %v12960_v20  ;;  %11375 = vmatmul.mubr.f32.gmra.mrb[108].mxu0 %v14431_v10 }
 0x66e   : > { %11333 = vmatprep.mubr.f32.mxu1 %v12961_v27  ;;  %11377 = vmatprep.mubr.f32.mxu0 %v14435_v33 }
 0x671   : > { %11334 = vmatmul.mubr.f32.gmra.mrb[118].mxu1 %v12962_v40  ;;  %11378 = vmatmul.mubr.f32.gmra.mrb[110].mxu0 %v14445_v31 }
 0x672   : > { %11380 = vmatprep.mubr.f32.mxu0 %v14449_v59 }
 0x675   : > { %11381 = vmatmul.mubr.f32.gmra.mrb[112].mxu0 %v14459_v60 }
 0x676   : > { %11383 = vmatprep.mubr.f32.mxu0 %v14463_v23 }
 0x679   : > { %11384 = vmatmul.mubr.f32.gmra.mrb[114].mxu0 %v14473_v51 }
 0x67a   : > { %11386 = vmatprep.mubr.f32.mxu0 %v14477_v21 }
 0x67d   : > { %11387 = vmatmul.mubr.f32.gmra.mrb[116].mxu0 %v12960_v20 }
 0x67e   : > { %11389 = vmatprep.mubr.f32.mxu0 %v12961_v27 }
 0x681   : > { %11390 = vmatmul.mubr.f32.gmra.mrb[118].mxu0 %v12962_v40 }
 0x6dd   : > { %v14538_v3 = vpop.f32.mrb[72].mxu1 }
 0x6de   : > { %v14540_v43 = vpop.f32.mrb[73].mxu1 }
 0x6e4   : > { %v14542_v55 = vpop.f32.mrb[74].mxu1 }
 0x6e5   : > { %v14544_v39 = vpop.f32.mrb[75].mxu1 }
 0x6ec   : > { %v14546_v32 = vpop.f32.mrb[76].mxu1 }
 0x6ed   : > { %v14548_v37 = vpop.f32.mrb[77].mxu1 }
 0x6f4   : > { %v14550_v7 = vpop.f32.mrb[78].mxu1 }
 0x6f5   : > { %v14552_v63 = vpop.f32.mrb[79].mxu1 }
 0x6f8   : > { %v14554_v52 = vpop.f32.mrb[80].mxu1 }
 0x6f9   : > { %v14556_v0 = vpop.f32.mrb[81].mxu1 }
 0x6fc   : > { %v14558_v18 = vpop.f32.mrb[82].mxu1 }
 0x6fd   : > { %v14560_v26 = vpop.f32.mrb[83].mxu1 }
 0x700   : > { %v14562_v12 = vpop.f32.mrb[84].mxu1 }
 0x701   : > { %v14564_v9 = vpop.f32.mrb[85].mxu1 }
 0x704   : > { %v14566_v38 = vpop.f32.mrb[86].mxu1 }
 0x705   : > { %v14568_v45 = vpop.f32.mrb[87].mxu1 }
 0x708   : > { %v11258_v22 = vpop.f32.mrb[88].mxu1 }
 0x709   : > { %v4921_v34 = vpop.f32.mrb[89].mxu1  ;;  %v4927_v56 = vadd.f32 %v11258_v22, %v14573_v2 }
 0x70a   : > { %v4922_v30 = vadd.f32 %v14573_v2, %v4921_v34 }
 0x70c   : > { %v11261_v15 = vpop.f32.mrb[90].mxu1  ;;  %11396 = vmatprep.mubr.msk.f32.mxu1 %vm883_vm0, %v4922_v30 }
 0x70d   : > { %v4931_v36 = vpop.f32.mrb[91].mxu1  ;;  %v4937_v22 = vadd.f32 %v11261_v15, %v14573_v2 }
 0x70e   : > { %v4932_v28 = vadd.f32 %v14573_v2, %v4931_v36 }
 0x710   : > { %v11264_v42 = vpop.f32.mrb[92].mxu1  ;;  %11403 = vmatprep.mubr.msk.f32.mxu0 %vm883_vm0, %v4932_v28 }
 0x711   : > { %v4941_v53 = vpop.f32.mrb[93].mxu1  ;;  %v4947_v15 = vadd.f32 %v11264_v42, %v14573_v2 }
 0x712   : > { %v4942_v6 = vadd.f32 %v14573_v2, %v4941_v53 }
 0x714   : > { %v14579_v35 = vpop.f32.mrb[94].mxu1 }
 0x715   : > { %v4951_v8 = vpop.f32.mrb[95].mxu1  ;;  %v4957_v42 = vadd.f32 %v14579_v35, %v14573_v2 }
 0x716   : > { %v4952_v36 = vadd.f32 %v14573_v2, %v4951_v8 }
 0x718   : > { %v14581_v24 = vpop.f32.mrb[96].mxu1 }
 0x719   : > { %v4961_v10 = vpop.f32.mrb[97].mxu1  ;;  %v4967_v35 = vadd.f32 %v14581_v24, %v14573_v2 }
 0x71a   : > { %v4962_v8 = vadd.f32 %v14573_v2, %v4961_v10 }
 0x71c   : > { %v14583_v33 = vpop.f32.mrb[98].mxu1 }
 0x71d   : > { %v4971_v29 = vpop.f32.mrb[99].mxu1 }
 0x720   : > { %v11276_v58 = vpop.f32.mrb[100].mxu1 }
 0x721   : > { %v14586_v48 = vadd.f32 %v11276_v58, %v14573_v2  ;;  %v14588_v31 = vpop.f32.mrb[101].mxu1 }
 0x724   : > { %v11279_v59 = vpop.f32.mrb[102].mxu1 }
 0x725   : > { %v14591_v61 = vadd.f32 %v11279_v59, %v14573_v2  ;;  %v14593_v62 = vpop.f32.mrb[103].mxu1 }
 0x728   : > { %v11314_v16 = vpop.f32.mrb[104].mxu1 }
 0x729   : > { %v5097_v5 = vadd.f32 %v11314_v16, %v14598_v46  ;;  %v5091_v4 = vpop.f32.mrb[105].mxu1 }
 0x72a   : > { %v5092_v13 = vadd.f32 %v14598_v46, %v5091_v4 }
 0x72c   : > { %v12312_v20 = vpack.c.bf16 %v5097_v5, %v5092_v13  ;;  %v11317_v27 = vpop.f32.mrb[106].mxu1 }
 0x72d   : > { %v5107_v40 = vadd.f32 %v11317_v27, %v14598_v46  ;;  %v5101_v54 = vpop.f32.mrb[107].mxu1  ;;  %v4972_v27 = vadd.f32 %v14573_v2, %v4971_v29 }
 0x72e   : > { %v5102_v44 = vadd.f32 %v14598_v46, %v5101_v54  ;;  %12314 = vmatprep.subr.msk.bf16.mxu1 %vm13413_vm1, %v12312_v20 }
 0x72f   : > { %12317 = vmatpush3.bf16.xpose.msk.msra.mxu1 %vm13413_vm1, %v12312_v20 }
 0x730   : > { %v12318_v17 = vpack.c.bf16 %v5107_v40, %v5102_v44  ;;  %v11320_v41 = vpop.f32.mrb[108].mxu1 }
 0x731   : > { %v5117_v47 = vadd.f32 %v11320_v41, %v14598_v46  ;;  %v5111_v19 = vpop.f32.mrb[109].mxu1  ;;  %v4982_v41 = vadd.f32 %v14573_v2, %v14588_v31  ;;  %v4977_v31 = vadd.f32 %v14583_v33, %v14573_v2 }
 0x732   : > { %v5112_v11 = vadd.f32 %v14598_v46, %v5111_v19  ;;  %12320 = vmatprep.subr.msk.bf16.mxu0 %vm13413_vm1, %v12318_v17 }
 0x733   : > { %12323 = vmatpush3.bf16.xpose.msk.msra.mxu0 %vm13413_vm1, %v12318_v17 }
 0x734   : > { %v12324_v57 = vpack.c.bf16 %v5117_v47, %v5112_v11  ;;  %v11323_v25 = vpop.f32.mrb[110].mxu1  ;;  %v9682_v11 = vld [vmem:[%s15464_s6 + $0x2] ss:$0 sm:$0xff] }
 0x735   : > { %v5127_v50 = vadd.f32 %v11323_v25, %v14598_v46  ;;  %v5121_v14 = vpop.f32.mrb[111].mxu1 }
 0x736   : > { %v5122_v1 = vadd.f32 %v14598_v46, %v5121_v14  ;;  %11397 = vmatmul.mubr.msk.f32.vlgmr.msra.gmra.mrb[120].mxu1 %vm883_vm0, %v4927_v56  ;;  %12326 = vmatprep.subr.msk.bf16.mxu1 %vm13413_vm1, %v12324_v57 }
 0x737   : > { %12329 = vmatpush3.bf16.xpose.msk.msra.mxu1 %vm13413_vm1, %v12324_v57  ;;  %11410 = vmatprep.mubr.msk.f32.mxu1 %vm883_vm0, %v4942_v6 }
 0x738   : > { %v12330_v34 = vpack.c.bf16 %v5127_v50, %v5122_v1  ;;  %v11326_v30 = vpop.f32.mrb[112].mxu1  ;;  %v11370_v24 = vpop.f32.mrb[104].mxu0 }
 0x739   : > { %v5137_v28 = vadd.f32 %v11326_v30, %v14598_v46  ;;  %v5131_v53 = vpop.f32.mrb[113].mxu1  ;;  %v5267_v25 = vadd.f32 %v11370_v24, %v9682_v11  ;;  %v5261_v6 = vpop.f32.mrb[105].mxu0 }
 0x73a   : > { %v5132_v58 = vadd.f32 %v14598_v46, %v5131_v53  ;;  %11404 = vmatmul.mubr.msk.f32.vlgmr.msra.gmra.mrb[120].mxu0 %vm883_vm0, %v4937_v22  ;;  %12332 = vmatprep.subr.msk.bf16.mxu0 %vm13413_vm1, %v12330_v34  ;;  %v5262_v50 = vadd.f32 %v9682_v11, %v5261_v6 }
 0x73b   : > { %12335 = vmatpush3.bf16.xpose.msk.msra.mxu0 %vm13413_vm1, %v12330_v34  ;;  %11417 = vmatprep.mubr.msk.f32.mxu0 %vm883_vm0, %v4952_v36 }
 0x73c   : > { %v12336_v59 = vpack.c.bf16 %v5137_v28, %v5132_v58  ;;  %v11329_v16 = vpop.f32.mrb[114].mxu1  ;;  %v12360_v14 = vpack.c.bf16 %v5267_v25, %v5262_v50  ;;  %v11373_v1 = vpop.f32.mrb[106].mxu0 }
 0x73d   : > { %v5147_v5 = vadd.f32 %v11329_v16, %v14598_v46  ;;  %v5141_v4 = vpop.f32.mrb[115].mxu1  ;;  %v5277_v33 = vadd.f32 %v11373_v1, %v9682_v11  ;;  %v5271_v22 = vpop.f32.mrb[107].mxu0 }
 0x73e   : > { %v5142_v13 = vadd.f32 %v14598_v46, %v5141_v4  ;;  %11411 = vmatmul.mubr.msk.f32.vlgmr.msra.gmra.mrb[122].mxu1 %vm883_vm0, %v4947_v15  ;;  %12338 = vmatprep.subr.msk.bf16.mxu1 %vm13413_vm1, %v12336_v59  ;;  %v5272_v34 = vadd.f32 %v9682_v11, %v5271_v22 }
 0x73f   : > { %12341 = vmatpush3.bf16.xpose.msk.msra.mxu1 %vm13413_vm1, %v12336_v59  ;;  %11424 = vmatprep.mubr.msk.f32.mxu1 %vm883_vm0, %v4962_v8 }
 0x740   : > { %v12342_v20 = vpack.c.bf16 %v5147_v5, %v5142_v13  ;;  %v11332_v10 = vpop.f32.mrb[116].mxu1 }
 0x741   : > { %v5157_v40 = vadd.f32 %v11332_v10, %v14598_v46  ;;  %v5151_v54 = vpop.f32.mrb[117].mxu1 }
 0x742   : > { %v5152_v44 = vadd.f32 %v14598_v46, %v5151_v54  ;;  %11418 = vmatmul.mubr.msk.f32.vlgmr.msra.gmra.mrb[122].mxu0 %vm883_vm0, %v4957_v42  ;;  %12344 = vmatprep.subr.msk.bf16.mxu0 %vm13413_vm1, %v12342_v20 }
 0x743   : > { %12347 = vmatpush3.bf16.xpose.msk.msra.mxu0 %vm13413_vm1, %v12342_v20  ;;  %11431 = vmatprep.mubr.msk.f32.mxu0 %vm883_vm0, %v4972_v27 }
 0x744   : > { %v12348_v17 = vpack.c.bf16 %v5157_v40, %v5152_v44  ;;  %v11335_v29 = vpop.f32.mrb[118].mxu1 }
 0x745   : > { %v5167_v47 = vadd.f32 %v11335_v29, %v14598_v46  ;;  %v5161_v19 = vpop.f32.mrb[119].mxu1 }
 0x746   : > { %v5162_v56 = vadd.f32 %v14598_v46, %v5161_v19  ;;  %11425 = vmatmul.mubr.msk.f32.vlgmr.msra.gmra.mrb[124].mxu1 %vm883_vm0, %v4967_v35  ;;  %12350 = vmatprep.subr.msk.bf16.mxu1 %vm13413_vm1, %v12348_v17  ;;  %v4992_v46 = vadd.f32 %v14573_v2, %v14593_v62  ;;  %v14682_v2 = vpack.c.bf16 %v5277_v33, %v5272_v34  ;;  %v11376_v62 = vpop.f32.mrb[108].mxu0 }
 0x747   : > { %12353 = vmatpush3.bf16.xpose.msk.msra.mxu1 %vm13413_vm1, %v12348_v17  ;;  %11438 = vmatprep.mubr.msk.f32.mxu1 %vm883_vm0, %v4982_v41  ;;  %v5287_v30 = vadd.f32 %v11376_v62, %v9682_v11  ;;  %v5281_v36 = vpop.f32.mrb[109].mxu0 }
 0x748   : > { %v12354_v57 = vpack.c.bf16 %v5167_v47, %v5162_v56  ;;  %12361 = vmatprep.subr.bf16.mxu1 %v12360_v14  ;;  %v5282_v28 = vadd.f32 %v9682_v11, %v5281_v36  ;;  %v11379_v58 = vpop.f32.mrb[110].mxu0 }
 0x749   : > { %v5297_v15 = vadd.f32 %v11379_v58, %v9682_v11  ;;  %v5291_v59 = vpop.f32.mrb[111].mxu0 }
 0x74a   : > { %11432 = vmatmul.mubr.msk.f32.vlgmr.msra.gmra.mrb[124].mxu0 %vm883_vm0, %v4977_v31  ;;  %12356 = vmatprep.subr.msk.bf16.mxu0 %vm13413_vm1, %v12354_v57  ;;  %v12368_v53 = vpack.c.bf16 %v5287_v30, %v5282_v28  ;;  %v5292_v16 = vadd.f32 %v9682_v11, %v5291_v59  ;;  %v11382_v8 = vpop.f32.mrb[112].mxu0 }
 0x74b   : > { %12359 = vmatpush3.bf16.xpose.msk.msra.mxu0 %vm13413_vm1, %v12354_v57  ;;  %11445 = vmatprep.mubr.msk.f32.mxu0 %vm883_vm0, %v4992_v46  ;;  %v5307_v5 = vadd.f32 %v11382_v8, %v9682_v11  ;;  %v5301_v4 = vpop.f32.mrb[113].mxu0  ;;  %v12963_v57 = vld [vmem:[%s15467_s9 + $0x8] sm:$0xff]  ;;  %v12964_v46 = vld [vmem:[%s15467_s9] sm:$0xff] }
 0x74c   : > { %12369 = vmatprep.subr.bf16.mxu0 %v12368_v53  ;;  %v5302_v13 = vadd.f32 %v9682_v11, %v5301_v4  ;;  %v11385_v20 = vpop.f32.mrb[114].mxu0 }
 0x74d   : > { %v5317_v10 = vadd.f32 %v11385_v20, %v9682_v11  ;;  %v5311_v27 = vpop.f32.mrb[115].mxu0 }
 0x74e   : > { %11439 = vmatmul.mubr.msk.f32.vlgmr.msra.gmra.mrb[126].mxu1 %vm883_vm0, %v14586_v48  ;;  %v14687_v48 = vpack.c.bf16 %v5297_v15, %v5292_v16  ;;  %v14689_v42 = vpack.c.bf16 %v5307_v5, %v5302_v13  ;;  %v5312_v40 = vadd.f32 %v9682_v11, %v5311_v27 }
 0x74f   : > { %12363 = vmatpush3.bf16.msra.mxu1 %v12360_v14 }
 0x750   : > { %12365 = vmatprep.subr.bf16.mxu1 %v14682_v2  ;;  %v11388_v54 = vpop.f32.mrb[116].mxu0 }
 0x751   : > { %v5327_v44 = vadd.f32 %v11388_v54, %v9682_v11  ;;  %v5321_v35 = vpop.f32.mrb[117].mxu0 }
 0x752   : > { %11446 = vmatmul.mubr.msk.f32.vlgmr.msra.gmra.mrb[126].mxu0 %vm883_vm0, %v14591_v61  ;;  %v14692_v61 = vpack.c.bf16 %v5317_v10, %v5312_v40  ;;  %v5322_v17 = vadd.f32 %v9682_v11, %v5321_v35 }
 0x753   : > { %12371 = vmatpush3.bf16.msra.mxu0 %v12368_v53 }
 0x754   : > { %12377 = vmatprep.subr.bf16.mxu0 %v14689_v42  ;;  %v14694_v29 = vpack.c.bf16 %v5327_v44, %v5322_v17  ;;  %v11391_v41 = vpop.f32.mrb[118].mxu0 }
 0x755   : > { %v5337_v47 = vadd.f32 %v11391_v41, %v9682_v11  ;;  %v5331_v19 = vpop.f32.mrb[119].mxu0 }
 0x756   : > { %v5332_v56 = vadd.f32 %v9682_v11, %v5331_v19 }
 0x758   : > { %v14696_v24 = vpack.c.bf16 %v5337_v47, %v5332_v56 }
 0x809   : > { %v11398_v31 = vpop.f32.mrb[120].mxu1 }
 0x80a   : > { %v14701_v25 = vadd.f32 %v12963_v57, %v11398_v31  ;;  %v5418_v6 = vpop.f32.mrb[121].mxu1 }
 0x80b   : > { %v14706_v50 = vadd.f32 %v12964_v46, %v5418_v6 }
 0x80c   : > { %v6039_v14 = vsel %vm1580_vm2, %v14701_v25, -inf }
 0x80d   : > { %6040 = vmax.xlane.f32.xlu1 %v6039_v14  ;;  %v11405_v11 = vpop.f32.mrb[120].mxu0  ;;  %v6036_v1 = vsel %vm1580_vm2, %v14706_v50, -inf }
 0x80e   : > { %v14712_v33 = vadd.f32 %v12963_v57, %v11405_v11  ;;  %6037 = vmax.xlane.f32.xlu0 %v6036_v1  ;;  %v5505_v22 = vpop.f32.mrb[121].mxu0 }
 0x80f   : > { %v14714_v34 = vadd.f32 %v12964_v46, %v5505_v22 }
 0x810   : > { %v6045_v62 = vsel %vm1580_vm2, %v14712_v33, -inf }
 0x811   : > { %v11412_v30 = vpop.f32.mrb[122].mxu1  ;;  %6046 = vmax.xlane.f32.xlu1 %v6045_v62  ;;  %v6042_v36 = vsel %vm1580_vm2, %v14714_v34, -inf }
 0x812   : > { %v14720_v28 = vadd.f32 %v12963_v57, %v11412_v30  ;;  %v5592_v53 = vpop.f32.mrb[123].mxu1  ;;  %6043 = vmax.xlane.f32.xlu0 %v6042_v36 }
 0x813   : > { %v14722_v58 = vadd.f32 %v12964_v46, %v5592_v53 }
 0x814   : > { %v6051_v15 = vsel %vm1580_vm2, %v14720_v28, -inf }
 0x815   : > { %6052 = vmax.xlane.f32.xlu1 %v6051_v15  ;;  %v11419_v59 = vpop.f32.mrb[122].mxu0  ;;  %v6048_v16 = vsel %vm1580_vm2, %v14722_v58, -inf }
 0x816   : > { %v14728_v8 = vadd.f32 %v12963_v57, %v11419_v59  ;;  %v5679_v5 = vpop.f32.mrb[123].mxu0  ;;  %6049 = vmax.xlane.f32.xlu0 %v6048_v16 }
 0x817   : > { %v14730_v4 = vadd.f32 %v12964_v46, %v5679_v5 }
 0x818   : > { %v6057_v13 = vsel %vm1580_vm2, %v14728_v8, -inf }
 0x819   : > { %v11426_v20 = vpop.f32.mrb[124].mxu1  ;;  %6058 = vmax.xlane.f32.xlu1 %v6057_v13  ;;  %v6054_v10 = vsel %vm1580_vm2, %v14730_v4, -inf }
 0x81a   : > { %v14736_v27 = vadd.f32 %v12963_v57, %v11426_v20  ;;  %v5766_v40 = vpop.f32.mrb[125].mxu1  ;;  %6055 = vmax.xlane.f32.xlu0 %v6054_v10 }
 0x81b   : > { %v14738_v54 = vadd.f32 %v12964_v46, %v5766_v40 }
 0x81c   : > { %v6063_v44 = vsel %vm1580_vm2, %v14736_v27, -inf }
 0x81d   : > { %6064 = vmax.xlane.f32.xlu1 %v6063_v44  ;;  %v11433_v35 = vpop.f32.mrb[124].mxu0  ;;  %v6060_v17 = vsel %vm1580_vm2, %v14738_v54, -inf }
 0x81e   : > { %v14744_v41 = vadd.f32 %v12963_v57, %v11433_v35  ;;  %v5853_v47 = vpop.f32.mrb[125].mxu0  ;;  %6061 = vmax.xlane.f32.xlu0 %v6060_v17 }
 0x81f   : > { %v14746_v19 = vadd.f32 %v12964_v46, %v5853_v47 }
 0x820   : > { %v6069_v56 = vsel %vm1580_vm2, %v14744_v41, -inf }
 0x821   : > { %v11440_v31 = vpop.f32.mrb[126].mxu1  ;;  %6070 = vmax.xlane.f32.xlu1 %v6069_v56  ;;  %v6066_v6 = vsel %vm1580_vm2, %v14746_v19, -inf }
 0x822   : > { %v14752_v14 = vadd.f32 %v12963_v57, %v11440_v31  ;;  %v5940_v11 = vpop.f32.mrb[127].mxu1  ;;  %6067 = vmax.xlane.f32.xlu0 %v6066_v6 }
 0x823   : > { %v14754_v1 = vadd.f32 %v12964_v46, %v5940_v11 }
 0x824   : > { %v6075_v22 = vsel %vm1580_vm2, %v14752_v14, -inf }
 0x825   : > { %6076 = vmax.xlane.f32.xlu1 %v6075_v22  ;;  %v11447_v62 = vpop.f32.mrb[126].mxu0  ;;  %v6072_v30 = vsel %vm1580_vm2, %v14754_v1, -inf }
 0x826   : > { %v14760_v36 = vadd.f32 %v12963_v57, %v11447_v62  ;;  %v6027_v53 = vpop.f32.mrb[127].mxu0  ;;  %6073 = vmax.xlane.f32.xlu0 %v6072_v30 }
 0x827   : > { %v14762_v15 = vadd.f32 %v12964_v46, %v6027_v53 }
 0x828   : > { %v6081_v59 = vsel %vm1580_vm2, %v14760_v36, -inf }
 0x829   : > { %6082 = vmax.xlane.f32.xlu1 %v6081_v59  ;;  %v6078_v16 = vsel %vm1580_vm2, %v14762_v15, -inf }
 0x82a   : > { %6079 = vmax.xlane.f32.xlu0 %v6078_v16 }
 0x89a   : > { %v6041_v5 = vpop.xlane.xlu1 %6040 }
 0x89b   : > { %v6085_v13 = vsub.f32 %v14701_v25, %v6041_v5  ;;  %v6038_v20 = vpop.xlane.xlu0 %6037 }
 0x89c   : > { %v6084_v10 = vsub.f32 %v14706_v50, %v6038_v20 }
 0x89d   : > { %v6102_v57 = vmul.f32 1.442695, %v6085_v13 }
 0x89e   : > { %v6100_v40 = vmul.f32 1.442695, %v6084_v10  ;;  %v6047_v44 = vpop.xlane.xlu1 %6046 }
 0x89f   : > { %12801 = vpow2.f32 %v6102_v57  ;;  %v6087_v46 = vsub.f32 %v14712_v33, %v6047_v44  ;;  %v6044_v35 = vpop.xlane.xlu0 %6043 }
 0x8a0   : > { %12803 = vpow2.f32 %v6100_v40  ;;  %v6086_v17 = vsub.f32 %v14714_v34, %v6044_v35 }
 0x8a1   : > { %v6106_v47 = vmul.f32 1.442695, %v6087_v46 }
 0x8a2   : > { %v6104_v56 = vmul.f32 1.442695, %v6086_v17  ;;  %v6053_v31 = vpop.xlane.xlu1 %6052 }
 0x8a3   : > { %12805 = vpow2.f32 %v6106_v47  ;;  %v6089_v6 = vsub.f32 %v14720_v28, %v6053_v31  ;;  %v6050_v25 = vpop.xlane.xlu0 %6049 }
 0x8a4   : > { %12807 = vpow2.f32 %v6104_v56  ;;  %v6088_v50 = vsub.f32 %v14722_v58, %v6050_v25 }
 0x8a5   : > { %v6110_v11 = vmul.f32 1.442695, %v6089_v6 }
 0x8a6   : > { %v6108_v22 = vmul.f32 1.442695, %v6088_v50  ;;  %v6059_v62 = vpop.xlane.xlu1 %6058 }
 0x8a7   : > { %12809 = vpow2.f32 %v6110_v11  ;;  %v6091_v33 = vsub.f32 %v14728_v8, %v6059_v62  ;;  %v6056_v30 = vpop.xlane.xlu0 %6055 }
 0x8a8   : > { %12811 = vpow2.f32 %v6108_v22  ;;  %v6090_v34 = vsub.f32 %v14730_v4, %v6056_v30 }
 0x8a9   : > { %v12802_v53 = vpop.eup %12801  ;;  %v6114_v59 = vmul.f32 1.442695, %v6091_v33 }
 0x8aa   : > { %v12804_v16 = vpop.eup %12803  ;;  %v6112_v5 = vmul.f32 1.442695, %v6090_v34  ;;  %v6065_v13 = vpop.xlane.xlu1 %6064  ;;  %v6135_v28 = vsel %vm1580_vm2, %v12802_v53, 0.0 }
 0x8ab   : > { %12813 = vpow2.f32 %v6114_v59  ;;  %v6093_v58 = vsub.f32 %v14736_v27, %v6065_v13  ;;  %6136 = vadd.xlane.f32.xlu1 %v6135_v28  ;;  %11452 = vmatprep.mubr.msk.f32.mxu1 %vm1580_vm2, %v12804_v16  ;;  %v6062_v20 = vpop.xlane.xlu0 %6061  ;;  %v6132_v8 = vsel %vm1580_vm2, %v12804_v16, 0.0 }
 0x8ac   : > { %12815 = vpow2.f32 %v6112_v5  ;;  %v6092_v10 = vsub.f32 %v14738_v54, %v6062_v20  ;;  %11453 = vmatmul.mubr.msk.f32.vlgmr.msra.gmra.mrb[128].mxu1 %vm1580_vm2, %v12802_v53  ;;  %6133 = vadd.xlane.f32.xlu0 %v6132_v8 }
 0x8ad   : > { %v12806_v4 = vpop.eup %12805  ;;  %v6118_v57 = vmul.f32 1.442695, %v6093_v58  ;;  %12367 = vmatpush3.bf16.msra.mxu1 %v14682_v2 }
 0x8ae   : > { %v12808_v40 = vpop.eup %12807  ;;  %v6116_v44 = vmul.f32 1.442695, %v6092_v10  ;;  %12373 = vmatprep.subr.bf16.mxu1 %v14687_v48  ;;  %v6071_v27 = vpop.xlane.xlu1 %6070  ;;  %v6141_v46 = vsel %vm1580_vm2, %v12806_v4, 0.0 }
 0x8af   : > { %12817 = vpow2.f32 %v6118_v57  ;;  %v6095_v35 = vsub.f32 %v14744_v41, %v6071_v27  ;;  %6142 = vadd.xlane.f32.xlu1 %v6141_v46  ;;  %11459 = vmatprep.mubr.msk.f32.mxu1 %vm1580_vm2, %v12808_v40  ;;  %v6068_v54 = vpop.xlane.xlu0 %6067  ;;  %v6138_v17 = vsel %vm1580_vm2, %v12808_v40, 0.0  ;;  %v14827_v46 = vld [vmem:[%s13199_s26] sm:$0xff] }
 0x8b0   : > { %12819 = vpow2.f32 %v6116_v44  ;;  %v6094_v47 = vsub.f32 %v14746_v19, %v6068_v54  ;;  %11460 = vmatmul.mubr.msk.f32.vlgmr.msra.gmra.mrb[130].mxu1 %vm1580_vm2, %v12806_v4  ;;  %6139 = vadd.xlane.f32.xlu0 %v6138_v17  ;;  %v9732_v54 = vld [vmem:[%s15465_s7 + $0x48] sm:$0xff] }
 0x8b1   : > { %v12810_v2 = vpop.eup %12809  ;;  %v6122_v56 = vmul.f32 1.442695, %v6095_v35  ;;  %12375 = vmatpush3.bf16.msra.mxu1 %v14687_v48  ;;  %v9731_v35 = vld [vmem:[%s15465_s7 + $0x40] sm:$0xff] }
 0x8b2   : > { %v12812_v31 = vpop.eup %12811  ;;  %v6120_v6 = vmul.f32 1.442695, %v6094_v47  ;;  %12381 = vmatprep.subr.bf16.mxu1 %v14692_v61  ;;  %v6077_v41 = vpop.xlane.xlu1 %6076  ;;  %v6147_v25 = vsel %vm1580_vm2, %v12810_v2, 0.0  ;;  %v12392_v17 = vpack.c.bf16 %v9732_v54, %v9731_v35  ;;  %v9733_v47 = vld [vmem:[%s15465_s7 + $0x50] sm:$0xff]  ;;  %v9788_v35 = vld [vmem:[%s15463_s5 + $0x188] sm:$0xff] }
 0x8b3   : > { %12821 = vpow2.f32 %v6122_v56  ;;  %v6097_v50 = vsub.f32 %v14752_v14, %v6077_v41  ;;  %6148 = vadd.xlane.f32.xlu1 %v6147_v25  ;;  %11466 = vmatprep.mubr.msk.f32.mxu0 %vm1580_vm2, %v12812_v31  ;;  %v6074_v19 = vpop.xlane.xlu0 %6073  ;;  %v6144_v11 = vsel %vm1580_vm2, %v12812_v31, 0.0  ;;  %v9769_v31 = vld [vmem:[%s15461_s3 + $0x180] sm:$0xff]  ;;  %v9789_v54 = vld [vmem:[%s15463_s5 + $0x190] sm:$0xff] }
 0x8b4   : > { %12823 = vpow2.f32 %v6120_v6  ;;  %v6096_v22 = vsub.f32 %v14754_v1, %v6074_v19  ;;  %11467 = vmatmul.mubr.msk.f32.vlgmr.msra.gmra.mrb[128].mxu0 %vm1580_vm2, %v12810_v2  ;;  %6145 = vadd.xlane.f32.xlu0 %v6144_v11  ;;  %v9734_v2 = vld [vmem:[%s15465_s7 + $0x58] sm:$0xff]  ;;  %v9770_v6 = vld [vmem:[%s15461_s3 + $0x188] sm:$0xff]  ;;  %v9751_v25 = vld [vmem:[%s15459_s1 + $0x180] sm:$0xff] }
 0x8b5   : > { %v12814_v48 = vpop.eup %12813  ;;  %v6126_v62 = vmul.f32 1.442695, %v6097_v50  ;;  %12379 = vmatpush3.bf16.msra.mxu0 %v14689_v42  ;;  %v12396_v56 = vpack.c.bf16 %v9734_v2, %v9733_v47  ;;  %v14848_v41 = vpack.c.bf16 %v9770_v6, %v9769_v31  ;;  %v9752_v50 = vld [vmem:[%s15459_s1 + $0x188] sm:$0xff]  ;;  %v9753_v11 = vld [vmem:[%s15459_s1 + $0x190] sm:$0xff]  ;;  %v9791_v47 = vld [vmem:[%s15463_s5 + $0x1a0] sm:$0xff] }
 0x8b6   : > { %v12816_v33 = vpop.eup %12815  ;;  %v6124_v30 = vmul.f32 1.442695, %v6096_v22  ;;  %12385 = vmatprep.subr.bf16.mxu0 %v14694_v29  ;;  %v6083_v14 = vpop.xlane.xlu1 %6082  ;;  %v6153_v34 = vsel %vm1580_vm2, %v12814_v48, 0.0  ;;  %v12400_v19 = vpack.c.bf16 %v9752_v50, %v9751_v25  ;;  %v9754_v22 = vld [vmem:[%s15459_s1 + $0x198] sm:$0xff]  ;;  %v9792_v2 = vld [vmem:[%s15463_s5 + $0x1a8] sm:$0xff]  ;;  %v14964_v25 = vld [vmem:[%s13199_s26 + $0x70] sm:$0xff] }
 0x8b7   : > { %12825 = vpow2.f32 %v6126_v62  ;;  %v6099_v53 = vsub.f32 %v14760_v36, %v6083_v14  ;;  %6154 = vadd.xlane.f32.xlu1 %v6153_v34  ;;  %11473 = vmatprep.mubr.msk.f32.mxu1 %vm1580_vm2, %v12816_v33  ;;  %v6080_v1 = vpop.xlane.xlu0 %6079  ;;  %v6150_v59 = vsel %vm1580_vm2, %v12816_v33, 0.0  ;;  %v9755_v62 = vld [vmem:[%s15459_s1 + $0x1a0] sm:$0xff]  ;;  %v9756_v33 = vld [vmem:[%s15459_s1 + $0x1a8] sm:$0xff]  ;;  %v9757_v14 = vld [vmem:[%s15459_s1 + $0x1b0] sm:$0xff] }
 0x8b8   : > { %12827 = vpow2.f32 %v6124_v30  ;;  %v6098_v16 = vsub.f32 %v14762_v15, %v6080_v1  ;;  %11474 = vmatmul.mubr.msk.f32.vlgmr.msra.gmra.mrb[132].mxu1 %vm1580_vm2, %v12814_v48  ;;  %6151 = vadd.xlane.f32.xlu0 %v6150_v59  ;;  %v12404_v48 = vpack.c.bf16 %v9754_v22, %v9753_v11  ;;  %v12408_v30 = vpack.c.bf16 %v9756_v33, %v9755_v62  ;;  %v9758_v34 = vld [vmem:[%s15459_s1 + $0x1b8] sm:$0xff]  ;;  %v9759_v1 = vld [vmem:[%s15459_s1 + $0x1c0] sm:$0xff]  ;;  %v9760_v59 = vld [vmem:[%s15459_s1 + $0x1c8] sm:$0xff] }
 0x8b9   : > { %v12818_v42 = vpop.eup %12817  ;;  %v6130_v5 = vmul.f32 1.442695, %v6099_v53  ;;  %12383 = vmatpush3.bf16.msra.mxu1 %v14692_v61  ;;  %v12412_v53 = vpack.c.bf16 %v9758_v34, %v9757_v14  ;;  %v14954_v31 = vld [vmem:[%s13199_s26 + $0x68] sm:$0xff]  ;;  %v9794_v6 = vld [vmem:[%s15463_s5 + $0x1b8] sm:$0xff] }
 0x8ba   : > { %v12820_v13 = vpop.eup %12819  ;;  %v6128_v28 = vmul.f32 1.442695, %v6098_v16  ;;  %12389 = vmatprep.subr.bf16.mxu1 %v14696_v24  ;;  %v6159_v36 = vsel %vm1580_vm2, %v12818_v42, 0.0  ;;  %v12416_v16 = vpack.c.bf16 %v9760_v59, %v9759_v1  ;;  %v14968_v50 = vld [vmem:[%s13199_s26 + $0x78] sm:$0xff]  ;;  %v9796_v11 = vld [vmem:[%s15463_s5 + $0x1c8] sm:$0xff] }
 0x8bb   : > { %12829 = vpow2.f32 %v6130_v5  ;;  %6160 = vadd.xlane.f32.xlu1 %v6159_v36  ;;  %11480 = vmatprep.mubr.msk.f32.mxu0 %vm1580_vm2, %v12820_v13  ;;  %v6156_v58 = vsel %vm1580_vm2, %v12820_v13, 0.0  ;;  %v9762_v5 = vld [vmem:[%s15459_s1 + $0x1d8] sm:$0xff]  ;;  %v9764_v36 = vld [vmem:[%s15459_s1 + $0x1e8] sm:$0xff] }
 0x8bc   : > { %12831 = vpow2.f32 %v6128_v28  ;;  %11481 = vmatmul.mubr.msk.f32.vlgmr.msra.gmra.mrb[130].mxu0 %vm1580_vm2, %v12818_v42  ;;  %6157 = vadd.xlane.f32.xlu0 %v6156_v58  ;;  %v9761_v42 = vld [vmem:[%s15459_s1 + $0x1d0] sm:$0xff]  ;;  %v9763_v28 = vld [vmem:[%s15459_s1 + $0x1e0] sm:$0xff]  ;;  %v9798_v62 = vld [vmem:[%s15463_s5 + $0x1d8] sm:$0xff] }
 0x8bd   : > { %v12822_v15 = vpop.eup %12821  ;;  %12387 = vmatpush3.bf16.msra.mxu0 %v14694_v29  ;;  %v12420_v13 = vpack.c.bf16 %v9762_v5, %v9761_v42  ;;  %v12424_v58 = vpack.c.bf16 %v9764_v36, %v9763_v28  ;;  %v9771_v36 = vld [vmem:[%s15461_s3 + $0x190] sm:$0xff] }
 0x8be   : > { %v12824_v61 = vpop.eup %12823  ;;  %v6165_v20 = vsel %vm1580_vm2, %v12822_v15, 0.0  ;;  %12393 = vmatprep.subr.bf16.mxu0 %v12392_v17 }
 0x8bf   : > { %6166 = vadd.xlane.f32.xlu1 %v6165_v20  ;;  %11487 = vmatprep.mubr.msk.f32.mxu1 %vm1580_vm2, %v12824_v61  ;;  %v6162_v8 = vsel %vm1580_vm2, %v12824_v61, 0.0  ;;  %v9766_v61 = vld [vmem:[%s15459_s1 + $0x1f8] sm:$0xff] }
 0x8c0   : > { %11488 = vmatmul.mubr.msk.f32.vlgmr.msra.gmra.mrb[134].mxu1 %vm1580_vm2, %v12822_v15  ;;  %6163 = vadd.xlane.f32.xlu0 %v6162_v8  ;;  %v9765_v15 = vld [vmem:[%s15459_s1 + $0x1f0] sm:$0xff]  ;;  %v14900_v8 = vld [vmem:[%s13199_s26 + $0x8] sm:$0xff] }
 0x8c1   : > { %v12826_v10 = vpop.eup %12825  ;;  %12391 = vmatpush3.bf16.msra.mxu1 %v14696_v24  ;;  %v12428_v20 = vpack.c.bf16 %v9766_v61, %v9765_v15 }
 0x8c2   : > { %v12828_v4 = vpop.eup %12827  ;;  %v6171_v57 = vsel %vm1580_vm2, %v12826_v10, 0.0  ;;  %12401 = vmatprep.subr.bf16.mxu1 %v12400_v19 }
 0x8c3   : > { %6172 = vadd.xlane.f32.xlu1 %v6171_v57  ;;  %11494 = vmatprep.mubr.msk.f32.mxu0 %vm1580_vm2, %v12828_v4  ;;  %v6168_v29 = vsel %vm1580_vm2, %v12828_v4, 0.0  ;;  %v14908_v4 = vld [vmem:[%s13199_s26 + $0x18] sm:$0xff]  ;;  %v14912_v57 = vld [vmem:[%s13199_s26 + $0x20] sm:$0xff] }
 0x8c4   : > { %11495 = vmatmul.mubr.msk.f32.vlgmr.msra.gmra.mrb[132].mxu0 %vm1580_vm2, %v12826_v10  ;;  %6169 = vadd.xlane.f32.xlu0 %v6168_v29  ;;  %v14904_v10 = vld [vmem:[%s13199_s26 + $0x10] sm:$0xff]  ;;  %v14916_v29 = vld [vmem:[%s13199_s26 + $0x28] sm:$0xff] }
 0x8c5   : > { %v12830_v40 = vpop.eup %12829  ;;  %12395 = vmatpush3.bf16.msra.mxu0 %v12392_v17 }
 0x8c6   : > { %v12832_v44 = vpop.eup %12831  ;;  %v6177_v27 = vsel %vm1580_vm2, %v12830_v40, 0.0  ;;  %12397 = vmatprep.subr.bf16.mxu0 %v12396_v56 }
 0x8c7   : > { %6178 = vadd.xlane.f32.xlu1 %v6177_v27  ;;  %11501 = vmatprep.mubr.msk.f32.mxu1 %vm1580_vm2, %v12832_v44  ;;  %v6174_v24 = vsel %vm1580_vm2, %v12832_v44, 0.0  ;;  %v14924_v44 = vld [vmem:[%s13199_s26 + $0x38] sm:$0xff]  ;;  %v14928_v27 = vld [vmem:[%s13199_s26 + $0x40] sm:$0xff] }
 0x8c8   : > { %11502 = vmatmul.mubr.msk.f32.vlgmr.msra.gmra.mrb[136].mxu1 %vm1580_vm2, %v12830_v40  ;;  %6175 = vadd.xlane.f32.xlu0 %v6174_v24  ;;  %v14920_v40 = vld [vmem:[%s13199_s26 + $0x30] sm:$0xff]  ;;  %v9787_v24 = vld [vmem:[%s15463_s5 + $0x180] sm:$0xff] }
 0x8c9   : > { %11568 = vmatprep.mubr.f32.mxu1 %v14827_v46  ;;  %12399 = vmatpush3.bf16.msra.mxu0 %v12396_v56  ;;  %v12464_v17 = vpack.c.bf16 %v9788_v35, %v9787_v24  ;;  %v12472_v56 = vpack.c.bf16 %v9792_v2, %v9791_v47  ;;  %v9774_v47 = vld [vmem:[%s15461_s3 + $0x1a8] sm:$0xff] }
 0x8ca   : > { %12433 = vmatprep.subr.bf16.mxu0 %v14848_v41  ;;  %12403 = vmatpush3.bf16.msra.mxu1 %v12400_v19  ;;  %v9795_v19 = vld [vmem:[%s15463_s5 + $0x1c0] sm:$0xff] }
 0x8cb   : > { %12405 = vmatprep.subr.bf16.mxu1 %v12404_v48  ;;  %v12480_v22 = vpack.c.bf16 %v9796_v11, %v9795_v19 }
 0x8ce   : > { %12407 = vmatpush3.bf16.msra.mxu1 %v12404_v48  ;;  %v9797_v48 = vld [vmem:[%s15463_s5 + $0x1d0] sm:$0xff] }
 0x8cf   : > { %12409 = vmatprep.subr.bf16.mxu1 %v12408_v30  ;;  %v12484_v33 = vpack.c.bf16 %v9798_v62, %v9797_v48  ;;  %v9775_v48 = vld [vmem:[%s15461_s3 + $0x1b0] sm:$0xff]  ;;  %v9776_v62 = vld [vmem:[%s15461_s3 + $0x1b8] sm:$0xff] }
 0x8d2   : > { %12411 = vmatpush3.bf16.msra.mxu1 %v12408_v30 }
 0x8d3   : > { %12413 = vmatprep.subr.bf16.mxu1 %v12412_v53 }
 0x8d6   : > { %12415 = vmatpush3.bf16.msra.mxu1 %v12412_v53 }
 0x8d7   : > { %12417 = vmatprep.subr.bf16.mxu1 %v12416_v16 }
 0x8da   : > { %12419 = vmatpush3.bf16.msra.mxu1 %v12416_v16 }
 0x8db   : > { %12421 = vmatprep.subr.bf16.mxu1 %v12420_v13 }
 0x8de   : > { %12423 = vmatpush3.bf16.msra.mxu1 %v12420_v13 }
 0x8df   : > { %12425 = vmatprep.subr.bf16.mxu1 %v12424_v58 }
 0x8e2   : > { %12427 = vmatpush3.bf16.msra.mxu1 %v12424_v58  ;;  %v9772_v58 = vld [vmem:[%s15461_s3 + $0x198] sm:$0xff] }
 0x8e3   : > { %12429 = vmatprep.subr.bf16.mxu1 %v12428_v20 }
 0x8e6   : > { %12431 = vmatpush3.bf16.msra.mxu1 %v12428_v20 }
 0x8e7   : > { %12465 = vmatprep.subr.bf16.mxu1 %v12464_v17 }
 0x8e9   : > { %11569 = vmatmul.mubr.f32.vlgmr.msra.gmra.mrb[138].mxu1 %v14900_v8 }
 0x8ea   : > { %11571 = vmatprep.mubr.f32.mxu1 %v14904_v10  ;;  %12467 = vmatpush3.bf16.msra.mxu1 %v12464_v17 }
 0x8ed   : > { %11572 = vmatmul.mubr.f32.gmra.mrb[140].mxu1 %v14908_v4 }
 0x8ee   : > { %11574 = vmatprep.mubr.f32.mxu1 %v14912_v57 }
 0x8f1   : > { %11575 = vmatmul.mubr.f32.gmra.mrb[142].mxu1 %v14916_v29 }
 0x8f2   : > { %11577 = vmatprep.mubr.f32.mxu1 %v14920_v40 }
 0x8f5   : > { %11578 = vmatmul.mubr.f32.gmra.mrb[144].mxu1 %v14924_v44 }
 0x8f6   : > { %11580 = vmatprep.mubr.f32.mxu1 %v14928_v27 }
 0x8f9   : > { %11581 = vmatmul.mubr.f32.gmra.mrb[146].mxu1 %v14459_v60  ;;  %v9790_v60 = vld [vmem:[%s15463_s5 + $0x198] sm:$0xff] }
 0x8fa   : > { %11583 = vmatprep.mubr.f32.mxu1 %v14463_v23  ;;  %v12468_v23 = vpack.c.bf16 %v9790_v60, %v9789_v54  ;;  %v12436_v54 = vpack.c.bf16 %v9772_v58, %v9771_v36 }
 0x8fc   : > { %12469 = vmatprep.subr.bf16.mxu1 %v12468_v23 }
 0x8fd   : > { %11584 = vmatmul.mubr.f32.gmra.mrb[148].mxu1 %v14473_v51  ;;  %v9793_v51 = vld [vmem:[%s15463_s5 + $0x1b0] sm:$0xff] }
 0x8fe   : > { %11586 = vmatprep.mubr.f32.mxu1 %v14477_v21  ;;  %12471 = vmatpush3.bf16.msra.mxu1 %v12468_v23  ;;  %v12476_v21 = vpack.c.bf16 %v9794_v6, %v9793_v51  ;;  %v9773_v23 = vld [vmem:[%s15461_s3 + $0x1a0] sm:$0xff] }
 0x8ff   : > { %12473 = vmatprep.subr.bf16.mxu1 %v12472_v56  ;;  %v12440_v11 = vpack.c.bf16 %v9774_v47, %v9773_v23 }
 0x901   : > { %11587 = vmatmul.mubr.f32.gmra.mrb[150].mxu1 %v14954_v31 }
 0x902   : > { %11589 = vmatprep.mubr.f32.mxu1 %v14964_v25  ;;  %12475 = vmatpush3.bf16.msra.mxu1 %v12472_v56 }
 0x903   : > { %12477 = vmatprep.subr.bf16.mxu1 %v12476_v21 }
 0x905   : > { %11590 = vmatmul.mubr.f32.gmra.mrb[152].mxu1 %v14968_v50 }
 0x906   : > { %11680 = vmatprep.mubr.f32.mxu1 %v14827_v46  ;;  %12479 = vmatpush3.bf16.msra.mxu1 %v12476_v21 }
 0x907   : > { %12481 = vmatprep.subr.bf16.mxu1 %v12480_v22 }
 0x90a   : > { %12483 = vmatpush3.bf16.msra.mxu1 %v12480_v22 }
 0x90b   : > { %12485 = vmatprep.subr.bf16.mxu1 %v12484_v33 }
 0x90e   : > { %12487 = vmatpush3.bf16.msra.mxu1 %v12484_v33 }
 0x938   : > { %v6137_v14 = vpop.xlane.xlu1 %6136 }
 0x939   : > { %v6134_v30 = vpop.xlane.xlu0 %6133 }
 0x93a   : > { %12833 = vrcp.f32 %v6134_v30 }
 0x93b   : > { %12835 = vrcp.f32 %v6137_v14 }
 0x93c   : > { %v6143_v53 = vpop.xlane.xlu1 %6142 }
 0x93d   : > { %v6140_v34 = vpop.xlane.xlu0 %6139 }
 0x93e   : > { %12837 = vrcp.f32 %v6140_v34 }
 0x93f   : > { %12839 = vrcp.f32 %v6143_v53 }
 0x940   : > { %v6149_v59 = vpop.xlane.xlu1 %6148 }
 0x941   : > { %v6146_v1 = vpop.xlane.xlu0 %6145 }
 0x942   : > { %12841 = vrcp.f32 %v6146_v1 }
 0x943   : > { %12843 = vrcp.f32 %v6149_v59  ;;  %v12444_v59 = vpack.c.bf16 %v9776_v62, %v9775_v48 }
 0x944   : > { %v6155_v42 = vpop.xlane.xlu1 %6154  ;;  %v12834_v15 = vpop.eup %12833 }
 0x945   : > { %v6152_v16 = vpop.xlane.xlu0 %6151  ;;  %v12836_v20 = vpop.eup %12835 }
 0x946   : > { %12845 = vrcp.f32 %v6152_v16 }
 0x947   : > { %12847 = vrcp.f32 %v6155_v42  ;;  %v9777_v42 = vld [vmem:[%s15461_s3 + $0x1c0] sm:$0xff] }
 0x948   : > { %v6161_v13 = vpop.xlane.xlu1 %6160  ;;  %v12838_v2 = vpop.eup %12837 }
 0x949   : > { %v6158_v5 = vpop.xlane.xlu0 %6157  ;;  %v12840_v6 = vpop.eup %12839 }
 0x94a   : > { %12849 = vrcp.f32 %v6158_v5  ;;  %v9778_v5 = vld [vmem:[%s15461_s3 + $0x1c8] sm:$0xff] }
 0x94b   : > { %12851 = vrcp.f32 %v6161_v13 }
 0x94c   : > { %v6167_v56 = vpop.xlane.xlu1 %6166  ;;  %v12842_v33 = vpop.eup %12841 }
 0x94d   : > { %v6164_v17 = vpop.xlane.xlu0 %6163 }
 0x94e   : > { %12853 = vrcp.f32 %v6164_v17 }
 0x94f   : > { %12855 = vrcp.f32 %v6167_v56 }
 0x950   : > { %v6173_v53 = vpop.xlane.xlu1 %6172 }
 0x951   : > { %v6170_v14 = vpop.xlane.xlu0 %6169 }
 0x952   : > { %12857 = vrcp.f32 %v6170_v14  ;;  %v9783_v14 = vld [vmem:[%s15461_s3 + $0x1f0] sm:$0xff] }
 0x953   : > { %12859 = vrcp.f32 %v6173_v53 }
 0x97f   : > { %v11454_v28 = vpop.f32.mrb[128].mxu1 }
 0x980   : > { %v6252_v61 = vpop.f32.mrb[129].mxu1  ;;  %v6845_v35 = vmul.f32 %v12836_v20, %v11454_v28  ;;  %v6176_v20 = vpop.xlane.xlu0 %6175 }
 0x981   : > { %v6844_v24 = vmul.f32 %v12834_v15, %v6252_v61  ;;  %v12448_v61 = vpack.c.bf16 %v9778_v5, %v9777_v42  ;;  %12861 = vrcp.f32 %v6176_v20  ;;  %v12977_v20 = vld [vmem:[%s13199_s26 + $0x48] sm:$0xff] }
 0x983   : > { %v11461_v60 = vpop.f32.mrb[130].mxu1  ;;  %11512 = vmatprep.mubr.msk.f32.mxu0 %vm883_vm0, %v6844_v24 }
 0x984   : > { %v6333_v51 = vpop.f32.mrb[131].mxu1  ;;  %11513 = vmatmul.mubr.msk.f32.vlgmr.msra.gmra.mrb[88].mxu0 %vm883_vm0, %v6845_v35  ;;  %v6847_v19 = vmul.f32 %v12840_v6, %v11461_v60  ;;  %v9779_v35 = vld [vmem:[%s15461_s3 + $0x1d0] sm:$0xff]  ;;  %v6179_v60 = vpop.xlane.xlu1 %6178 }
 0x985   : > { %v6846_v21 = vmul.f32 %v12838_v2, %v6333_v51  ;;  %12435 = vmatpush3.bf16.msra.mxu0 %v14848_v41  ;;  %v12844_v41 = vpop.eup %12843  ;;  %12863 = vrcp.f32 %v6179_v60 }
 0x986   : > { %12437 = vmatprep.subr.bf16.mxu0 %v12436_v54  ;;  %v12846_v13 = vpop.eup %12845 }
 0x987   : > { %v11468_v22 = vpop.f32.mrb[128].mxu0  ;;  %11515 = vmatprep.mubr.msk.f32.mxu0 %vm883_vm0, %v6846_v21  ;;  %v12848_v36 = vpop.eup %12847  ;;  %v9781_v21 = vld [vmem:[%s15461_s3 + $0x1e0] sm:$0xff] }
 0x988   : > { %v6414_v30 = vpop.f32.mrb[129].mxu0  ;;  %11516 = vmatmul.mubr.msk.f32.gmra.mrb[90].mxu0 %vm883_vm0, %v6847_v19  ;;  %v6849_v1 = vmul.f32 %v12844_v41, %v11468_v22  ;;  %v12850_v17 = vpop.eup %12849  ;;  %v9782_v19 = vld [vmem:[%s15461_s3 + $0x1e8] sm:$0xff] }
 0x989   : > { %v6848_v34 = vmul.f32 %v12842_v33, %v6414_v30  ;;  %12439 = vmatpush3.bf16.msra.mxu0 %v12436_v54  ;;  %v9780_v54 = vld [vmem:[%s15461_s3 + $0x1d8] sm:$0xff]  ;;  %v12852_v47 = vpop.eup %12851  ;;  %v12456_v30 = vpack.c.bf16 %v9782_v19, %v9781_v21 }
 0x98a   : > { %12441 = vmatprep.subr.bf16.mxu0 %v12440_v11  ;;  %v12452_v51 = vpack.c.bf16 %v9780_v54, %v9779_v35  ;;  %v12980_v35 = vld [vmem:[%s13199_s26 + $0x60] sm:$0xff] }
 0x98b   : > { %v11475_v16 = vpop.f32.mrb[132].mxu1  ;;  %11518 = vmatprep.mubr.msk.f32.mxu0 %vm883_vm0, %v6848_v34  ;;  %v9784_v34 = vld [vmem:[%s15461_s3 + $0x1f8] sm:$0xff]  ;;  %v9799_v54 = vld [vmem:[%s15463_s5 + $0x1e0] sm:$0xff] }
 0x98c   : > { %v6495_v28 = vpop.f32.mrb[133].mxu1  ;;  %11519 = vmatmul.mubr.msk.f32.gmra.mrb[92].mxu0 %vm883_vm0, %v6849_v1  ;;  %v6851_v15 = vmul.f32 %v12848_v36, %v11475_v16  ;;  %v12460_v5 = vpack.c.bf16 %v9784_v34, %v9783_v14 }
 0x98d   : > { %v6850_v58 = vmul.f32 %v12846_v13, %v6495_v28  ;;  %12443 = vmatpush3.bf16.msra.mxu0 %v12440_v11  ;;  %v12854_v11 = vpop.eup %12853 }
 0x98e   : > { %12445 = vmatprep.subr.bf16.mxu0 %v12444_v59  ;;  %v12856_v48 = vpop.eup %12855 }
 0x98f   : > { %v11482_v24 = vpop.f32.mrb[130].mxu0  ;;  %11521 = vmatprep.mubr.msk.f32.mxu0 %vm883_vm0, %v6850_v58  ;;  %v12858_v53 = vpop.eup %12857 }
 0x990   : > { %v6576_v23 = vpop.f32.mrb[131].mxu0  ;;  %11522 = vmatmul.mubr.msk.f32.gmra.mrb[94].mxu0 %vm883_vm0, %v6851_v15  ;;  %v6853_v56 = vmul.f32 %v12852_v47, %v11482_v24  ;;  %v12978_v24 = vld [vmem:[%s13199_s26 + $0x50] sm:$0xff]  ;;  %v9802_v47 = vld [vmem:[%s15463_s5 + $0x1f8] sm:$0xff] }
 0x991   : > { %v6852_v2 = vmul.f32 %v12850_v17, %v6576_v23  ;;  %12447 = vmatpush3.bf16.msra.mxu0 %v12444_v59  ;;  %v12860_v59 = vpop.eup %12859  ;;  %v9800_v17 = vld [vmem:[%s15463_s5 + $0x1e8] sm:$0xff]  ;;  %v9801_v23 = vld [vmem:[%s15463_s5 + $0x1f0] sm:$0xff] }
 0x992   : > { %12449 = vmatprep.subr.bf16.mxu0 %v12448_v61  ;;  %v12862_v28 = vpop.eup %12861  ;;  %v12488_v60 = vpack.c.bf16 %v9800_v17, %v9799_v54 }
 0x993   : > { %v11489_v6 = vpop.f32.mrb[134].mxu1  ;;  %11524 = vmatprep.mubr.msk.f32.mxu0 %vm883_vm0, %v6852_v2  ;;  %v12864_v58 = vpop.eup %12863  ;;  %v12492_v2 = vpack.c.bf16 %v9802_v47, %v9801_v23 }
 0x994   : > { %v6657_v22 = vpop.f32.mrb[135].mxu1  ;;  %11525 = vmatmul.mubr.msk.f32.gmra.mrb[96].mxu0 %vm883_vm0, %v6853_v56  ;;  %v6855_v33 = vmul.f32 %v12856_v48, %v11489_v6  ;;  %12489 = vmatprep.subr.bf16.mxu1 %v12488_v60  ;;  %v9768_v56 = vld [vmem:[%s15460_s2 + $0x3] ss:$0 sm:$0xff] }
 0x995   : > { %v6854_v62 = vmul.f32 %v12854_v11, %v6657_v22  ;;  %12451 = vmatpush3.bf16.msra.mxu0 %v12448_v61  ;;  %12491 = vmatpush3.bf16.msra.mxu1 %v12488_v60 }
 0x996   : > { %12453 = vmatprep.subr.bf16.mxu0 %v12452_v51  ;;  %12493 = vmatprep.subr.bf16.mxu1 %v12492_v2 }
 0x997   : > { %v11496_v41 = vpop.f32.mrb[132].mxu0  ;;  %11527 = vmatprep.mubr.msk.f32.mxu0 %vm883_vm0, %v6854_v62 }
 0x998   : > { %v6738_v1 = vpop.f32.mrb[133].mxu0  ;;  %11528 = vmatmul.mubr.msk.f32.gmra.mrb[98].mxu0 %vm883_vm0, %v6855_v33  ;;  %v6857_v42 = vmul.f32 %v12860_v59, %v11496_v41 }
 0x999   : > { %v6856_v16 = vmul.f32 %v12858_v53, %v6738_v1  ;;  %12455 = vmatpush3.bf16.msra.mxu0 %v12452_v51  ;;  %12495 = vmatpush3.bf16.msra.mxu1 %v12492_v2 }
 0x99a   : > { %12457 = vmatprep.subr.bf16.mxu0 %v12456_v30 }
 0x99b   : > { %v11503_v13 = vpop.f32.mrb[136].mxu1  ;;  %11530 = vmatprep.mubr.msk.f32.mxu0 %vm883_vm0, %v6856_v16 }
 0x99c   : > { %v6819_v36 = vpop.f32.mrb[137].mxu1  ;;  %11531 = vmatmul.mubr.msk.f32.gmra.mrb[100].mxu0 %vm883_vm0, %v6857_v42  ;;  %v6859_v61 = vmul.f32 %v12864_v58, %v11503_v13  ;;  %11681 = vmatmul.mubr.f32.vlgmr.msra.gmra.mrb[154].mxu1 %v14900_v8 }
 0x99d   : > { %v6858_v15 = vmul.f32 %v12862_v28, %v6819_v36  ;;  %12459 = vmatpush3.bf16.msra.mxu0 %v12456_v30  ;;  %11683 = vmatprep.mubr.f32.mxu1 %v14904_v10 }
 0x99e   : > { %12461 = vmatprep.subr.bf16.mxu0 %v12460_v5 }
 0x99f   : > { %11533 = vmatprep.mubr.msk.f32.mxu0 %vm883_vm0, %v6858_v15 }
 0x9a0   : > { %11534 = vmatmul.mubr.msk.f32.gmra.mrb[102].mxu0 %vm883_vm0, %v6859_v61  ;;  %11684 = vmatmul.mubr.f32.gmra.mrb[156].mxu1 %v14908_v4 }
 0x9a1   : > { %12463 = vmatpush3.bf16.msra.mxu0 %v12460_v5  ;;  %11624 = vmatprep.mubr.f32.mxu0 %v14827_v46  ;;  %v12979_v46 = vld [vmem:[%s13199_s26 + $0x58] sm:$0xff]  ;;  %s9437_s26 = sshll.u32 %s351_s18, 7 }
 0x9a2   : > { %11686 = vmatprep.mubr.f32.mxu1 %v14912_v57  ;;  %s15360_s25 = scalar_lea.vmem [#allocation2], %s9437_s26  ;;  %s13047_s26 = smov [#allocation2]  }
 0x9a3   : > { %s9371_s11 = sshll.u32 %s15360_s25, 4  ;;  %s12987_s20 = sshll.u32 %s13047_s26, 4  ;;  %s15410_s11 = int_to_ptr.vmem [resolvable:$true] %s9371_s11  ;;  %s12988_s20 = int_to_ptr.vmem [resolvable:$false] %s12987_s20 }
 0x9a4   : > { %11625 = vmatmul.mubr.f32.vlgmr.msra.gmra.mrb[134].mxu0 %v14900_v8  ;;  %11687 = vmatmul.mubr.f32.gmra.mrb[158].mxu1 %v14916_v29  ;;  %s12983_s29 = scalar_lea.vmem %s15410_s11, 2048  ;;  %s12989_s21 = scalar_lea.vmem %s12988_s20, 4096 }
 0x9a5   : > { %11627 = vmatprep.mubr.f32.mxu0 %v14904_v10  ;;  %11689 = vmatprep.mubr.f32.mxu1 %v14920_v40  ;;  %p12984_p11 = scmp.ne.s32.totalorder %s15410_s11, %s12983_s29  ;;  %p12990_p0 = scmp.lt.s32.totalorder %s15410_s11, %s12988_s20 }
 0x9a6   : > { %p12991_p1 = scmp.lt.s32.totalorder %s12989_s21, %s12983_s29 }
 0x9a7   : > { %p12985_p12 = pnand %p12984_p11, %p13143_p5 }
 0x9a8   : > { %11628 = vmatmul.mubr.f32.gmra.mrb[136].mxu0 %v14908_v4  ;;  %11690 = vmatmul.mubr.f32.gmra.mrb[160].mxu1 %v14924_v44  ;;  %p12992_p2 = por %p12991_p1, %p12990_p0 }
 0x9a9   : > { %11630 = vmatprep.mubr.f32.mxu0 %v14912_v57  ;;  %11692 = vmatprep.mubr.f32.mxu1 %v14928_v27  ;;  %p12986_p13 = pneg %p12985_p12 }
 0x9ab   : > { %p12993_p3 = pnand %p12992_p2, %p12986_p13 }
 0x9ac   : > { %11631 = vmatmul.mubr.f32.gmra.mrb[138].mxu0 %v14916_v29  ;;  %11693 = vmatmul.mubr.f32.gmra.mrb[162].mxu1 %v12977_v20 }
 0x9ad   : > { %11633 = vmatprep.mubr.f32.mxu0 %v14920_v40  ;;  %11695 = vmatprep.mubr.f32.mxu1 %v12978_v24 }
 0x9b0   : > { %11634 = vmatmul.mubr.f32.gmra.mrb[140].mxu0 %v14924_v44  ;;  %11696 = vmatmul.mubr.f32.gmra.mrb[164].mxu1 %v12979_v46 }
 0x9b1   : > { %11636 = vmatprep.mubr.f32.mxu0 %v14928_v27  ;;  %11698 = vmatprep.mubr.f32.mxu1 %v12980_v35 }
 0x9b4   : > { %11637 = vmatmul.mubr.f32.gmra.mrb[142].mxu0 %v12977_v20  ;;  %11699 = vmatmul.mubr.f32.gmra.mrb[166].mxu1 %v14954_v31 }
 0x9b5   : > { %11639 = vmatprep.mubr.f32.mxu0 %v12978_v24  ;;  %11701 = vmatprep.mubr.f32.mxu1 %v14964_v25 }
 0x9b8   : > { %11640 = vmatmul.mubr.f32.gmra.mrb[144].mxu0 %v12979_v46  ;;  %11702 = vmatmul.mubr.f32.gmra.mrb[168].mxu1 %v14968_v50 }
 0x9b9   : > { %11642 = vmatprep.mubr.f32.mxu0 %v12980_v35 }
 0x9bc   : > { %11643 = vmatmul.mubr.f32.gmra.mrb[146].mxu0 %v14954_v31  ;;  %v11570_v51 = vpop.f32.mrb[138].mxu1 }
 0x9bd   : > { %11645 = vmatprep.mubr.f32.mxu0 %v14964_v25  ;;  %v15076_v6 = vadd.f32 %v11570_v51, %v9768_v56  ;;  %v7165_v21 = vpop.f32.mrb[139].mxu1 }
 0x9be   : > { %v7166_v19 = vadd.f32 %v9768_v56, %v7165_v21 }
 0x9c0   : > { %11646 = vmatmul.mubr.f32.gmra.mrb[148].mxu0 %v14968_v50  ;;  %v11573_v11 = vpop.f32.mrb[140].mxu1  ;;  %v9786_v50 = vld [vmem:[%s15462_s4 + $0x3] ss:$0 sm:$0xff] }
 0x9c1   : > { %11708 = vmatprep.mubr.msk.f32.mxu0 %vm883_vm0, %v7166_v19  ;;  %v15081_v22 = vadd.f32 %v11573_v11, %v9768_v56  ;;  %v7175_v48 = vpop.f32.mrb[141].mxu1 }
 0x9c2   : > { %v7176_v8 = vadd.f32 %v9768_v56, %v7175_v48 }
 0x9c4   : > { %v11576_v10 = vpop.f32.mrb[142].mxu1 }
 0x9c5   : > { %v15087_v62 = vadd.f32 %v11576_v10, %v9768_v56  ;;  %v7185_v4 = vpop.f32.mrb[143].mxu1 }
 0x9c6   : > { %v15089_v57 = vadd.f32 %v9768_v56, %v7185_v4 }
 0x9c8   : > { %v11579_v33 = vpop.f32.mrb[144].mxu1 }
 0x9c9   : > { %v15091_v30 = vadd.f32 %v11579_v33, %v9768_v56  ;;  %v7195_v29 = vpop.f32.mrb[145].mxu1 }
 0x9ca   : > { %v15094_v40 = vadd.f32 %v9768_v56, %v7195_v29 }
 0x9cc   : > { %v11582_v44 = vpop.f32.mrb[146].mxu1 }
 0x9cd   : > { %v15097_v27 = vadd.f32 %v11582_v44, %v9768_v56  ;;  %v7205_v41 = vpop.f32.mrb[147].mxu1 }
 0x9ce   : > { %v7206_v14 = vadd.f32 %v9768_v56, %v7205_v41 }
 0x9d0   : > { %11736 = vmatprep.mubr.msk.f32.mxu1 %vm883_vm0, %v7206_v14  ;;  %v11585_v34 = vpop.f32.mrb[148].mxu1 }
 0x9d1   : > { %v15101_v53 = vadd.f32 %v11585_v34, %v9768_v56  ;;  %v7215_v1 = vpop.f32.mrb[149].mxu1 }
 0x9d2   : > { %v15103_v59 = vadd.f32 %v9768_v56, %v7215_v1 }
 0x9d4   : > { %v11588_v31 = vpop.f32.mrb[150].mxu1 }
 0x9d5   : > { %v15105_v16 = vadd.f32 %v11588_v31, %v9768_v56  ;;  %v7225_v42 = vpop.f32.mrb[151].mxu1 }
 0x9d6   : > { %v15107_v5 = vadd.f32 %v9768_v56, %v7225_v42 }
 0x9d8   : > { %v11591_v25 = vpop.f32.mrb[152].mxu1 }
 0x9d9   : > { %v15109_v13 = vadd.f32 %v11591_v25, %v9768_v56  ;;  %v7235_v28 = vpop.f32.mrb[153].mxu1 }
 0x9da   : > { %v15111_v36 = vadd.f32 %v9768_v56, %v7235_v28 }
 0xa77   : > { %v11626_v58 = vpop.f32.mrb[134].mxu0 }
 0xa78   : > { %v7341_v15 = vadd.f32 %v11626_v58, %v9786_v50  ;;  %v7335_v61 = vpop.f32.mrb[135].mxu0 }
 0xa79   : > { %v7336_v20 = vadd.f32 %v9786_v50, %v7335_v61 }
 0xa7b   : > { %v12496_v24 = vpack.c.bf16 %v7341_v15, %v7336_v20  ;;  %v11629_v46 = vpop.f32.mrb[136].mxu0 }
 0xa7c   : > { %v7351_v35 = vadd.f32 %v11629_v46, %v9786_v50  ;;  %v7345_v54 = vpop.f32.mrb[137].mxu0 }
 0xa7d   : > { %12498 = vmatprep.subr.msk.bf16.mxu0 %vm13413_vm1, %v12496_v24  ;;  %v7346_v17 = vadd.f32 %v9786_v50, %v7345_v54 }
 0xa7e   : > { %12501 = vmatpush3.bf16.xpose.msk.msra.mxu0 %vm13413_vm1, %v12496_v24 }
 0xa7f   : > { %v12502_v60 = vpack.c.bf16 %v7351_v35, %v7346_v17  ;;  %v11632_v23 = vpop.f32.mrb[138].mxu0 }
 0xa80   : > { %v7361_v47 = vadd.f32 %v11632_v23, %v9786_v50  ;;  %v7355_v2 = vpop.f32.mrb[139].mxu0 }
 0xa81   : > { %12504 = vmatprep.subr.msk.bf16.mxu0 %vm13413_vm1, %v12502_v60  ;;  %v7356_v56 = vadd.f32 %v9786_v50, %v7355_v2 }
 0xa83   : > { %v12508_v51 = vpack.c.bf16 %v7361_v47, %v7356_v56  ;;  %v11635_v21 = vpop.f32.mrb[140].mxu0 }
 0xa84   : > { %v7371_v19 = vadd.f32 %v11635_v21, %v9786_v50  ;;  %v7365_v11 = vpop.f32.mrb[141].mxu0 }
 0xa85   : > { %11709 = vmatmul.mubr.msk.f32.vlgmr.msra.gmra.mrb[150].mxu0 %vm883_vm0, %v15076_v6  ;;  %v7366_v48 = vadd.f32 %v9786_v50, %v7365_v11 }
 0xa86   : > { %12507 = vmatpush3.bf16.xpose.msk.msra.mxu0 %vm13413_vm1, %v12502_v60  ;;  %11715 = vmatprep.mubr.msk.f32.mxu0 %vm883_vm0, %v7176_v8 }
 0xa87   : > { %12510 = vmatprep.subr.msk.bf16.mxu0 %vm13413_vm1, %v12508_v51  ;;  %v12514_v10 = vpack.c.bf16 %v7371_v19, %v7366_v48  ;;  %v11638_v4 = vpop.f32.mrb[142].mxu0 }
 0xa88   : > { %v7381_v33 = vadd.f32 %v11638_v4, %v9786_v50  ;;  %v7375_v29 = vpop.f32.mrb[143].mxu0 }
 0xa89   : > { %v7376_v44 = vadd.f32 %v9786_v50, %v7375_v29 }
 0xa8b   : > { %v12520_v41 = vpack.c.bf16 %v7381_v33, %v7376_v44  ;;  %v11641_v14 = vpop.f32.mrb[144].mxu0 }
 0xa8c   : > { %v7391_v34 = vadd.f32 %v11641_v14, %v9786_v50  ;;  %v7385_v1 = vpop.f32.mrb[145].mxu0 }
 0xa8d   : > { %11716 = vmatmul.mubr.msk.f32.vlgmr.msra.gmra.mrb[152].mxu0 %vm883_vm0, %v15081_v22  ;;  %12522 = vmatprep.subr.msk.bf16.mxu1 %vm13413_vm1, %v12520_v41  ;;  %v7386_v6 = vadd.f32 %v9786_v50, %v7385_v1 }
 0xa8e   : > { %12513 = vmatpush3.bf16.xpose.msk.msra.mxu0 %vm13413_vm1, %v12508_v51  ;;  %11722 = vmatprep.mubr.msk.f32.mxu0 %vm883_vm0, %v15089_v57 }
 0xa8f   : > { %12516 = vmatprep.subr.msk.bf16.mxu0 %vm13413_vm1, %v12514_v10  ;;  %v12526_v8 = vpack.c.bf16 %v7391_v34, %v7386_v6  ;;  %12525 = vmatpush3.bf16.xpose.msk.msra.mxu1 %vm13413_vm1, %v12520_v41  ;;  %v11644_v31 = vpop.f32.mrb[146].mxu0 }
 0xa90   : > { %v7401_v42 = vadd.f32 %v11644_v31, %v9786_v50  ;;  %v7395_v22 = vpop.f32.mrb[147].mxu0 }
 0xa91   : > { %v7396_v25 = vadd.f32 %v9786_v50, %v7395_v22 }
 0xa93   : > { %v12532_v28 = vpack.c.bf16 %v7401_v42, %v7396_v25  ;;  %v11647_v58 = vpop.f32.mrb[148].mxu0 }
 0xa94   : > { %v7411_v15 = vadd.f32 %v11647_v58, %v9786_v50  ;;  %v7405_v61 = vpop.f32.mrb[149].mxu0 }
 0xa95   : > { %11723 = vmatmul.mubr.msk.f32.vlgmr.msra.gmra.mrb[154].mxu0 %vm883_vm0, %v15087_v62  ;;  %v7406_v20 = vadd.f32 %v9786_v50, %v7405_v61  ;;  %12534 = vmatprep.subr.msk.bf16.mxu1 %vm13413_vm1, %v12532_v28  ;;  %v11682_v62 = vpop.f32.mrb[154].mxu1  ;;  %v12982_v61 = vld [vmem:[%s15467_s9] sm:$0xff] }
 0xa96   : > { %12519 = vmatpush3.bf16.xpose.msk.msra.mxu0 %vm13413_vm1, %v12514_v10  ;;  %11729 = vmatprep.mubr.msk.f32.mxu0 %vm883_vm0, %v15094_v40  ;;  %v7505_v40 = vpop.f32.mrb[155].mxu1 }
 0xa97   : > { %12528 = vmatprep.subr.msk.bf16.mxu0 %vm13413_vm1, %v12526_v8  ;;  %v12538_v57 = vpack.c.bf16 %v7411_v15, %v7406_v20  ;;  %11737 = vmatmul.mubr.msk.f32.vlgmr.msra.gmra.mrb[170].mxu1 %vm883_vm0, %v15097_v27 }
 0xa98   : > { %12537 = vmatpush3.bf16.xpose.msk.msra.mxu1 %vm13413_vm1, %v12532_v28  ;;  %11750 = vmatprep.mubr.msk.f32.mxu1 %vm883_vm0, %v15107_v5  ;;  %v11685_v5 = vpop.f32.mrb[156].mxu1  ;;  %v12981_v28 = vld [vmem:[%s15467_s9 + $0x8] sm:$0xff] }
 0xa9d   : > { %11730 = vmatmul.mubr.msk.f32.vlgmr.msra.gmra.mrb[156].mxu0 %vm883_vm0, %v15091_v30  ;;  %v9804_v30 = vld [vmem:[%s15464_s6 + $0x3] ss:$0 sm:$0xff] }
 0xa9e   : > { %12531 = vmatpush3.bf16.xpose.msk.msra.mxu0 %vm13413_vm1, %v12526_v8  ;;  %11743 = vmatprep.mubr.msk.f32.mxu0 %vm883_vm0, %v15103_v59  ;;  %v7511_v27 = vadd.f32 %v11682_v62, %v9804_v30  ;;  %v7506_v59 = vadd.f32 %v9804_v30, %v7505_v40  ;;  %v7521_v49 = vadd.f32 %v11685_v5, %v9804_v30 }
 0xa9f   : > { %12540 = vmatprep.subr.msk.bf16.mxu0 %vm13413_vm1, %v12538_v57  ;;  %11751 = vmatmul.mubr.msk.f32.vlgmr.msra.gmra.mrb[172].mxu1 %vm883_vm0, %v15105_v16 }
 0xaa0   : > { %v12544_v16 = vpack.c.bf16 %v7511_v27, %v7506_v59 }
 0xaa2   : > { %12545 = vmatprep.subr.bf16.mxu1 %v12544_v16 }
 0xaa3   : > { %12547 = vmatpush3.bf16.msra.mxu1 %v12544_v16 }
 0xaa5   : > { %11744 = vmatmul.mubr.msk.f32.vlgmr.msra.gmra.mrb[158].mxu0 %vm883_vm0, %v15101_v53  ;;  %v7515_v53 = vpop.f32.mrb[157].mxu1 }
 0xaa6   : > { %12543 = vmatpush3.bf16.xpose.msk.msra.mxu0 %vm13413_vm1, %v12538_v57  ;;  %11757 = vmatprep.mubr.msk.f32.mxu0 %vm883_vm0, %v15111_v36  ;;  %v7516_v50 = vadd.f32 %v9804_v30, %v7515_v53  ;;  %v11688_v24 = vpop.f32.mrb[158].mxu1 }
 0xaa7   : > { %v7525_v46 = vpop.f32.mrb[159].mxu1 }
 0xaa8   : > { %v15178_v36 = vpack.c.bf16 %v7521_v49, %v7516_v50  ;;  %v7526_v35 = vadd.f32 %v9804_v30, %v7525_v46  ;;  %v11691_v17 = vpop.f32.mrb[160].mxu1 }
 0xaa9   : > { %v7535_v60 = vpop.f32.mrb[161].mxu1  ;;  %v7541_v23 = vadd.f32 %v11691_v17, %v9804_v30 }
 0xaaa   : > { %12549 = vmatprep.subr.bf16.mxu1 %v15178_v36  ;;  %v7536_v47 = vadd.f32 %v9804_v30, %v7535_v60  ;;  %v11694_v56 = vpop.f32.mrb[162].mxu1 }
 0xaab   : > { %v7545_v51 = vpop.f32.mrb[163].mxu1  ;;  %v7551_v21 = vadd.f32 %v11694_v56, %v9804_v30 }
 0xaac   : > { %v15181_v2 = vpack.c.bf16 %v7541_v23, %v7536_v47  ;;  %v7546_v19 = vadd.f32 %v9804_v30, %v7545_v51  ;;  %v11697_v48 = vpop.f32.mrb[164].mxu1 }
 0xaad   : > { %11758 = vmatmul.mubr.msk.f32.vlgmr.msra.gmra.mrb[160].mxu0 %vm883_vm0, %v15109_v13  ;;  %v7531_v13 = vadd.f32 %v11688_v24, %v9804_v30  ;;  %v7555_v10 = vpop.f32.mrb[165].mxu1  ;;  %v7561_v4 = vadd.f32 %v11697_v48, %v9804_v30 }
 0xaae   : > { %v15183_v11 = vpack.c.bf16 %v7551_v21, %v7546_v19  ;;  %v7556_v33 = vadd.f32 %v9804_v30, %v7555_v10  ;;  %v11700_v44 = vpop.f32.mrb[166].mxu1 }
 0xaaf   : > { %v12552_v54 = vpack.c.bf16 %v7531_v13, %v7526_v35  ;;  %v7571_v41 = vadd.f32 %v11700_v44, %v9804_v30  ;;  %v7565_v14 = vpop.f32.mrb[167].mxu1 }
 0xab0   : > { %v15186_v29 = vpack.c.bf16 %v7561_v4, %v7556_v33  ;;  %v7566_v34 = vadd.f32 %v9804_v30, %v7565_v14  ;;  %v11703_v6 = vpop.f32.mrb[168].mxu1 }
 0xab1   : > { %12553 = vmatprep.subr.bf16.mxu0 %v12552_v54  ;;  %v7575_v8 = vpop.f32.mrb[169].mxu1  ;;  %v7581_v31 = vadd.f32 %v11703_v6, %v9804_v30 }
 0xab2   : > { %12555 = vmatpush3.bf16.msra.mxu0 %v12552_v54  ;;  %v15188_v1 = vpack.c.bf16 %v7571_v41, %v7566_v34  ;;  %v7576_v42 = vadd.f32 %v9804_v30, %v7575_v8 }
 0xab3   : > { %12561 = vmatprep.subr.bf16.mxu0 %v15183_v11 }
 0xab4   : > { %v15190_v22 = vpack.c.bf16 %v7581_v31, %v7576_v42 }
 0xb58   : > { %v11710_v25 = vpop.f32.mrb[150].mxu0 }
 0xb59   : > { %v15195_v58 = vadd.f32 %v12981_v28, %v11710_v25  ;;  %v7662_v15 = vpop.f32.mrb[151].mxu0 }
 0xb5a   : > { %v15200_v20 = vadd.f32 %v12982_v61, %v7662_v15 }
 0xb5b   : > { %v8283_v57 = vsel %vm1580_vm2, %v15195_v58, -inf }
 0xb5c   : > { %8284 = vmax.xlane.f32.xlu1 %v8283_v57  ;;  %v8280_v62 = vsel %vm1580_vm2, %v15200_v20, -inf }
 0xb5d   : > { %8281 = vmax.xlane.f32.xlu0 %v8280_v62 }
 0xb60   : > { %v11717_v30 = vpop.f32.mrb[152].mxu0 }
 0xb61   : > { %v15206_v40 = vadd.f32 %v12981_v28, %v11717_v30  ;;  %v7749_v27 = vpop.f32.mrb[153].mxu0 }
 0xb62   : > { %v15208_v59 = vadd.f32 %v12982_v61, %v7749_v27 }
 0xb63   : > { %v8289_v16 = vsel %vm1580_vm2, %v15206_v40, -inf }
 0xb64   : > { %8290 = vmax.xlane.f32.xlu1 %v8289_v16  ;;  %v8286_v5 = vsel %vm1580_vm2, %v15208_v59, -inf }
 0xb65   : > { %8287 = vmax.xlane.f32.xlu0 %v8286_v5 }
 0xb68   : > { %v11724_v53 = vpop.f32.mrb[154].mxu0 }
 0xb69   : > { %v15214_v49 = vadd.f32 %v12981_v28, %v11724_v53  ;;  %v7836_v50 = vpop.f32.mrb[155].mxu0 }
 0xb6a   : > { %v15216_v24 = vadd.f32 %v12982_v61, %v7836_v50  ;;  %v11738_v46 = vpop.f32.mrb[170].mxu1 }
 0xb6b   : > { %v8295_v13 = vsel %vm1580_vm2, %v15214_v49, -inf  ;;  %v8010_v35 = vpop.f32.mrb[171].mxu1  ;;  %v15226_v51 = vadd.f32 %v12981_v28, %v11738_v46 }
 0xb6c   : > { %8296 = vmax.xlane.f32.xlu1 %v8295_v13  ;;  %v8292_v54 = vsel %vm1580_vm2, %v15216_v24, -inf  ;;  %v15230_v48 = vadd.f32 %v12982_v61, %v8010_v35 }
 0xb6d   : > { %8293 = vmax.xlane.f32.xlu0 %v8292_v54  ;;  %v8307_v4 = vsel %vm1580_vm2, %v15226_v51, -inf }
 0xb6e   : > { %v8304_v44 = vsel %vm1580_vm2, %v15230_v48, -inf }
 0xb70   : > { %v11731_v17 = vpop.f32.mrb[156].mxu0 }
 0xb71   : > { %v15222_v60 = vadd.f32 %v12981_v28, %v11731_v17  ;;  %v7923_v23 = vpop.f32.mrb[157].mxu0 }
 0xb72   : > { %v15224_v47 = vadd.f32 %v12982_v61, %v7923_v23  ;;  %v11752_v56 = vpop.f32.mrb[172].mxu1 }
 0xb73   : > { %v8301_v21 = vsel %vm1580_vm2, %v15222_v60, -inf  ;;  %v8184_v19 = vpop.f32.mrb[173].mxu1  ;;  %v15242_v6 = vadd.f32 %v12981_v28, %v11752_v56 }
 0xb74   : > { %8302 = vmax.xlane.f32.xlu1 %v8301_v21  ;;  %v8298_v10 = vsel %vm1580_vm2, %v15224_v47, -inf  ;;  %v15246_v31 = vadd.f32 %v12982_v61, %v8184_v19 }
 0xb75   : > { %8299 = vmax.xlane.f32.xlu0 %v8298_v10  ;;  %v8319_v25 = vsel %vm1580_vm2, %v15242_v6, -inf }
 0xb76   : > { %v8316_v57 = vsel %vm1580_vm2, %v15246_v31, -inf }
 0xb78   : > { %8308 = vmax.xlane.f32.xlu1 %v8307_v4  ;;  %v11745_v33 = vpop.f32.mrb[158].mxu0 }
 0xb79   : > { %v15238_v41 = vadd.f32 %v12981_v28, %v11745_v33  ;;  %v8097_v14 = vpop.f32.mrb[159].mxu0  ;;  %8305 = vmax.xlane.f32.xlu0 %v8304_v44 }
 0xb7a   : > { %v15240_v34 = vadd.f32 %v12982_v61, %v8097_v14 }
 0xb7b   : > { %v8313_v8 = vsel %vm1580_vm2, %v15238_v41, -inf }
 0xb7c   : > { %8314 = vmax.xlane.f32.xlu1 %v8313_v8  ;;  %v8310_v42 = vsel %vm1580_vm2, %v15240_v34, -inf }
 0xb7d   : > { %8311 = vmax.xlane.f32.xlu0 %v8310_v42 }
 0xb80   : > { %8320 = vmax.xlane.f32.xlu1 %v8319_v25  ;;  %v11759_v15 = vpop.f32.mrb[160].mxu0 }
 0xb81   : > { %v15254_v62 = vadd.f32 %v12981_v28, %v11759_v15  ;;  %v8271_v30 = vpop.f32.mrb[161].mxu0  ;;  %8317 = vmax.xlane.f32.xlu0 %v8316_v57 }
 0xb82   : > { %v15256_v27 = vadd.f32 %v12982_v61, %v8271_v30 }
 0xb83   : > { %v8325_v16 = vsel %vm1580_vm2, %v15254_v62, -inf }
 0xb84   : > { %8326 = vmax.xlane.f32.xlu1 %v8325_v16  ;;  %v8322_v5 = vsel %vm1580_vm2, %v15256_v27, -inf }
 0xb85   : > { %8323 = vmax.xlane.f32.xlu0 %v8322_v5 }
 0xbe9   : > { %v8285_v53 = vpop.xlane.xlu1 %8284 }
 0xbea   : > { %v8329_v50 = vsub.f32 %v15195_v58, %v8285_v53  ;;  %v8282_v46 = vpop.xlane.xlu0 %8281 }
 0xbeb   : > { %v8328_v13 = vsub.f32 %v15200_v20, %v8282_v46 }
 0xbec   : > { %v8346_v28 = vmul.f32 1.442695, %v8329_v50 }
 0xbed   : > { %v8344_v35 = vmul.f32 1.442695, %v8328_v13 }
 0xbee   : > { %12865 = vpow2.f32 %v8346_v28 }
 0xbef   : > { %12867 = vpow2.f32 %v8344_v35 }
 0xbf1   : > { %v8291_v61 = vpop.xlane.xlu1 %8290 }
 0xbf2   : > { %v8331_v54 = vsub.f32 %v15206_v40, %v8291_v61  ;;  %v8288_v17 = vpop.xlane.xlu0 %8287 }
 0xbf3   : > { %v8330_v23 = vsub.f32 %v15208_v59, %v8288_v17 }
 0xbf4   : > { %v8350_v56 = vmul.f32 1.442695, %v8331_v54 }
 0xbf5   : > { %v8348_v21 = vmul.f32 1.442695, %v8330_v23 }
 0xbf6   : > { %12869 = vpow2.f32 %v8350_v56 }
 0xbf7   : > { %12871 = vpow2.f32 %v8348_v21 }
 0xbf8   : > { %v12866_v19 = vpop.eup %12865 }
 0xbf9   : > { %v12868_v10 = vpop.eup %12867  ;;  %v8297_v58 = vpop.xlane.xlu1 %8296  ;;  %v8379_v4 = vsel %vm1580_vm2, %v12866_v19, 0.0 }
 0xbfa   : > { %v8333_v20 = vsub.f32 %v15214_v49, %v8297_v58  ;;  %8380 = vadd.xlane.f32.xlu1 %v8379_v4  ;;  %11764 = vmatprep.mubr.msk.f32.mxu1 %vm1580_vm2, %v12868_v10  ;;  %v8294_v33 = vpop.xlane.xlu0 %8293  ;;  %v8376_v40 = vsel %vm1580_vm2, %v12868_v10, 0.0 }
 0xbfb   : > { %v8332_v44 = vsub.f32 %v15216_v24, %v8294_v33  ;;  %11765 = vmatmul.mubr.msk.f32.vlgmr.msra.gmra.mrb[174].mxu1 %vm1580_vm2, %v12866_v19  ;;  %8377 = vadd.xlane.f32.xlu0 %v8376_v40 }
 0xbfc   : > { %v8354_v59 = vmul.f32 1.442695, %v8333_v20  ;;  %12551 = vmatpush3.bf16.msra.mxu1 %v15178_v36 }
 0xbfd   : > { %v8352_v14 = vmul.f32 1.442695, %v8332_v44  ;;  %12557 = vmatprep.subr.bf16.mxu1 %v15181_v2 }
 0xbfe   : > { %12873 = vpow2.f32 %v8354_v59 }
 0xbff   : > { %12875 = vpow2.f32 %v8352_v14 }
 0xc00   : > { %v12870_v49 = vpop.eup %12869 }
 0xc01   : > { %v12872_v8 = vpop.eup %12871  ;;  %v8303_v42 = vpop.xlane.xlu1 %8302  ;;  %v8385_v25 = vsel %vm1580_vm2, %v12870_v49, 0.0 }
 0xc02   : > { %v8335_v15 = vsub.f32 %v15222_v60, %v8303_v42  ;;  %8386 = vadd.xlane.f32.xlu1 %v8385_v25  ;;  %11771 = vmatprep.mubr.msk.f32.mxu1 %vm1580_vm2, %v12872_v8  ;;  %v8300_v24 = vpop.xlane.xlu0 %8299  ;;  %v8382_v57 = vsel %vm1580_vm2, %v12872_v8, 0.0 }
 0xc03   : > { %v8334_v36 = vsub.f32 %v15224_v47, %v8300_v24  ;;  %11772 = vmatmul.mubr.msk.f32.vlgmr.msra.gmra.mrb[176].mxu1 %vm1580_vm2, %v12870_v49  ;;  %8383 = vadd.xlane.f32.xlu0 %v8382_v57 }
 0xc04   : > { %v8358_v30 = vmul.f32 1.442695, %v8335_v15  ;;  %12559 = vmatpush3.bf16.msra.mxu1 %v15181_v2 }
 0xc05   : > { %v8356_v16 = vmul.f32 1.442695, %v8334_v36  ;;  %12565 = vmatprep.subr.bf16.mxu1 %v15186_v29  ;;  %v8309_v5 = vpop.xlane.xlu1 %8308 }
 0xc06   : > { %12877 = vpow2.f32 %v8358_v30  ;;  %v8337_v60 = vsub.f32 %v15226_v51, %v8309_v5  ;;  %v8306_v53 = vpop.xlane.xlu0 %8305  ;;  %v9853_v5 = vld [vmem:[%s15465_s7 + $0x60] sm:$0xff] }
 0xc07   : > { %12879 = vpow2.f32 %v8356_v16  ;;  %v8336_v50 = vsub.f32 %v15230_v48, %v8306_v53 }
 0xc08   : > { %v12874_v46 = vpop.eup %12873  ;;  %v8362_v13 = vmul.f32 1.442695, %v8337_v60  ;;  %v9854_v60 = vld [vmem:[%s15465_s7 + $0x68] sm:$0xff] }
 0xc09   : > { %v12876_v47 = vpop.eup %12875  ;;  %v8360_v28 = vmul.f32 1.442695, %v8336_v50  ;;  %v8315_v35 = vpop.xlane.xlu1 %8314  ;;  %v8391_v61 = vsel %vm1580_vm2, %v12874_v46, 0.0  ;;  %v12576_v53 = vpack.c.bf16 %v9854_v60, %v9853_v5  ;;  %v9855_v50 = vld [vmem:[%s15465_s7 + $0x70] sm:$0xff] }
 0xc0a   : > { %12881 = vpow2.f32 %v8362_v13  ;;  %v8339_v2 = vsub.f32 %v15238_v41, %v8315_v35  ;;  %8392 = vadd.xlane.f32.xlu1 %v8391_v61  ;;  %11778 = vmatprep.mubr.msk.f32.mxu0 %vm1580_vm2, %v12876_v47  ;;  %v8312_v54 = vpop.xlane.xlu0 %8311  ;;  %v8388_v51 = vsel %vm1580_vm2, %v12876_v47, 0.0 }
 0xc0b   : > { %12883 = vpow2.f32 %v8360_v28  ;;  %v8338_v17 = vsub.f32 %v15240_v34, %v8312_v54  ;;  %11779 = vmatmul.mubr.msk.f32.vlgmr.msra.gmra.mrb[162].mxu0 %vm1580_vm2, %v12874_v46  ;;  %8389 = vadd.xlane.f32.xlu0 %v8388_v51  ;;  %v9856_v46 = vld [vmem:[%s15465_s7 + $0x78] sm:$0xff] }
 0xc0c   : > { %v8366_v48 = vmul.f32 1.442695, %v8339_v2  ;;  %12563 = vmatpush3.bf16.msra.mxu0 %v15183_v11  ;;  %v12580_v13 = vpack.c.bf16 %v9856_v46, %v9855_v50 }
 0xc0d   : > { %v8364_v23 = vmul.f32 1.442695, %v8338_v17  ;;  %12569 = vmatprep.subr.bf16.mxu0 %v15188_v1  ;;  %v8321_v56 = vpop.xlane.xlu1 %8320 }
 0xc0e   : > { %12885 = vpow2.f32 %v8366_v48  ;;  %v8341_v41 = vsub.f32 %v15242_v6, %v8321_v56  ;;  %v8318_v21 = vpop.xlane.xlu0 %8317 }
 0xc0f   : > { %12887 = vpow2.f32 %v8364_v23  ;;  %v8340_v19 = vsub.f32 %v15246_v31, %v8318_v21 }
 0xc10   : > { %v12878_v10 = vpop.eup %12877  ;;  %v8370_v58 = vmul.f32 1.442695, %v8341_v41 }
 0xc11   : > { %v12880_v34 = vpop.eup %12879  ;;  %v8368_v4 = vmul.f32 1.442695, %v8340_v19  ;;  %v8327_v20 = vpop.xlane.xlu1 %8326  ;;  %v8397_v33 = vsel %vm1580_vm2, %v12878_v10, 0.0 }
 0xc12   : > { %12889 = vpow2.f32 %v8370_v58  ;;  %v8343_v11 = vsub.f32 %v15254_v62, %v8327_v20  ;;  %8398 = vadd.xlane.f32.xlu1 %v8397_v33  ;;  %11785 = vmatprep.mubr.msk.f32.mxu1 %vm1580_vm2, %v12880_v34  ;;  %v8324_v40 = vpop.xlane.xlu0 %8323  ;;  %v8394_v6 = vsel %vm1580_vm2, %v12880_v34, 0.0 }
 0xc13   : > { %12891 = vpow2.f32 %v8368_v4  ;;  %v8342_v44 = vsub.f32 %v15256_v27, %v8324_v40  ;;  %11786 = vmatmul.mubr.msk.f32.vlgmr.msra.gmra.mrb[178].mxu1 %vm1580_vm2, %v12878_v10  ;;  %8395 = vadd.xlane.f32.xlu0 %v8394_v6 }
 0xc14   : > { %v12882_v31 = vpop.eup %12881  ;;  %v8374_v59 = vmul.f32 1.442695, %v8343_v11  ;;  %12567 = vmatpush3.bf16.msra.mxu1 %v15186_v29 }
 0xc15   : > { %v12884_v14 = vpop.eup %12883  ;;  %v8372_v49 = vmul.f32 1.442695, %v8342_v44  ;;  %12573 = vmatprep.subr.bf16.mxu1 %v15190_v22  ;;  %v8403_v62 = vsel %vm1580_vm2, %v12882_v31, 0.0 }
 0xc16   : > { %12893 = vpow2.f32 %v8374_v59  ;;  %8404 = vadd.xlane.f32.xlu1 %v8403_v62  ;;  %11792 = vmatprep.mubr.msk.f32.mxu0 %vm1580_vm2, %v12884_v14  ;;  %v8400_v8 = vsel %vm1580_vm2, %v12884_v14, 0.0 }
 0xc17   : > { %12895 = vpow2.f32 %v8372_v49  ;;  %11793 = vmatmul.mubr.msk.f32.vlgmr.msra.gmra.mrb[164].mxu0 %vm1580_vm2, %v12882_v31  ;;  %8401 = vadd.xlane.f32.xlu0 %v8400_v8 }
 0xc18   : > { %v12886_v27 = vpop.eup %12885  ;;  %12571 = vmatpush3.bf16.msra.mxu0 %v15188_v1 }
 0xc19   : > { %v12888_v29 = vpop.eup %12887  ;;  %v8409_v42 = vsel %vm1580_vm2, %v12886_v27, 0.0  ;;  %12577 = vmatprep.subr.bf16.mxu0 %v12576_v53 }
 0xc1a   : > { %8410 = vadd.xlane.f32.xlu1 %v8409_v42  ;;  %11799 = vmatprep.mubr.msk.f32.mxu1 %vm1580_vm2, %v12888_v29  ;;  %v8406_v25 = vsel %vm1580_vm2, %v12888_v29, 0.0 }
 0xc1b   : > { %11800 = vmatmul.mubr.msk.f32.vlgmr.msra.gmra.mrb[180].mxu1 %vm1580_vm2, %v12886_v27  ;;  %8407 = vadd.xlane.f32.xlu0 %v8406_v25 }
 0xc1c   : > { %v12890_v15 = vpop.eup %12889  ;;  %12575 = vmatpush3.bf16.msra.mxu1 %v15190_v22 }
 0xc1d   : > { %v12892_v24 = vpop.eup %12891  ;;  %v8415_v57 = vsel %vm1580_vm2, %v12890_v15, 0.0 }
 0xc1e   : > { %8416 = vadd.xlane.f32.xlu1 %v8415_v57  ;;  %11806 = vmatprep.mubr.msk.f32.mxu0 %vm1580_vm2, %v12892_v24  ;;  %v8412_v1 = vsel %vm1580_vm2, %v12892_v24, 0.0 }
 0xc1f   : > { %11807 = vmatmul.mubr.msk.f32.vlgmr.msra.gmra.mrb[166].mxu0 %vm1580_vm2, %v12890_v15  ;;  %8413 = vadd.xlane.f32.xlu0 %v8412_v1 }
 0xc20   : > { %v12894_v36 = vpop.eup %12893  ;;  %12579 = vmatpush3.bf16.msra.mxu0 %v12576_v53 }
 0xc21   : > { %v12896_v30 = vpop.eup %12895  ;;  %v8421_v16 = vsel %vm1580_vm2, %v12894_v36, 0.0  ;;  %12581 = vmatprep.subr.bf16.mxu0 %v12580_v13 }
 0xc22   : > { %8422 = vadd.xlane.f32.xlu1 %v8421_v16  ;;  %11813 = vmatprep.mubr.msk.f32.mxu1 %vm1580_vm2, %v12896_v30  ;;  %v8418_v22 = vsel %vm1580_vm2, %v12896_v30, 0.0 }
 0xc23   : > { %11814 = vmatmul.mubr.msk.f32.vlgmr.msra.gmra.mrb[182].mxu1 %vm1580_vm2, %v12894_v36  ;;  %8419 = vadd.xlane.f32.xlu0 %v8418_v22 }
 0xc24   : > { %12583 = vmatpush3.bf16.msra.mxu0 %v12580_v13 }
 0xc87   : > { %v8381_v28 = vpop.xlane.xlu1 %8380 }
 0xc88   : > { %v8378_v47 = vpop.xlane.xlu0 %8377 }
 0xc89   : > { %12897 = vrcp.f32 %v8378_v47 }
 0xc8a   : > { %12899 = vrcp.f32 %v8381_v28 }
 0xc8f   : > { %v8387_v61 = vpop.xlane.xlu1 %8386 }
 0xc90   : > { %v8384_v35 = vpop.xlane.xlu0 %8383 }
 0xc91   : > { %12901 = vrcp.f32 %v8384_v35 }
 0xc92   : > { %12903 = vrcp.f32 %v8387_v61 }
 0xc93   : > { %v12898_v51 = vpop.eup %12897 }
 0xc94   : > { %v12900_v23 = vpop.eup %12899 }
 0xc97   : > { %v8393_v17 = vpop.xlane.xlu1 %8392 }
 0xc98   : > { %v8390_v2 = vpop.xlane.xlu0 %8389 }
 0xc99   : > { %12905 = vrcp.f32 %v8390_v2 }
 0xc9a   : > { %12907 = vrcp.f32 %v8393_v17 }
 0xc9b   : > { %v12902_v58 = vpop.eup %12901 }
 0xc9c   : > { %v12904_v4 = vpop.eup %12903 }
 0xc9f   : > { %v8399_v19 = vpop.xlane.xlu1 %8398 }
 0xca0   : > { %v8396_v21 = vpop.xlane.xlu0 %8395 }
 0xca1   : > { %12909 = vrcp.f32 %v8396_v21 }
 0xca2   : > { %12911 = vrcp.f32 %v8399_v19 }
 0xca3   : > { %v8405_v11 = vpop.xlane.xlu1 %8404  ;;  %v12906_v31 = vpop.eup %12905 }
 0xca4   : > { %v8402_v20 = vpop.xlane.xlu0 %8401  ;;  %v12908_v49 = vpop.eup %12907 }
 0xca5   : > { %12913 = vrcp.f32 %v8402_v20 }
 0xca6   : > { %12915 = vrcp.f32 %v8405_v11 }
 0xca7   : > { %v8411_v59 = vpop.xlane.xlu1 %8410 }
 0xca8   : > { %v8408_v6 = vpop.xlane.xlu0 %8407 }
 0xca9   : > { %12917 = vrcp.f32 %v8408_v6 }
 0xcaa   : > { %12919 = vrcp.f32 %v8411_v59 }
 0xcab   : > { %v8417_v29 = vpop.xlane.xlu1 %8416  ;;  %v12910_v25 = vpop.eup %12909 }
 0xcac   : > { %v8414_v27 = vpop.xlane.xlu0 %8413  ;;  %v12912_v24 = vpop.eup %12911 }
 0xcad   : > { %12921 = vrcp.f32 %v8414_v27 }
 0xcae   : > { %12923 = vrcp.f32 %v8417_v29 }
 0xcaf   : > { %v12914_v16 = vpop.eup %12913  ;;  %v8423_v22 = vpop.xlane.xlu1 %8422 }
 0xcb0   : > { %v8420_v36 = vpop.xlane.xlu0 %8419  ;;  %v12916_v60 = vpop.eup %12915 }
 0xcb1   : > { %12925 = vrcp.f32 %v8420_v36 }
 0xcb2   : > { %12927 = vrcp.f32 %v8423_v22 }
 0xcb3   : > { %v12918_v13 = vpop.eup %12917 }
 0xcb4   : > { %v12920_v28 = vpop.eup %12919 }
 0xcce   : > { %v11766_v54 = vpop.f32.mrb[174].mxu1 }
 0xccf   : > { %v8496_v48 = vpop.f32.mrb[175].mxu1  ;;  %v9089_v41 = vmul.f32 %v12900_v23, %v11766_v54  ;;  %v12922_v54 = vpop.eup %12921 }
 0xcd0   : > { %v9088_v56 = vmul.f32 %v12898_v51, %v8496_v48  ;;  %v12924_v17 = vpop.eup %12923 }
 0xcd2   : > { %11824 = vmatprep.mubr.msk.f32.mxu0 %vm883_vm0, %v9088_v56 }
 0xcd3   : > { %11825 = vmatmul.mubr.msk.f32.vlgmr.msra.gmra.mrb[88].mxu0 %vm883_vm0, %v9089_v41  ;;  %v12926_v41 = vpop.eup %12925 }
 0xcd4   : > { %v12928_v19 = vpop.eup %12927 }
 0xcd6   : > { %v11773_v10 = vpop.f32.mrb[176].mxu1 }
 0xcd7   : > { %v8577_v34 = vpop.f32.mrb[177].mxu1  ;;  %v9091_v40 = vmul.f32 %v12904_v4, %v11773_v10  ;;  %v15354_v4 = vld [vmem:[%s15466_s8] ss:$0 sm:$0xff] }
 0xcd8   : > { %v9090_v33 = vmul.f32 %v12902_v58, %v8577_v34 }
 0xcda   : > { %11827 = vmatprep.mubr.msk.f32.mxu0 %vm883_vm0, %v9090_v33 }
 0xcdb   : > { %11828 = vmatmul.mubr.msk.f32.gmra.mrb[90].mxu0 %vm883_vm0, %v9091_v40 }
 0xcde   : > { %v11780_v44 = vpop.f32.mrb[162].mxu0 }
 0xcdf   : > { %v8658_v14 = vpop.f32.mrb[163].mxu0  ;;  %v9093_v8 = vmul.f32 %v12908_v49, %v11780_v44 }
 0xce0   : > { %v9092_v62 = vmul.f32 %v12906_v31, %v8658_v14 }
 0xce2   : > { %11830 = vmatprep.mubr.msk.f32.mxu0 %vm883_vm0, %v9092_v62 }
 0xce3   : > { %11831 = vmatmul.mubr.msk.f32.gmra.mrb[92].mxu0 %vm883_vm0, %v9093_v8 }
 0xce6   : > { %v11787_v42 = vpop.f32.mrb[178].mxu1 }
 0xce7   : > { %v8739_v15 = vpop.f32.mrb[179].mxu1  ;;  %v9095_v1 = vmul.f32 %v12912_v24, %v11787_v42 }
 0xce8   : > { %v9094_v57 = vmul.f32 %v12910_v25, %v8739_v15 }
 0xcea   : > { %v11794_v30 = vpop.f32.mrb[164].mxu0  ;;  %11833 = vmatprep.mubr.msk.f32.mxu0 %vm883_vm0, %v9094_v57 }
 0xceb   : > { %v8820_v5 = vpop.f32.mrb[165].mxu0  ;;  %11834 = vmatmul.mubr.msk.f32.gmra.mrb[94].mxu0 %vm883_vm0, %v9095_v1  ;;  %v9097_v50 = vmul.f32 %v12916_v60, %v11794_v30 }
 0xcec   : > { %v9096_v53 = vmul.f32 %v12914_v16, %v8820_v5 }
 0xcee   : > { %v11801_v46 = vpop.f32.mrb[180].mxu1  ;;  %11836 = vmatprep.mubr.msk.f32.mxu0 %vm883_vm0, %v9096_v53 }
 0xcef   : > { %v8901_v47 = vpop.f32.mrb[181].mxu1  ;;  %11837 = vmatmul.mubr.msk.f32.gmra.mrb[96].mxu0 %vm883_vm0, %v9097_v50  ;;  %v9099_v61 = vmul.f32 %v12920_v28, %v11801_v46 }
 0xcf0   : > { %v9098_v35 = vmul.f32 %v12918_v13, %v8901_v47 }
 0xcf2   : > { %v11808_v2 = vpop.f32.mrb[166].mxu0  ;;  %11839 = vmatprep.mubr.msk.f32.mxu0 %vm883_vm0, %v9098_v35 }
 0xcf3   : > { %v8982_v51 = vpop.f32.mrb[167].mxu0  ;;  %11840 = vmatmul.mubr.msk.f32.gmra.mrb[98].mxu0 %vm883_vm0, %v9099_v61  ;;  %v9101_v23 = vmul.f32 %v12924_v17, %v11808_v2 }
 0xcf4   : > { %v9100_v48 = vmul.f32 %v12922_v54, %v8982_v51 }
 0xcf6   : > { %v11815_v56 = vpop.f32.mrb[182].mxu1  ;;  %11842 = vmatprep.mubr.msk.f32.mxu0 %vm883_vm0, %v9100_v48 }
 0xcf7   : > { %v9063_v21 = vpop.f32.mrb[183].mxu1  ;;  %11843 = vmatmul.mubr.msk.f32.gmra.mrb[100].mxu0 %vm883_vm0, %v9101_v23  ;;  %v9103_v58 = vmul.f32 %v12928_v19, %v11815_v56 }
 0xcf8   : > { %v9102_v10 = vmul.f32 %v12926_v41, %v9063_v21 }
 0xcfa   : > { %11845 = vmatprep.mubr.msk.f32.mxu0 %vm883_vm0, %v9102_v10 }
 0xcfb   : > { %11846 = vmatmul.mubr.msk.f32.gmra.mrb[102].mxu0 %vm883_vm0, %v9103_v58 }
 0xda6   : > { %v11826_v34 = vpop.f32.mrb[88].mxu0 }
 0xda7   : > { %v12584_v20 = vadd.f32 %v11826_v34, %v14538_v3  ;;  %v9223_v33 = vpop.f32.mrb[89].mxu0 }
 0xda8   : > { %v12585_v11 = vadd.f32 %v9223_v33, %v14540_v43 }
 0xda9   : > { %v9326_v40 = vadd.f32 %v12584_v20, %v15354_v4 }
 0xdaa   : > { %v9325_v6 = vadd.f32 %v12585_v11, %v15354_v4 }
 0xdab   : > { %9342 = vst [vmem:[%s15360_s25 + $0x8] sm:$0xff] %v9326_v40 }
 0xdac   : > { %9341 = vst [vmem:[%s15360_s25] sm:$0xff] %v9325_v6 }
 0xdae   : > { %v11829_v44 = vpop.f32.mrb[90].mxu0 }
 0xdaf   : > { %v12586_v3 = vadd.f32 %v11829_v44, %v14542_v55  ;;  %v9233_v31 = vpop.f32.mrb[91].mxu0 }
 0xdb0   : > { %v12587_v43 = vadd.f32 %v9233_v31, %v14544_v39 }
 0xdb1   : > { %v9328_v59 = vadd.f32 %v12586_v3, %v15354_v4 }
 0xdb2   : > { %v9327_v14 = vadd.f32 %v12587_v43, %v15354_v4 }
 0xdb3   : > { %9344 = vst [vmem:[%s15360_s25 + $0x18] sm:$0xff] %v9328_v59 }
 0xdb4   : > { %9343 = vst [vmem:[%s15360_s25 + $0x10] sm:$0xff] %v9327_v14 }
 0xdb6   : > { %v11832_v49 = vpop.f32.mrb[92].mxu0 }
 0xdb7   : > { %v12588_v62 = vadd.f32 %v11832_v49, %v14546_v32  ;;  %v9243_v8 = vpop.f32.mrb[93].mxu0 }
 0xdb8   : > { %v12589_v27 = vadd.f32 %v9243_v8, %v14548_v37 }
 0xdb9   : > { %v9330_v29 = vadd.f32 %v12588_v62, %v15354_v4 }
 0xdba   : > { %v9329_v55 = vadd.f32 %v12589_v27, %v15354_v4 }
 0xdbb   : > { %9346 = vst [vmem:[%s15360_s25 + $0x28] sm:$0xff] %v9330_v29 }
 0xdbc   : > { %9345 = vst [vmem:[%s15360_s25 + $0x20] sm:$0xff] %v9329_v55 }
 0xdbe   : > { %v11835_v39 = vpop.f32.mrb[94].mxu0 }
 0xdbf   : > { %v12590_v42 = vadd.f32 %v11835_v39, %v14550_v7  ;;  %v9253_v25 = vpop.f32.mrb[95].mxu0 }
 0xdc0   : > { %v12591_v15 = vadd.f32 %v9253_v25, %v14552_v63 }
 0xdc1   : > { %v9332_v32 = vadd.f32 %v12590_v42, %v15354_v4 }
 0xdc2   : > { %v9331_v24 = vadd.f32 %v12591_v15, %v15354_v4  ;;  %v11838_v57 = vpop.f32.mrb[96].mxu0 }
 0xdc3   : > { %9348 = vst [vmem:[%s15360_s25 + $0x38] sm:$0xff] %v9332_v32  ;;  %v12592_v37 = vadd.f32 %v11838_v57, %v14554_v52  ;;  %v9263_v1 = vpop.f32.mrb[97].mxu0 }
 0xdc4   : > { %9347 = vst [vmem:[%s15360_s25 + $0x30] sm:$0xff] %v9331_v24  ;;  %v12593_v36 = vadd.f32 %v9263_v1, %v14556_v0 }
 0xdc5   : > { %v9334_v7 = vadd.f32 %v12592_v37, %v15354_v4 }
 0xdc6   : > { %v9333_v30 = vadd.f32 %v12593_v36, %v15354_v4  ;;  %v11841_v16 = vpop.f32.mrb[98].mxu0 }
 0xdc7   : > { %9350 = vst [vmem:[%s15360_s25 + $0x48] sm:$0xff] %v9334_v7  ;;  %v12594_v63 = vadd.f32 %v11841_v16, %v14558_v18  ;;  %v9273_v22 = vpop.f32.mrb[99].mxu0 }
 0xdc8   : > { %9349 = vst [vmem:[%s15360_s25 + $0x40] sm:$0xff] %v9333_v30  ;;  %v12595_v52 = vadd.f32 %v9273_v22, %v14560_v26 }
 0xdc9   : > { %v9336_v5 = vadd.f32 %v12594_v63, %v15354_v4 }
 0xdca   : > { %v9335_v0 = vadd.f32 %v12595_v52, %v15354_v4  ;;  %v11844_v60 = vpop.f32.mrb[100].mxu0 }
 0xdcb   : > { %9352 = vst [vmem:[%s15360_s25 + $0x58] sm:$0xff] %v9336_v5  ;;  %v12596_v53 = vadd.f32 %v11844_v60, %v14562_v12  ;;  %v9283_v50 = vpop.f32.mrb[101].mxu0 }
 0xdcc   : > { %9351 = vst [vmem:[%s15360_s25 + $0x50] sm:$0xff] %v9335_v0  ;;  %v12597_v18 = vadd.f32 %v9283_v50, %v14564_v9 }
 0xdcd   : > { %v9338_v46 = vadd.f32 %v12596_v53, %v15354_v4 }
 0xdce   : > { %v9337_v26 = vadd.f32 %v12597_v18, %v15354_v4  ;;  %v11847_v13 = vpop.f32.mrb[102].mxu0 }
 0xdcf   : > { %9354 = vst [vmem:[%s15360_s25 + $0x68] sm:$0xff] %v9338_v46  ;;  %v12598_v47 = vadd.f32 %v11847_v13, %v14566_v38  ;;  %v9293_v28 = vpop.f32.mrb[103].mxu0 }
 0xdd0   : > { %9353 = vst [vmem:[%s15360_s25 + $0x60] sm:$0xff] %v9337_v26  ;;  %v12599_v12 = vadd.f32 %v9293_v28, %v14568_v45 }
 0xdd1   : > { %v9340_v35 = vadd.f32 %v12598_v47, %v15354_v4 }
 0xdd2   : > { %v9339_v9 = vadd.f32 %v12599_v12, %v15354_v4 }
 0xdd3   : > { %9356 = vst [vmem:[%s15360_s25 + $0x78] sm:$0xff] %v9340_v35 }
 0xdd4   : > { %9355 = vst [vmem:[%s15360_s25 + $0x70] sm:$0xff] %v9339_v9 }
 0xdd5   : > { %12996 = shalt.err (!%p12993_p3)
}
 0xdd6   : > { %s12997_s18 = scalar_lea.hbm %s15408_s12, 2048  ;;  %s13001_s28 = scalar_lea.hbm %s15468_s10, 4096 }
 0xdd7   : > { %p12998_p4 = scmp.ne.s32.totalorder %s15408_s12, %s12997_s18  ;;  %p13002_p9 = scmp.lt.u32.totalorder %s15408_s12, %s15468_s10 }
 0xdd8   : > { %p13003_p10 = scmp.lt.u32.totalorder %s13001_s28, %s12997_s18  ;;  %p13005_p12 = scmp.lt.u32.totalorder %s12997_s18, %s15408_s12 }
 0xdd9   : > { %p12999_p7 = pnand %p12998_p4, %p13143_p5 }
 0xdda   : > { %p13004_p11 = por %p13003_p10, %p13002_p9 }
 0xddb   : > { %p13000_p8 = pneg %p12999_p7 }
 0xddc   : > { %p13006_p13 = por %p13005_p12, %p13004_p11 }
 0xdde   : > { %p13007_p0 = pnand %p13006_p13, %p13000_p8 }
 0xde0   : > { %13010 = shalt.err (!%p13007_p0)
}
 0xde1   : > { %s13048_s29 = smov 128   ;;  %s13049_s20 = smov 8  }
 0xde2   : > { %12632 = dma.vmem_to_hbm [thread:$0]  (%p13143_p5), %s15410_s11, 2048, %s15408_s12, %s15417_s17, %s13048_s29, %s13048_s29, %s13049_s20  }
 0xde3 PF: > { %p12638_p1 = scmp.ge.s32.totalorder %s13045_s16, 2  ;;  %s9386_s21 = sand.u32 1, %s13033_s13  }
 0xde4   : > { %s9387_s18 = scalar_lea.sflag [#allocation3], %s9386_s21 }
 0xde5   : > { %p12635_p2 = pnand %p12638_p1, %p13147_p6 }
 0xde7   : > { %13028 = dma.done.wait (!%p12635_p2), %s9387_s18, 2048  }
 0xde8   : > { %13030 = vsyncadd (!%p12635_p2), %s9387_s18, 4294965248  ;;  %p20_p3 = scmp.ge.s32.totalorder %s13130_s19, 4   ;;  %s15485_s13 = smov %s13037_s14 }
 0xde9   : > { %s15486_s14 = smov %s13041_s15  ;;  %s15487_s15 = smov %s13141_s22 }
 0xdea   : > { %s15488_s16 = smov %s13130_s19  ;;  %22 = sbr.rel (!%p20_p3) target bundleno = 3 (0x3), region = 116 }
 0xdf1   :  { %9392 = vsyncpa [#allocation3], 1 }
 0xdf2   :  { %9394 = vsyncpa [#allocation3 + $0x1], 1 }

</bundles_post_ra>
